<compile_context>
chip_gen: v6e
topology: v6e:2x2x1
jax: 0.10.0
libtpu: 0.0.40
codegen_flags: <defaults>
</compile_context>

<pallas_src>
import functools

import jax
import jax.numpy as jnp
from jax.experimental import pallas as pl
from jax.experimental.pallas import tpu as pltpu


# ---------------------------------------------------------------------------
# Kernels
# ---------------------------------------------------------------------------

def _sage_layer_kernel(a_ref, xn_ref, xr_ref, wl_ref, wr_ref, b_ref, s_ref,
                       o_ref, acc_ref, *, apply_relu: bool):
    """Standard path: accumulate A_bin @ X over k-tiles; epilogue applies
    the per-row 1/deg scale, W_l, W_r, bias and ReLU.

    a_ref  : (TN, TK)       int8 {0,1} adjacency tile
    xn_ref : (TK, Fin)      bf16 neighbor-feature tile
    xr_ref : (TN, Fin)      bf16 root features of this node tile
    wl_ref : (Fin, Fout_p)  bf16 W_l^T (zero-padded rows/cols)
    wr_ref : (Fin, Fout_p)  bf16 W_r^T (zero-padded rows/cols)
    b_ref  : (1, Fout_p)    f32 bias (zero-padded)
    s_ref  : (TN, 1)        f32 per-row 1/deg
    o_ref  : (TN, Fout_p)
    acc_ref: (TN, Fin)      f32 VMEM accumulator
    """
    k = pl.program_id(1)

    @pl.when(k == 0)
    def _():
        acc_ref[...] = jnp.zeros_like(acc_ref)

    a = a_ref[...].astype(jnp.bfloat16)          # int8 {0,1} -> bf16, exact
    acc_ref[...] += jnp.dot(a, xn_ref[...], preferred_element_type=jnp.float32)

    @pl.when(k == pl.num_programs(1) - 1)
    def _():
        agg = (s_ref[...] * acc_ref[...]).astype(jnp.bfloat16)   # mean aggregation
        out = jnp.dot(agg, wl_ref[...], preferred_element_type=jnp.float32)
        out = out + jnp.dot(xr_ref[...], wr_ref[...],
                            preferred_element_type=jnp.float32)
        out = out + b_ref[...]
        if apply_relu:
            out = jnp.maximum(out, 0.0)
        o_ref[...] = out.astype(o_ref.dtype)


def _sage_layer_premul_kernel(a_ref, xwl_ref, xr_ref, wr_ref, b_ref, s_ref,
                              o_ref, acc_ref, *, apply_relu: bool):
    """Reassociated path (Fout_pad < Fin): XWl = X @ W_l^T precomputed.
    The accumulator is initialized with the root term (xr @ W_r^T + b) at k==0,
    each step adds (1/deg) * (A_tile @ XWl_tile), and the tail step is only
    ReLU + cast + store.

    xwl_ref: (TK, Fout_p)   bf16 pre-multiplied neighbor features
    acc_ref: (TN, Fout_p)   f32 accumulator
    """
    k = pl.program_id(1)

    @pl.when(k == 0)
    def _():
        acc_ref[...] = (jnp.dot(xr_ref[...], wr_ref[...],
                                preferred_element_type=jnp.float32)
                        + b_ref[...])

    a = a_ref[...].astype(jnp.bfloat16)
    acc_ref[...] += s_ref[...] * jnp.dot(a, xwl_ref[...],
                                         preferred_element_type=jnp.float32)

    @pl.when(k == pl.num_programs(1) - 1)
    def _():
        out = acc_ref[...]
        if apply_relu:
            out = jnp.maximum(out, 0.0)
        o_ref[...] = out.astype(o_ref.dtype)


def _xw_kernel(x_ref, w_ref, o_ref):
    """Small matmul: XWl = X @ W_l^T (bf16 in, f32 acc, bf16 out)."""
    o_ref[...] = jnp.dot(x_ref[...], w_ref[...],
                         preferred_element_type=jnp.float32).astype(o_ref.dtype)


# ---------------------------------------------------------------------------
# Wrappers
# ---------------------------------------------------------------------------

def _round_up(n, m):
    return ((n + m - 1) // m) * m


def prepare_graph(adj, *, tile_n=512, tile_k=1024):
    """One-time adjacency preparation (hoist out of repeated forwards).

    adj: dense [N, N]; nonzero entry (i, j) means j is aggregated into node i.
    Returns (adj_i8 [N_pad, N_pad], inv_deg [N_pad, 1], tn, tk, N).
    """
    assert tile_n % 128 == 0 and tile_k % 128 == 0
    N = adj.shape[0]
    tn = min(tile_n, _round_up(N, 128))
    tk = min(tile_k, _round_up(N, 128))
    tk = max(tn, (tk // tn) * tn)          # tk a multiple of tn (even tile count)
    n_pad_total = _round_up(N, tk)         # pad once: divisible by tn and tk
    pad = n_pad_total - N

    a_bin = (adj != 0)
    deg = jnp.maximum(a_bin.sum(axis=1).astype(jnp.float32), 1.0)
    inv_deg = jnp.zeros((n_pad_total, 1), jnp.float32).at[:N, 0].set(1.0 / deg)
    adj_i8 = jnp.pad(a_bin.astype(jnp.int8), ((0, pad), (0, pad)))
    return adj_i8, inv_deg, tn, tk, N


def _premultiply(x_bf, wl_t, tn):
    """XWl = X @ W_l^T via a small node-tiled Pallas matmul (bf16 out)."""
    N, Fin = x_bf.shape
    Fout_pad = wl_t.shape[1]
    return pl.pallas_call(
        _xw_kernel,
        out_shape=jax.ShapeDtypeStruct((N, Fout_pad), jnp.bfloat16),
        grid_spec=pltpu.PrefetchScalarGridSpec(
            num_scalar_prefetch=0,
            grid=(N // tn,),
            in_specs=[
                pl.BlockSpec((tn, Fin), lambda i: (i, 0)),
                pl.BlockSpec((Fin, Fout_pad), lambda i: (0, 0)),
            ],
            out_specs=pl.BlockSpec((tn, Fout_pad), lambda i: (i, 0)),
        ),
        compiler_params=pltpu.CompilerParams(
            dimension_semantics=("parallel",)),
    )(x_bf, wl_t)


def sage_layer(x_bf, adj_i8, inv_deg, w_l, w_r, b_l, *, apply_relu, tn, tk):
    """One SAGEConv layer (+ optional ReLU) on padded operands.

    x_bf   : [N_pad, Fin] bf16 (Fin may already be lane-padded from prev layer)
    adj_i8 : [N_pad, N_pad] int8 binary adjacency
    inv_deg: [N_pad, 1] f32 per-row mean weights
    Returns [N_pad, Fout_pad] (bf16 if apply_relu else f32), lane-padded.
    """
    N, Fin = x_bf.shape
    fout, fin_logical = w_l.shape
    Fout_pad = _round_up(fout, 128)            # lane-dense (unmasked) stores
    assert N % tn == 0 and N % tk == 0 and Fin >= fin_logical

    # Zero-pad weight rows up to the streamed feature width and columns up to
    # Fout_pad (exact: padded feature columns are zero / padded outputs unused).
    wl_t = jnp.zeros((Fin, Fout_pad), jnp.bfloat16
                     ).at[:fin_logical, :fout].set(w_l.T.astype(jnp.bfloat16))
    wr_t = jnp.zeros((Fin, Fout_pad), jnp.bfloat16
                     ).at[:fin_logical, :fout].set(w_r.T.astype(jnp.bfloat16))
    b2d = jnp.zeros((1, Fout_pad), jnp.float32).at[0, :fout].set(
        b_l.astype(jnp.float32))

    out_dtype = jnp.bfloat16 if apply_relu else jnp.float32
    # Reassociate A@(X@Wl) only when it shrinks the streamed O(N^2 * f) term,
    # comparing the actual (padded) streamed widths.
    premul = Fout_pad < Fin

    if premul:
        xn = _premultiply(x_bf, wl_t, tn)          # (N, Fout_pad) bf16
        f_xn = Fout_pad
        acc_w = Fout_pad
        n_big_w = 1
        kernel = functools.partial(_sage_layer_premul_kernel,
                                   apply_relu=apply_relu)
        operands = (adj_i8, xn, x_bf, wr_t, b2d, inv_deg)
        in_specs = [
            pl.BlockSpec((tn, tk), lambda i, k: (i, k)),          # A tile (int8)
            pl.BlockSpec((tk, f_xn), lambda i, k: (k, 0)),        # XWl tile
            pl.BlockSpec((tn, Fin), lambda i, k: (i, 0)),         # root X rows
            pl.BlockSpec((Fin, Fout_pad), lambda i, k: (0, 0)),   # W_r^T
            pl.BlockSpec((1, Fout_pad), lambda i, k: (0, 0)),     # bias
            pl.BlockSpec((tn, 1), lambda i, k: (i, 0)),           # 1/deg
        ]
    else:
        xn = x_bf
        f_xn = Fin
        acc_w = Fin
        n_big_w = 2
        kernel = functools.partial(_sage_layer_kernel, apply_relu=apply_relu)
        operands = (adj_i8, xn, x_bf, wl_t, wr_t, b2d, inv_deg)
        in_specs = [
            pl.BlockSpec((tn, tk), lambda i, k: (i, k)),          # A tile (int8)
            pl.BlockSpec((tk, f_xn), lambda i, k: (k, 0)),        # X tile
            pl.BlockSpec((tn, Fin), lambda i, k: (i, 0)),         # root X rows
            pl.BlockSpec((Fin, Fout_pad), lambda i, k: (0, 0)),   # W_l^T
            pl.BlockSpec((Fin, Fout_pad), lambda i, k: (0, 0)),   # W_r^T
            pl.BlockSpec((1, Fout_pad), lambda i, k: (0, 0)),     # bias
            pl.BlockSpec((tn, 1), lambda i, k: (i, 0)),           # 1/deg
        ]

    # VMEM budget: double-buffered streams + resident weights + accumulator.
    out_bytes = jnp.dtype(out_dtype).itemsize
    est = (2 * tn * tk * 1                 # A, int8, 2 buffers
           + 2 * tk * f_xn * 2             # neighbor-feature stream (bf16)
           + 2 * tn * Fin * 2              # root-feature stream (bf16)
           + 2 * n_big_w * Fin * Fout_pad * 2   # weights
           + 2 * Fout_pad * 4              # bias
           + 2 * tn * 4                    # 1/deg
           + 2 * tn * Fout_pad * out_bytes  # output
           + tn * acc_w * 4)               # accumulator scratch
    # Cap at 48 MiB: leaves >=16 MiB headroom on v7x (64 MiB VMEM/TC); request
    # is ~32 MiB anyway, well under v5e/v6e's 128 MiB.
    vmem_limit = int(min(max(2 * est, 32 * 1024 * 1024), 48 * 1024 * 1024))

    return pl.pallas_call(
        kernel,
        out_shape=jax.ShapeDtypeStruct((N, Fout_pad), out_dtype),
        grid_spec=pltpu.PrefetchScalarGridSpec(
            num_scalar_prefetch=0,
            grid=(N // tn, N // tk),               # (node tiles, neighbor tiles)
            in_specs=in_specs,
            out_specs=pl.BlockSpec((tn, Fout_pad), lambda i, k: (i, 0)),
            scratch_shapes=[pltpu.VMEM((tn, acc_w), jnp.float32)],
        ),
        compiler_params=pltpu.CompilerParams(
            dimension_semantics=("parallel", "arbitrary"),
            vmem_limit_bytes=vmem_limit,
        ),
    )(*operands)


def sage_full_forward(x, graph, params):
    """SAGE_Full forward: ReLU (+ eval-mode dropout = identity) on all but the
    last layer.  `graph` comes from prepare_graph(adj)."""
    adj_i8, inv_deg, tn, tk, N = graph
    n_pad_total = adj_i8.shape[0]
    h = jnp.pad(x.astype(jnp.bfloat16), ((0, n_pad_total - N), (0, 0)))

    n_layers = len(params)
    for li, (w_l, w_r, b_l) in enumerate(params):
        last = li == n_layers - 1
        h = sage_layer(h, adj_i8, inv_deg, w_l, w_r, b_l,
                       apply_relu=not last, tn=tn, tk=tk)
        # TODO(synk): training-mode dropout (stateful PRNG mask) would go here.

    fout_last = params[-1][0].shape[0]
    return h[:N, :fout_last]


# ---------------------------------------------------------------------------
# Params & reference
# ---------------------------------------------------------------------------

def init_params(key, in_channels, hidden_channels, out_channels, num_layers):
    """Glorot-uniform-ish init matching SAGEConv parameter shapes."""
    dims = [in_channels] + [hidden_channels] * (num_layers - 1) + [out_channels]
    params = []
    for li in range(num_layers):
        fin, fout = dims[li], dims[li + 1]
        key, k1, k2 = jax.random.split(key, 3)
        scale = jnp.sqrt(6.0 / (fin + fout))
        w_l = jax.random.uniform(k1, (fout, fin), jnp.float32, -scale, scale)
        w_r = jax.random.uniform(k2, (fout, fin), jnp.float32, -scale, scale)
        b_l = jnp.zeros((fout,), jnp.float32)
        params.append((w_l, w_r, b_l))
    return params


def reference_forward(x, adj, params):
    """Plain-JAX reference mirroring the kernel numerics: binary A (exact),
    f32 per-row 1/deg, bf16 MXU operands, f32 accumulation, bf16 hidden
    activations, same matmul association."""
    a_bf = (adj != 0).astype(jnp.bfloat16)            # 0/1 exact in bf16
    deg = jnp.maximum((adj != 0).sum(axis=1, keepdims=True).astype(jnp.float32), 1.0)
    inv_deg = 1.0 / deg

    n_layers = len(params)
    h = x
    f_stream = x.shape[1]                             # streamed width per layer
    for li, (w_l, w_r, b_l) in enumerate(params):
        last = li == n_layers - 1
        fout, _ = w_l.shape
        fout_pad = _round_up(fout, 128)
        x_bf = h.astype(jnp.bfloat16)
        wl_bf = w_l.T.astype(jnp.bfloat16)
        wr_bf = w_r.T.astype(jnp.bfloat16)
        if fout_pad < f_stream:                       # reassociated path
            xwl = jnp.dot(x_bf, wl_bf,
                          preferred_element_type=jnp.float32).astype(jnp.bfloat16)
            out = inv_deg * jnp.dot(a_bf, xwl, preferred_element_type=jnp.float32)
        else:
            agg = (inv_deg * jnp.dot(a_bf, x_bf,
                                     preferred_element_type=jnp.float32)
                   ).astype(jnp.bfloat16)
            out = jnp.dot(agg, wl_bf, preferred_element_type=jnp.float32)
        out = out + jnp.dot(x_bf, wr_bf, preferred_element_type=jnp.float32)
        out = out + b_l
        if not last:
            out = jnp.maximum(out, 0.0).astype(jnp.bfloat16)
        h = out
        f_stream = fout_pad
    return h.astype(jnp.float32)


# ---------------------------------------------------------------------------
# Demo / self-test
# ---------------------------------------------------------------------------

if __name__ == "__main__":
    # Small synthetic graph; N not a multiple of 128 to exercise the padding
    # path, and Fin/Fout chosen so both kernel variants (standard + premul) run.
    N = 1500
    in_channels = 64
    hidden_channels = 256
    out_channels = 32
    num_layers = 3
    dropout = 0.5          # eval mode -> identity

    key = jax.random.PRNGKey(0)
    key, kx, ka, kp = jax.random.split(key, 4)

    x = jax.random.normal(kx, (N, in_channels), jnp.float32)

    # Random sparse-ish binary adjacency (row i = in-neighbors of node i).
    adj = (jax.random.uniform(ka, (N, N)) < 0.02).astype(jnp.float32)

    params = init_params(kp, in_channels, hidden_channels, out_channels, num_layers)

    graph = prepare_graph(adj)                 # one-time int8-A + 1/deg prep
    out = sage_full_forward(x, graph, params)
    out = jax.block_until_ready(out)

    ref = reference_forward(x, adj, params)
    assert out.shape == (N, out_channels)
    assert jnp.allclose(out, ref, atol=2e-2, rtol=2e-2), \
        float(jnp.max(jnp.abs(out - ref)))

    print("KERNEL_OK")
</pallas_src>

<mosaic_0001>
module attributes {stable_mosaic.version = 11 : i64} {
  func.func @_sage_layer_kernel(%arg0: i32, %arg1: i32, %arg2: memref<512x1024xi8, #tpu.memory_space<vmem>>, %arg3: memref<1024x64xbf16, #tpu.memory_space<vmem>>, %arg4: memref<512x64xbf16, #tpu.memory_space<vmem>>, %arg5: memref<64x256xbf16, #tpu.memory_space<vmem>>, %arg6: memref<64x256xbf16, #tpu.memory_space<vmem>>, %arg7: memref<1x256xf32, #tpu.memory_space<vmem>>, %arg8: memref<512x1xf32, #tpu.memory_space<vmem>>, %arg9: memref<512x256xbf16, #tpu.memory_space<vmem>>, %arg10: memref<512x64xf32, #tpu.memory_space<vmem>>) attributes {dimension_semantics = [#tpu.dimension_semantics<parallel>, #tpu.dimension_semantics<arbitrary>], iteration_bounds = array<i64: 4, 2>, scalar_prefetch = 0 : i64, scratch_operands = 1 : i64, tpu.core_type = #tpu.core_type<tc>, window_params = [{transform_indices = @transform_0, window_bounds = array<i64: 512, 1024>}, {transform_indices = @transform_1, window_bounds = array<i64: 1024, 64>}, {transform_indices = @transform_2, window_bounds = array<i64: 512, 64>}, {pipeline_mode = #tpu.pipeline_mode<synchronous>, transform_indices = @transform_3, window_bounds = array<i64: 64, 256>}, {pipeline_mode = #tpu.pipeline_mode<synchronous>, transform_indices = @transform_4, window_bounds = array<i64: 64, 256>}, {pipeline_mode = #tpu.pipeline_mode<synchronous>, transform_indices = @transform_5, window_bounds = array<i64: 1, 256>}, {transform_indices = @transform_6, window_bounds = array<i64: 512, 1>}, {transform_indices = @transform_7, window_bounds = array<i64: 512, 256>}]} {
    %c0_i32 = arith.constant 0 : i32
    %0 = arith.cmpi eq, %arg1, %c0_i32 : i32
    %1 = arith.extui %0 : i1 to i32
    %c0_i32_0 = arith.constant 0 : i32
    %2 = arith.cmpi ne, %1, %c0_i32_0 : i32
    scf.if %2 {
      %cst_9 = arith.constant 0.000000e+00 : f32
      %13 = vector.broadcast %cst_9 : f32 to vector<512x64xf32>
      %c0_10 = arith.constant 0 : index
      %c0_11 = arith.constant 0 : index
      %14 = vector.load %arg10[%c0_10, %c0_11] : memref<512x64xf32, #tpu.memory_space<vmem>>, vector<512x64xf32>
      tpu.vector_store %arg10[%c0_10, %c0_11], %13 {strides = array<i32>} : memref<512x64xf32, #tpu.memory_space<vmem>>, vector<512x64xf32>,
    } else {
    }
    %c0 = arith.constant 0 : index
    %c0_1 = arith.constant 0 : index
    %3 = vector.load %arg2[%c0, %c0_1] : memref<512x1024xi8, #tpu.memory_space<vmem>>, vector<512x1024xi8>
    %4 = arith.sitofp %3 : vector<512x1024xi8> to vector<512x1024xbf16>
    %c0_2 = arith.constant 0 : index
    %c0_3 = arith.constant 0 : index
    %5 = vector.load %arg10[%c0_2, %c0_3] : memref<512x64xf32, #tpu.memory_space<vmem>>, vector<512x64xf32>
    %c0_4 = arith.constant 0 : index
    %c0_5 = arith.constant 0 : index
    %6 = vector.load %arg3[%c0_4, %c0_5] : memref<1024x64xbf16, #tpu.memory_space<vmem>>, vector<1024x64xbf16>
    %cst = arith.constant dense<0.000000e+00> : vector<512x64xf32>
    %7 = tpu.matmul %4, %6, %cst {dimension_numbers = #tpu.dot_dimension_numbers<[1], [0], [0], [1], [0, 0, 1, 1], [], []>} : vector<512x1024xbf16>, vector<1024x64xbf16>, vector<512x64xf32> -> vector<512x64xf32>
    %8 = arith.addf %5, %7 : vector<512x64xf32>
    %c0_6 = arith.constant 0 : index
    %c0_7 = arith.constant 0 : index
    %9 = vector.load %arg10[%c0_6, %c0_7] : memref<512x64xf32, #tpu.memory_space<vmem>>, vector<512x64xf32>
    tpu.vector_store %arg10[%c0_6, %c0_7], %8 {strides = array<i32>} : memref<512x64xf32, #tpu.memory_space<vmem>>, vector<512x64xf32>,
    %c1_i32 = arith.constant 1 : i32
    %10 = arith.cmpi eq, %arg1, %c1_i32 : i32
    %11 = arith.extui %10 : i1 to i32
    %c0_i32_8 = arith.constant 0 : i32
    %12 = arith.cmpi ne, %11, %c0_i32_8 : i32
    scf.if %12 {
      %c0_9 = arith.constant 0 : index
      %c0_10 = arith.constant 0 : index
      %13 = vector.load %arg8[%c0_9, %c0_10] : memref<512x1xf32, #tpu.memory_space<vmem>>, vector<512x1xf32>
      %c0_11 = arith.constant 0 : index
      %c0_12 = arith.constant 0 : index
      %14 = vector.load %arg10[%c0_11, %c0_12] : memref<512x64xf32, #tpu.memory_space<vmem>>, vector<512x64xf32>
      %15 = vector.broadcast %13 : vector<512x1xf32> to vector<512x64xf32>
      %16 = arith.mulf %15, %14 : vector<512x64xf32>
      %17 = arith.truncf %16 : vector<512x64xf32> to vector<512x64xbf16>
      %c0_13 = arith.constant 0 : index
      %c0_14 = arith.constant 0 : index
      %18 = vector.load %arg5[%c0_13, %c0_14] : memref<64x256xbf16, #tpu.memory_space<vmem>>, vector<64x256xbf16>
      %cst_15 = arith.constant dense<0.000000e+00> : vector<512x256xf32>
      %19 = tpu.matmul %17, %18, %cst_15 {dimension_numbers = #tpu.dot_dimension_numbers<[1], [0], [0], [1], [0, 0, 1, 1], [], []>} : vector<512x64xbf16>, vector<64x256xbf16>, vector<512x256xf32> -> vector<512x256xf32>
      %c0_16 = arith.constant 0 : index
      %c0_17 = arith.constant 0 : index
      %20 = vector.load %arg4[%c0_16, %c0_17] : memref<512x64xbf16, #tpu.memory_space<vmem>>, vector<512x64xbf16>
      %c0_18 = arith.constant 0 : index
      %c0_19 = arith.constant 0 : index
      %21 = vector.load %arg6[%c0_18, %c0_19] : memref<64x256xbf16, #tpu.memory_space<vmem>>, vector<64x256xbf16>
      %cst_20 = arith.constant dense<0.000000e+00> : vector<512x256xf32>
      %22 = tpu.matmul %20, %21, %cst_20 {dimension_numbers = #tpu.dot_dimension_numbers<[1], [0], [0], [1], [0, 0, 1, 1], [], []>} : vector<512x64xbf16>, vector<64x256xbf16>, vector<512x256xf32> -> vector<512x256xf32>
      %23 = arith.addf %19, %22 : vector<512x256xf32>
      %c0_21 = arith.constant 0 : index
      %c0_22 = arith.constant 0 : index
      %24 = vector.load %arg7[%c0_21, %c0_22] : memref<1x256xf32, #tpu.memory_space<vmem>>, vector<1x256xf32>
      %25 = vector.broadcast %24 : vector<1x256xf32> to vector<512x256xf32>
      %26 = arith.addf %23, %25 : vector<512x256xf32>
      %cst_23 = arith.constant 0.000000e+00 : f32
      %27 = vector.broadcast %cst_23 : f32 to vector<512x256xf32>
      %28 = arith.maximumf %26, %27 : vector<512x256xf32>
      %29 = arith.truncf %28 : vector<512x256xf32> to vector<512x256xbf16>
      %c0_24 = arith.constant 0 : index
      %c0_25 = arith.constant 0 : index
      %30 = vector.load %arg9[%c0_24, %c0_25] : memref<512x256xbf16, #tpu.memory_space<vmem>>, vector<512x256xbf16>
      tpu.vector_store %arg9[%c0_24, %c0_25], %29 {strides = array<i32>} : memref<512x256xbf16, #tpu.memory_space<vmem>>, vector<512x256xbf16>,
    } else {
    }
    return
  }
  func.func @transform_0(%arg0: i32, %arg1: i32) -> (i32, i32) {
    %c0_i32 = arith.constant 0 : i32
    return %arg0, %arg1 : i32, i32
  }
  func.func @transform_1(%arg0: i32, %arg1: i32) -> (i32, i32) {
    %c0_i32 = arith.constant 0 : i32
    %c0_i32_0 = arith.constant 0 : i32
    return %arg1, %c0_i32 : i32, i32
  }
  func.func @transform_2(%arg0: i32, %arg1: i32) -> (i32, i32) {
    %c0_i32 = arith.constant 0 : i32
    %c0_i32_0 = arith.constant 0 : i32
    return %arg0, %c0_i32 : i32, i32
  }
  func.func @transform_3(%arg0: i32, %arg1: i32) -> (i32, i32) {
    %c0_i32 = arith.constant 0 : i32
    %c0_i32_0 = arith.constant 0 : i32
    %c0_i32_1 = arith.constant 0 : i32
    return %c0_i32, %c0_i32_0 : i32, i32
  }
  func.func @transform_4(%arg0: i32, %arg1: i32) -> (i32, i32) {
    %c0_i32 = arith.constant 0 : i32
    %c0_i32_0 = arith.constant 0 : i32
    %c0_i32_1 = arith.constant 0 : i32
    return %c0_i32, %c0_i32_0 : i32, i32
  }
  func.func @transform_5(%arg0: i32, %arg1: i32) -> (i32, i32) {
    %c0_i32 = arith.constant 0 : i32
    %c0_i32_0 = arith.constant 0 : i32
    %c0_i32_1 = arith.constant 0 : i32
    return %c0_i32, %c0_i32_0 : i32, i32
  }
  func.func @transform_6(%arg0: i32, %arg1: i32) -> (i32, i32) {
    %c0_i32 = arith.constant 0 : i32
    %c0_i32_0 = arith.constant 0 : i32
    return %arg0, %c0_i32 : i32, i32
  }
  func.func @transform_7(%arg0: i32, %arg1: i32) -> (i32, i32) {
    %c0_i32 = arith.constant 0 : i32
    %c0_i32_0 = arith.constant 0 : i32
    return %arg0, %c0_i32 : i32, i32
  }
}

</mosaic_0001>

<bundles_post_ra>
// kernel: tpu_custom_call.1
= control target key start
LH: loop header
LB: loop body
LE: loop exit
PB: predicated region body
PF: predicated region fallthrough
CT: control target
= control target key end

     0   :  { %s7988_s0 = inlined_call_operand.hbm [shape: s8[2048,2048], index: 0, kind: input, shape index: {}]   ;;  %s7989_s1 = inlined_call_operand.vmem [shape: bf16[2048,64], index: 1, kind: input, shape index: {}]   ;;  %s7990_s2 = inlined_call_operand.vmem [shape: bf16[2048,64], index: 2, kind: input, shape index: {}]   ;;  %s7991_s3 = inlined_call_operand.hbm [shape: bf16[64,256], index: 3, kind: input, shape index: {}]   ;;  %s7992_s4 = inlined_call_operand.hbm [shape: bf16[64,256], index: 4, kind: input, shape index: {}]   ;;  %s7993_s5 = inlined_call_operand.hbm [shape: f32[1,256], index: 5, kind: input, shape index: {}]   ;;  %s7994_s6 = inlined_call_operand.vmem [shape: f32[2048,1], index: 6, kind: input, shape index: {}]   ;;  %s7995_s7 = inlined_call_operand.hbm [shape: bf16[2048,256], index: 7, kind: output, shape index: {}]  }
   0x1   :  { %8012 = sst [smem:[#allocation49_spill]] %s7991_s3 }
   0x2   :  { %8013 = sst [smem:[#allocation50_spill]] %s7992_s4 }
   0x3   :  { %8014 = sst [smem:[#allocation51_spill]] %s7993_s5 }
   0x4   :  { %8015 = sst [smem:[#allocation52_spill]] %s7994_s6 }
   0x5   :  { %8016 = sst [smem:[#allocation53_spill]] %s7995_s7 }
   0x6   :  { %12 = vsyncpa [#allocation4], 0 }
   0x7   :  { %14 = vsyncpa [#allocation4 + $0x1], 0 }
   0x8   :  { %15 = vsyncpa [#allocation7], 0 }
   0x9   :  { %16 = vsyncpa [#allocation10], 0 }
   0xa   :  { %17 = vsyncpa [#allocation5], 0 }
   0xb   :  { %19 = vsyncpa [#allocation5 + $0x1], 0  ;;  %s6284_s24 = smov 0   ;;  %s6286_s25 = smov 0  }
   0xc   :  { %s6288_s26 = smov 0   ;;  %s6290_s27 = smov 0  }
   0xd   :  { %s6292_s28 = smov 0   ;;  %s6294_s29 = smov 0  }
   0xe   :  { %s6296_s30 = smov 0   ;;  %s6298_s8 = smov 0  }
   0xf   :  { %s6300_s9 = smov 0   ;;  %s6302_s10 = smov 0  }
  0x10   :  { %s6304_s11 = smov 0  }
  0x11 LB: > { %8017 = sst [smem:[#allocation16_spill]] %s6187_s24  ;;  %s5389_s12 = sadd.s32 4294967295, %s6227_s11   ;;  %s6227_s11 = sphi %s6304_s11, %s25_s11   ;;  %s6223_s10 = sphi %s6302_s10, %s8111_s10   ;;  %s6219_s9 = sphi %s6300_s9, %s8103_s9   ;;  %s6215_s8 = sphi %s6298_s8, %s8110_s8   ;;  %s6211_s30 = sphi %s6296_s30, %s8102_s30   ;;  %s6207_s29 = sphi %s6294_s29, %s8109_s29   ;;  %s6203_s28 = sphi %s6292_s28, %s8108_s28   ;;  %s6199_s27 = sphi %s6290_s27, %s8107_s27   ;;  %s6195_s26 = sphi %s6288_s26, %s8106_s26   ;;  %s6191_s25 = sphi %s6286_s25, %s8105_s25   ;;  %s6187_s24 = sphi %s6284_s24, %s8104_s24  }
  0x12   : > { %8018 = sst [smem:[#allocation17_spill]] %s6219_s9  ;;  %s5390_s13 = sadd.s32 4294967294, %s6227_s11  }
  0x13   : > { %8019 = sst [smem:[#allocation18_spill]] %s6227_s11  ;;  %p53_p0 = scmp.ne.s32.totalorder %s6207_s29, %s6203_s28 }
  0x14   : > { %p54_p1 = scmp.eq.s32.totalorder %s6227_s11, 0  ;;  %p59_p2 = scmp.ne.s32.totalorder %s6203_s28, %s6199_s27 }
  0x15   : > { %p6344_p3 = scmp.eq.s32.totalorder %s5389_s12, 0  ;;  %p223_p5 = scmp.ne.s32.totalorder %s6195_s26, %s6191_s25 }
  0x16   : > { %p6349_p4 = por %p54_p1, %p53_p0  ;;  %p224_p7 = scmp.eq.s32.totalorder %s5389_s12, 7 }
  0x17   : > { %s8020_s15 = scalar_select %p6344_p3, 1, 0 }
  0x18   : > { %p6357_p6 = por %p6344_p3, %p59_p2  ;;  %p229_p8 = scmp.ne.s32.totalorder %s6191_s25, %s6187_s24 }
  0x19   : > { %p230_p9 = scmp.eq.s32.totalorder %s5390_s13, 7  ;;  %p6363_p10 = por %p224_p7, %p223_p5 }
  0x1a   : > { %s8022_s18 = scalar_select %p6357_p6, 1, 0 }
  0x1b   : > { %s8023_s19 = scalar_select %p6363_p10, 1, 0 }
  0x1c   : > { %p5391_p11 = scmp.ge.s32.totalorder %s6227_s11, 1  ;;  %p6368_p12 = por %p230_p9, %p229_p8 }
  0x1d   : > { %8024 = sst [smem:[#allocation19_spill]] %s8023_s19  ;;  %p237_p13 = scmp.lt.s32.totalorder %s6227_s11, 9 }
  0x1e   : > { %s8025_s20 = scalar_select %p6368_p12, 1, 0 }
  0x1f   : > { %p6373_p0 = pnand %p5391_p11, %p237_p13  ;;  %s6229_s22 = smov [#allocation6]  }
  0x20   : > { %8026 = sst [smem:[#allocation20_spill]] %s8025_s20  ;;  %s249_s23 = sshll.u32 %s6229_s22, 4  ;;  %s250_s23 = int_to_ptr.vmem [resolvable:$true] %s249_s23 }
  0x21   : > { %p5744_p1 = pneg %p6373_p0  ;;  %p5765_p2 = scmp.lt.s32.totalorder %s6227_s11, 8 }
  0x22   : > { %s6230_s13 = smov [#allocation8]   ;;  %s6004_s22 = scalar_lea.vmem %s250_s23, 1024 }
  0x23   : > { %p6382_p5 = pnand %p5744_p1, %p6344_p3  ;;  %p6388_p7 = pnand %p5765_p2, %p6349_p4 }
  0x24   : > { %s262_s14 = sshll.u32 %s6230_s13, 4  ;;  %p6005_p9 = scmp.ne.s32.totalorder %s250_s23, %s6004_s22  ;;  %s263_s14 = int_to_ptr.vmem [resolvable:$true] %s262_s14 }
  0x25   : > { %p5995_p8 = pneg %p6382_p5  ;;  %p6012_p1 = scmp.lt.s32.totalorder %s250_s23, %s250_s23 }
  0x26   : > { %p6013_p12 = scmp.lt.s32.totalorder %s6004_s22, %s6004_s22 }
  0x27   : > { %p6007_p11 = pnand %p6005_p9, %p5995_p8 }
  0x28   : > { %p6014_p10 = por %p6013_p12, %p6012_p1 }
  0x29   : > { %p6008_p13 = pneg %p6007_p11 }
  0x2b   : > { %p6015_p3 = pnand %p6014_p10, %p6008_p13 }
  0x2d   : > { %6018 = shalt.err (!%p6015_p3)
}
  0x2e   : > { %s6231_s17 = smov 128   ;;  %s6232_s16 = smov 8  }
  0x2f   : > { %s8030_s3 = sld [smem:[#allocation49_spill]]  ;;  %s6030_s24 = scalar_lea.vmem %s263_s14, 1024 }
  0x30   : > { %p6031_p4 = scmp.ne.s32.totalorder %s263_s14, %s6030_s24  ;;  %p6038_p11 = scmp.lt.s32.totalorder %s263_s14, %s263_s14 }
  0x31   : > { %p6039_p6 = scmp.lt.s32.totalorder %s6030_s24, %s6030_s24 }
  0x32   : > { %p6033_p2 = pnand %p6031_p4, %p5995_p8 }
  0x33   : > { %p6040_p12 = por %p6039_p6, %p6038_p11 }
  0x34   : > { %p6034_p9 = pneg %p6033_p2 }
  0x35   : > { %5747 = dma.hbm_to_vmem [thread:$0]  (!%p6382_p5), %s8030_s3, 1024, %s250_s23, [#allocation7], %s6231_s17, %s6231_s17, %s6232_s16  }
  0x36   : > { %p6041_p10 = pnand %p6040_p12, %p6034_p9 }
  0x38   : > { %6044 = shalt.err (!%p6041_p10)
}
  0x39   : > { %s8031_s4 = sld [smem:[#allocation50_spill]]  ;;  %s6233_s20 = smov [#allocation9]  }
  0x3a   : > { %s276_s23 = sshll.u32 %s6233_s20, 4  ;;  %s277_s23 = int_to_ptr.vmem [resolvable:$true] %s276_s23 }
  0x3b   : > { %s6056_s13 = scalar_lea.vmem %s277_s23, 32  ;;  %p6064_p4 = scmp.lt.s32.totalorder %s277_s23, %s277_s23 }
  0x3c   : > { %p6057_p3 = scmp.ne.s32.totalorder %s277_s23, %s6056_s13  ;;  %p6065_p6 = scmp.lt.s32.totalorder %s6056_s13, %s6056_s13 }
  0x3e   : > { %p6059_p13 = pnand %p6057_p3, %p5995_p8  ;;  %p6066_p2 = por %p6065_p6, %p6064_p4 }
  0x3f   : > { %5750 = dma.hbm_to_vmem [thread:$0]  (!%p6382_p5), %s8031_s4, 1024, %s263_s14, [#allocation7], %s6231_s17, %s6231_s17, %s6232_s16  }
  0x40   : > { %p6060_p1 = pneg %p6059_p13 }
  0x42   : > { %p6067_p9 = pnand %p6066_p2, %p6060_p1 }
  0x44   : > { %6070 = shalt.err (!%p6067_p9)
}
  0x45   : > { %s8032_s5 = sld [smem:[#allocation51_spill]]  ;;  %s34_s14 = sadd.s32 1, %s6219_s9 }
  0x46   : > { %s37_s16 = sadd.s32 1, %s6223_s10  ;;  %p35_p8 = scmp.ge.s32.totalorder %s34_s14, 2 }
  0x47   : > { %s287_s17 = sand.u32 1, %s6207_s29   ;;  %s5398_s20 = sshll.u32 %s6219_s9, 3 }
  0x48   : > { %s5396_s22 = sshll.u32 %s287_s17, 10  ;;  %s8113_s14 = smov (%p35_p8, %s34_s14), 0 }
  0x49   : > { %8033 = sst [smem:[#allocation21_spill]] %s8113_s14  ;;  %s8115_s16 = smov (!%p35_p8, %s37_s16), %s6223_s10 }
  0x4a   : > { %s42_s27 = ssub.s32 %s6219_s9, %s8113_s14  ;;  %p39_p11 = scmp.ge.s32.totalorder %s8115_s16, 4 }
  0x4b   : > { %5753 = dma.hbm_to_vmem [thread:$0]  (!%p6382_p5), %s8032_s5, 32, %s277_s23, [#allocation10]  }
  0x4c   : > { %s5661_s13 = sshll.u32 %s6223_s10, 8  ;;  %s291_s23 = scalar_lea.vmem [#allocation3], %s5396_s22 }
  0x4d   : > { %s301_s24 = sshll.u32 %s291_s23, 4  ;;  %s8117_s16 = smov (%p39_p11, %s8115_s16), 0  ;;  %s6430_s24 = int_to_ptr.vmem [resolvable:$true] %s301_s24 }
  0x4e   : > { %s298_s11 = sadd.s32 %s5661_s13, %s5398_s20  ;;  %s41_s3 = ssub.s32 %s6223_s10, %s8117_s16 }
  0x4f   : > { %s5400_s4 = sshll.u32 %s298_s11, 7  ;;  %s43_s5 = sor.u32 %s42_s27, %s41_s3 }
  0x50   : > { %p211_p5 = scmp.eq.s32.totalorder %s41_s3, 0  ;;  %p44_p12 = scmp.eq.s32.totalorder %s43_s5, 0 }
  0x51   : > { %s300_s7 = scalar_lea.hbm %s7988_s0, %s5400_s4  ;;  %s8034_s22 = sadd.s32 1, %s6195_s26 }
  0x52   : > { %s6440_s23 = scalar_select %p211_p5, %s6195_s26, %s8034_s22  }
  0x53   : > { %s8035_s19 = sadd.s32 1, %s6207_s29  ;;  %s288_s20 = scalar_lea.sflag [#allocation4], %s287_s17 }
  0x54   : > { %s6445_s6 = scalar_select %p44_p12, %s6207_s29, %s8035_s19  }
  0x55   : > { %p6073_p10 = pneg %p6388_p7  ;;  %s6084_s13 = scalar_lea.vmem %s6430_s24, 16384 }
  0x56   : > { %p6085_p3 = scmp.ne.s32.totalorder %s6430_s24, %s6084_s13  ;;  %s6234_s27 = smov [#allocation3]  }
  0x57   : > { %s6089_s3 = sshll.u32 %s6234_s27, 4  ;;  %s6090_s3 = int_to_ptr.vmem [resolvable:$false] %s6089_s3 }
  0x58   : > { %p6087_p13 = pnand %p6085_p3, %p6073_p10  ;;  %s6091_s5 = scalar_lea.vmem %s6090_s3, 32768 }
  0x59   : > { %p6092_p4 = scmp.lt.s32.totalorder %s6430_s24, %s6090_s3  ;;  %p6093_p6 = scmp.lt.s32.totalorder %s6091_s5, %s6084_s13 }
  0x5a   : > { %p6088_p1 = pneg %p6087_p13 }
  0x5b   : > { %p6094_p2 = por %p6093_p6, %p6092_p4 }
  0x5d   : > { %p6095_p9 = pnand %p6094_p2, %p6088_p1 }
  0x5f   : > { %6098 = shalt.err (!%p6095_p9)
}
  0x60   : > { %s6235_s4 = smov 2048   ;;  %s6236_s9 = smov 1024  }
  0x61   : > { %s6237_s19 = smov 64   ;;  %340 = sbr.rel (%p6373_p0) target bundleno = 1548 (0x60c), region = 48 }
  0x62   : > { %5757 = dma.hbm_to_vmem [thread:$0]  (!%p6388_p7), %s300_s7, 16384, %s6430_s24, %s288_s20, %s6235_s4, %s6236_s9, %s6237_s19  }
  0x66   : > { %s342_s14 = sand.u32 1, %s6203_s28   ;;  %p8036_p8 = scmp.ne.s32.totalorder %s8022_s18, 0 }
  0x67   : > { %s5402_s17 = sshll.u32 %s342_s14, 10  ;;  %s343_s11 = scalar_lea.sflag [#allocation4], %s342_s14 }
  0x68   : > { %s6458_s22 = scalar_lea.vmem [#allocation3], %s5402_s17 }
  0x69   : > { %6170 = dma.done.wait (%p8036_p8), %s343_s11, 16384  }
  0x6a   : > { %6172 = vsyncadd (%p8036_p8), %s343_s11, 4294950912  ;;  %p8037_p11 = scmp.ne.s32.totalorder %s8020_s15, 0 }
  0x6c   : > { %6174 = dma.done.wait (%p8037_p11), [#allocation7], 2048  }
  0x6d   : > { %6176 = vsyncadd (%p8037_p11), [#allocation7], 4294965248 }
  0x6e   : > { %6178 = dma.done.wait (%p8037_p11), [#allocation10], 32  }
  0x6f   : > { %6180 = vsyncadd (%p8037_p11), [#allocation10], 4294967264  ;;  %s8009_s7 = sand.u32 1, %s6191_s25   ;;  %s5407_s21 = sshll.u32 %s6211_s30, 7 }
  0x70   : > { %s5406_s18 = sshll.u32 %s8009_s7, 9  ;;  %p407_p0 = scmp.lt.s32.totalorder %s5407_s21, 255 }
  0x71   : > { %s5409_s12 = sshll.u32 %s6215_s8, 6  ;;  %s8038_s17 = sld [smem:[#allocation52_spill]] }
  0x72   : > { %s8119_s21 = smov (!%p407_p0, %s5407_s21), 255  ;;  %p413_p7 = scmp.lt.s32.totalorder %s5409_s12, 255 }
  0x73   : > { %s5408_s24 = sshll.u32 %s8119_s21, 2  ;;  %s6492_s7 = scalar_lea.vmem [#allocation11], %s5406_s18 }
  0x74   : > { %s6480_s27 = scalar_lea.vmem %s7989_s1, %s5408_s24  ;;  %s8121_s12 = smov (!%p413_p7, %s5409_s12), 255 }
  0x75   : > { %s5410_s15 = sshll.u32 %s8121_s12, 2  ;;  %s5412_s3 = sshll.u32 %s8121_s12, 3 }
  0x76   : > { %s6485_s9 = scalar_lea.vmem %s7990_s2, %s5410_s15  ;;  %p5413_p5 = scmp.ne.s32.totalorder %s6211_s30, 0 }
  0x77   : > { %s6490_s11 = scalar_lea.vmem %s8038_s17, %s5412_s3 }
  0x78   : > { %429 = sbr.rel (%p5413_p5) target bundleno = 158 (0x9e), region = 68 }
  0x7d   : > { %vm430_vm0 = vcmask 523264   ;;  %v6238_v0 = vmov 0.0  }
  0x7e   : > { %431 = vst.msk [vmem:[#allocation2] sm:$0xff] %vm430_vm0, %v6238_v0  ;;  %432 = vst.msk [vmem:[#allocation2 + $0x8] sm:$0xff] %vm430_vm0, %v6238_v0 }
  0x7f   : > { %433 = vst.msk [vmem:[#allocation2 + $0x10] sm:$0xff] %vm430_vm0, %v6238_v0  ;;  %434 = vst.msk [vmem:[#allocation2 + $0x18] sm:$0xff] %vm430_vm0, %v6238_v0 }
  0x80   : > { %435 = vst.msk [vmem:[#allocation2 + $0x20] sm:$0xff] %vm430_vm0, %v6238_v0  ;;  %436 = vst.msk [vmem:[#allocation2 + $0x28] sm:$0xff] %vm430_vm0, %v6238_v0 }
  0x81   : > { %437 = vst.msk [vmem:[#allocation2 + $0x30] sm:$0xff] %vm430_vm0, %v6238_v0  ;;  %438 = vst.msk [vmem:[#allocation2 + $0x38] sm:$0xff] %vm430_vm0, %v6238_v0 }
  0x82   : > { %439 = vst.msk [vmem:[#allocation2 + $0x40] sm:$0xff] %vm430_vm0, %v6238_v0  ;;  %440 = vst.msk [vmem:[#allocation2 + $0x48] sm:$0xff] %vm430_vm0, %v6238_v0 }
  0x83   : > { %441 = vst.msk [vmem:[#allocation2 + $0x50] sm:$0xff] %vm430_vm0, %v6238_v0  ;;  %442 = vst.msk [vmem:[#allocation2 + $0x58] sm:$0xff] %vm430_vm0, %v6238_v0 }
  0x84   : > { %443 = vst.msk [vmem:[#allocation2 + $0x60] sm:$0xff] %vm430_vm0, %v6238_v0  ;;  %444 = vst.msk [vmem:[#allocation2 + $0x68] sm:$0xff] %vm430_vm0, %v6238_v0 }
  0x85   : > { %445 = vst.msk [vmem:[#allocation2 + $0x70] sm:$0xff] %vm430_vm0, %v6238_v0  ;;  %446 = vst.msk [vmem:[#allocation2 + $0x78] sm:$0xff] %vm430_vm0, %v6238_v0 }
  0x86   : > { %447 = vst.msk [vmem:[#allocation2 + $0x80] sm:$0xff] %vm430_vm0, %v6238_v0  ;;  %448 = vst.msk [vmem:[#allocation2 + $0x88] sm:$0xff] %vm430_vm0, %v6238_v0 }
  0x87   : > { %449 = vst.msk [vmem:[#allocation2 + $0x90] sm:$0xff] %vm430_vm0, %v6238_v0  ;;  %450 = vst.msk [vmem:[#allocation2 + $0x98] sm:$0xff] %vm430_vm0, %v6238_v0 }
  0x88   : > { %451 = vst.msk [vmem:[#allocation2 + $0xa0] sm:$0xff] %vm430_vm0, %v6238_v0  ;;  %452 = vst.msk [vmem:[#allocation2 + $0xa8] sm:$0xff] %vm430_vm0, %v6238_v0 }
  0x89   : > { %453 = vst.msk [vmem:[#allocation2 + $0xb0] sm:$0xff] %vm430_vm0, %v6238_v0  ;;  %454 = vst.msk [vmem:[#allocation2 + $0xb8] sm:$0xff] %vm430_vm0, %v6238_v0 }
  0x8a   : > { %455 = vst.msk [vmem:[#allocation2 + $0xc0] sm:$0xff] %vm430_vm0, %v6238_v0  ;;  %456 = vst.msk [vmem:[#allocation2 + $0xc8] sm:$0xff] %vm430_vm0, %v6238_v0 }
  0x8b   : > { %457 = vst.msk [vmem:[#allocation2 + $0xd0] sm:$0xff] %vm430_vm0, %v6238_v0  ;;  %458 = vst.msk [vmem:[#allocation2 + $0xd8] sm:$0xff] %vm430_vm0, %v6238_v0 }
  0x8c   : > { %459 = vst.msk [vmem:[#allocation2 + $0xe0] sm:$0xff] %vm430_vm0, %v6238_v0  ;;  %460 = vst.msk [vmem:[#allocation2 + $0xe8] sm:$0xff] %vm430_vm0, %v6238_v0 }
  0x8d   : > { %461 = vst.msk [vmem:[#allocation2 + $0xf0] sm:$0xff] %vm430_vm0, %v6238_v0  ;;  %462 = vst.msk [vmem:[#allocation2 + $0xf8] sm:$0xff] %vm430_vm0, %v6238_v0 }
  0x8e   : > { %463 = vst.msk [vmem:[#allocation2 + $0x100] sm:$0xff] %vm430_vm0, %v6238_v0  ;;  %464 = vst.msk [vmem:[#allocation2 + $0x108] sm:$0xff] %vm430_vm0, %v6238_v0 }
  0x8f   : > { %465 = vst.msk [vmem:[#allocation2 + $0x110] sm:$0xff] %vm430_vm0, %v6238_v0  ;;  %466 = vst.msk [vmem:[#allocation2 + $0x118] sm:$0xff] %vm430_vm0, %v6238_v0 }
  0x90   : > { %467 = vst.msk [vmem:[#allocation2 + $0x120] sm:$0xff] %vm430_vm0, %v6238_v0  ;;  %468 = vst.msk [vmem:[#allocation2 + $0x128] sm:$0xff] %vm430_vm0, %v6238_v0 }
  0x91   : > { %469 = vst.msk [vmem:[#allocation2 + $0x130] sm:$0xff] %vm430_vm0, %v6238_v0  ;;  %470 = vst.msk [vmem:[#allocation2 + $0x138] sm:$0xff] %vm430_vm0, %v6238_v0 }
  0x92   : > { %471 = vst.msk [vmem:[#allocation2 + $0x140] sm:$0xff] %vm430_vm0, %v6238_v0  ;;  %472 = vst.msk [vmem:[#allocation2 + $0x148] sm:$0xff] %vm430_vm0, %v6238_v0 }
  0x93   : > { %473 = vst.msk [vmem:[#allocation2 + $0x150] sm:$0xff] %vm430_vm0, %v6238_v0  ;;  %474 = vst.msk [vmem:[#allocation2 + $0x158] sm:$0xff] %vm430_vm0, %v6238_v0 }
  0x94   : > { %475 = vst.msk [vmem:[#allocation2 + $0x160] sm:$0xff] %vm430_vm0, %v6238_v0  ;;  %476 = vst.msk [vmem:[#allocation2 + $0x168] sm:$0xff] %vm430_vm0, %v6238_v0 }
  0x95   : > { %477 = vst.msk [vmem:[#allocation2 + $0x170] sm:$0xff] %vm430_vm0, %v6238_v0  ;;  %478 = vst.msk [vmem:[#allocation2 + $0x178] sm:$0xff] %vm430_vm0, %v6238_v0 }
  0x96   : > { %479 = vst.msk [vmem:[#allocation2 + $0x180] sm:$0xff] %vm430_vm0, %v6238_v0  ;;  %480 = vst.msk [vmem:[#allocation2 + $0x188] sm:$0xff] %vm430_vm0, %v6238_v0 }
  0x97   : > { %481 = vst.msk [vmem:[#allocation2 + $0x190] sm:$0xff] %vm430_vm0, %v6238_v0  ;;  %482 = vst.msk [vmem:[#allocation2 + $0x198] sm:$0xff] %vm430_vm0, %v6238_v0 }
  0x98   : > { %483 = vst.msk [vmem:[#allocation2 + $0x1a0] sm:$0xff] %vm430_vm0, %v6238_v0  ;;  %484 = vst.msk [vmem:[#allocation2 + $0x1a8] sm:$0xff] %vm430_vm0, %v6238_v0 }
  0x99   : > { %485 = vst.msk [vmem:[#allocation2 + $0x1b0] sm:$0xff] %vm430_vm0, %v6238_v0  ;;  %486 = vst.msk [vmem:[#allocation2 + $0x1b8] sm:$0xff] %vm430_vm0, %v6238_v0 }
  0x9a   : > { %487 = vst.msk [vmem:[#allocation2 + $0x1c0] sm:$0xff] %vm430_vm0, %v6238_v0  ;;  %488 = vst.msk [vmem:[#allocation2 + $0x1c8] sm:$0xff] %vm430_vm0, %v6238_v0 }
  0x9b   : > { %489 = vst.msk [vmem:[#allocation2 + $0x1d0] sm:$0xff] %vm430_vm0, %v6238_v0  ;;  %490 = vst.msk [vmem:[#allocation2 + $0x1d8] sm:$0xff] %vm430_vm0, %v6238_v0 }
  0x9c   : > { %491 = vst.msk [vmem:[#allocation2 + $0x1e0] sm:$0xff] %vm430_vm0, %v6238_v0  ;;  %492 = vst.msk [vmem:[#allocation2 + $0x1e8] sm:$0xff] %vm430_vm0, %v6238_v0 }
  0x9d   : > { %493 = vst.msk [vmem:[#allocation2 + $0x1f0] sm:$0xff] %vm430_vm0, %v6238_v0  ;;  %494 = vst.msk [vmem:[#allocation2 + $0x1f8] sm:$0xff] %vm430_vm0, %v6238_v0 }
  0x9e PF: > { %v5871_v1 = vld [vmem:[%s6480_s27 + $0x38] sm:$0xff]   ;;  %v6239_v2 = vmov 0   ;;  %v5873_v4 = vld [vmem:[%s6480_s27 + $0x30] sm:$0xff]   ;;  %v5875_v6 = vld [vmem:[%s6480_s27 + $0x28] sm:$0xff]   ;;  %vm2675_vm1 = vcmask 523264   ;;  %p5478_p12 = scmp.ne.s32.totalorder %s6211_s30, 1 }
  0x9f   : > { %1455 = vmatprep.subr.bf16.mxu0 %v6239_v2  ;;  %1744 = vmatprep.subr.bf16.mxu1 %v6239_v2  ;;  %v5872_v3 = vld [vmem:[%s6480_s27 + $0xb8] sm:$0xff]   ;;  %v5874_v5 = vld [vmem:[%s6480_s27 + $0xb0] sm:$0xff]   ;;  %v5876_v7 = vld [vmem:[%s6480_s27 + $0xa8] sm:$0xff]  }
  0xa0   : > { %1456 = vmatpush1.bf16.msra.mxu0 %v5871_v1  ;;  %1745 = vmatpush1.bf16.msra.mxu1 %v5872_v3  ;;  %v5877_v8 = vld [vmem:[%s6480_s27 + $0x20] sm:$0xff]   ;;  %v5879_v10 = vld [vmem:[%s6480_s27 + $0x18] sm:$0xff]   ;;  %v5881_v12 = vld [vmem:[%s6480_s27 + $0x10] sm:$0xff]  }
  0xa1   : > { %1457 = vmatprep.subr.bf16.mxu0 %v6239_v2  ;;  %1746 = vmatprep.subr.bf16.mxu1 %v6239_v2  ;;  %v5878_v9 = vld [vmem:[%s6480_s27 + $0xa0] sm:$0xff]   ;;  %v5880_v11 = vld [vmem:[%s6480_s27 + $0x98] sm:$0xff]   ;;  %v5882_v13 = vld [vmem:[%s6480_s27 + $0x90] sm:$0xff]  }
  0xa2   : > { %v5883_v14 = vld [vmem:[%s6480_s27 + $0x8] sm:$0xff]   ;;  %v5885_v16 = vld [vmem:[%s6480_s27] sm:$0xff]   ;;  %v5887_v18 = vld [vmem:[%s6480_s27 + $0x78] sm:$0xff]  }
  0xa3   : > { %v5884_v15 = vld [vmem:[%s6480_s27 + $0x88] sm:$0xff]   ;;  %v5886_v17 = vld [vmem:[%s6480_s27 + $0x80] sm:$0xff]   ;;  %v5888_v19 = vld [vmem:[%s6480_s27 + $0xf8] sm:$0xff]  }
  0xa4   : > { %1458 = vmatpush1.bf16.msra.mxu0 %v5873_v4  ;;  %1747 = vmatpush1.bf16.msra.mxu1 %v5874_v5  ;;  %v6660_v20 = vld [vmem:[%s6458_s22 + $0x8] sm:$0xff]  ;;  %v6663_v21 = vld [vmem:[%s6458_s22 + $0x18] sm:$0xff]  ;;  %v5889_v24 = vld [vmem:[%s6480_s27 + $0x70] sm:$0xff]  }
  0xa5   : > { %1459 = vmatprep.subr.bf16.mxu0 %v6239_v2  ;;  %1748 = vmatprep.subr.bf16.mxu1 %v6239_v2  ;;  %v624_v22 = vunpack.c.l.s8.bf16 %v6660_v20  ;;  %v626_v23 = vunpack.c.l.s8.bf16 %v6663_v21  ;;  %v5890_v25 = vld [vmem:[%s6480_s27 + $0xf0] sm:$0xff]   ;;  %v5891_v26 = vld [vmem:[%s6480_s27 + $0x68] sm:$0xff]   ;;  %v5893_v28 = vld [vmem:[%s6480_s27 + $0x60] sm:$0xff]   ;;  %v632_v43 = vunpack.c.h.s8.bf16 %v6660_v20  ;;  %v634_v45 = vunpack.c.h.s8.bf16 %v6663_v21 }
  0xa6   : > { %v5892_v27 = vld [vmem:[%s6480_s27 + $0xe8] sm:$0xff]   ;;  %v5894_v29 = vld [vmem:[%s6480_s27 + $0xe0] sm:$0xff]   ;;  %v5895_v30 = vld [vmem:[%s6480_s27 + $0x58] sm:$0xff]  }
  0xa7   : > { %1487 = vmatprep.mubr.bf16.mxu0 %v624_v22  ;;  %1776 = vmatprep.mubr.bf16.mxu1 %v626_v23  ;;  %v5896_v31 = vld [vmem:[%s6480_s27 + $0xd8] sm:$0xff]   ;;  %v5897_v32 = vld [vmem:[%s6480_s27 + $0x50] sm:$0xff]   ;;  %v5899_v34 = vld [vmem:[%s6480_s27 + $0x48] sm:$0xff]  }
  0xa8   : > { %1460 = vmatpush1.bf16.msra.mxu0 %v5875_v6  ;;  %1749 = vmatpush1.bf16.msra.mxu1 %v5876_v7  ;;  %v5898_v33 = vld [vmem:[%s6480_s27 + $0xd0] sm:$0xff]   ;;  %v5900_v35 = vld [vmem:[%s6480_s27 + $0xc8] sm:$0xff]   ;;  %v5901_v36 = vld [vmem:[%s6480_s27 + $0x40] sm:$0xff]  }
  0xa9   : > { %1461 = vmatprep.subr.bf16.mxu0 %v6239_v2  ;;  %1750 = vmatprep.subr.bf16.mxu1 %v6239_v2  ;;  %v495_v37 = vld [vmem:[%s6458_s22] sm:$0xff]  ;;  %v497_v39 = vld [vmem:[%s6458_s22 + $0x10] sm:$0xff]  ;;  %v5903_v40 = vld [vmem:[%s6480_s27 + $0x138] sm:$0xff]  }
  0xaa   : > { %v5902_v38 = vld [vmem:[%s6480_s27 + $0xc0] sm:$0xff]   ;;  %v623_v41 = vunpack.c.l.s8.bf16 %v495_v37  ;;  %v625_v42 = vunpack.c.l.s8.bf16 %v497_v39  ;;  %v5904_v44 = vld [vmem:[%s6480_s27 + $0x1b8] sm:$0xff]   ;;  %v504_v46 = vld [vmem:[%s6458_s22 + $0x48] sm:$0xff]  ;;  %v631_v50 = vunpack.c.h.s8.bf16 %v495_v37  ;;  %v633_v51 = vunpack.c.h.s8.bf16 %v497_v39 }
  0xab   : > { %v506_v47 = vld [vmem:[%s6458_s22 + $0x58] sm:$0xff]  ;;  %v5905_v48 = vld [vmem:[%s6480_s27 + $0x130] sm:$0xff]   ;;  %v640_v52 = vunpack.c.l.s8.bf16 %v504_v46  ;;  %v5907_v54 = vld [vmem:[%s6480_s27 + $0x128] sm:$0xff]   ;;  %v648_v62 = vunpack.c.h.s8.bf16 %v504_v46 }
  0xac   : > { %1462 = vmatpush1.bf16.msra.mxu0 %v5877_v8  ;;  %1751 = vmatpush1.bf16.msra.mxu1 %v5878_v9  ;;  %v5906_v49 = vld [vmem:[%s6480_s27 + $0x1b0] sm:$0xff]   ;;  %v642_v53 = vunpack.c.l.s8.bf16 %v506_v47  ;;  %v5908_v55 = vld [vmem:[%s6480_s27 + $0x1a8] sm:$0xff]   ;;  %v503_v56 = vld [vmem:[%s6458_s22 + $0x40] sm:$0xff]  ;;  %v650_v63 = vunpack.c.h.s8.bf16 %v506_v47 }
  0xad   : > { %1463 = vmatprep.subr.bf16.mxu0 %v6239_v2  ;;  %1752 = vmatprep.subr.bf16.mxu1 %v6239_v2  ;;  %v505_v57 = vld [vmem:[%s6458_s22 + $0x50] sm:$0xff]  ;;  %v5909_v58 = vld [vmem:[%s6480_s27 + $0x120] sm:$0xff]   ;;  %v639_v60 = vunpack.c.l.s8.bf16 %v503_v56  ;;  %v5911_v0 = vld [vmem:[%s6480_s27 + $0x118] sm:$0xff]   ;;  %v647_v7 = vunpack.c.h.s8.bf16 %v503_v56 }
  0xae   : > { %v5910_v59 = vld [vmem:[%s6480_s27 + $0x1a0] sm:$0xff]   ;;  %v641_v61 = vunpack.c.l.s8.bf16 %v505_v57  ;;  %v5912_v1 = vld [vmem:[%s6480_s27 + $0x198] sm:$0xff]   ;;  %v512_v3 = vld [vmem:[%s6458_s22 + $0x88] sm:$0xff]  ;;  %v649_v8 = vunpack.c.h.s8.bf16 %v505_v57 }
  0xaf   : > { %v5913_v4 = vld [vmem:[%s6480_s27 + $0x110] sm:$0xff]   ;;  %v514_v5 = vld [vmem:[%s6458_s22 + $0x98] sm:$0xff]  ;;  %v656_v9 = vunpack.c.l.s8.bf16 %v512_v3  ;;  %v520_v23 = vld [vmem:[%s6458_s22 + $0xc8] sm:$0xff] }
  0xb0   : > { %1464 = vmatpush1.bf16.msra.mxu0 %v5879_v10  ;;  %1753 = vmatpush1.bf16.msra.mxu1 %v5880_v11  ;;  %v5914_v6 = vld [vmem:[%s6480_s27 + $0x190] sm:$0xff]   ;;  %v658_v10 = vunpack.c.l.s8.bf16 %v514_v5  ;;  %v5915_v11 = vld [vmem:[%s6480_s27 + $0x108] sm:$0xff]   ;;  %v666_v20 = vunpack.c.h.s8.bf16 %v514_v5  ;;  %v5919_v21 = vld [vmem:[%s6480_s27 + $0x178] sm:$0xff]   ;;  %v680_v37 = vunpack.c.h.s8.bf16 %v520_v23 }
  0xb1   : > { %1465 = vmatprep.subr.bf16.mxu0 %v6239_v2  ;;  %1754 = vmatprep.subr.bf16.mxu1 %v6239_v2  ;;  %v5920_v22 = vld [vmem:[%s6480_s27 + $0x1f8] sm:$0xff]   ;;  %v5925_v39 = vld [vmem:[%s6480_s27 + $0x160] sm:$0xff]   ;;  %v5929_v5 = vld [vmem:[%s6480_s27 + $0x150] sm:$0xff]  }
  0xb2   : > { %v527_v47 = vld [vmem:[%s6458_s22 + $0x100] sm:$0xff]  ;;  %v5928_v56 = vld [vmem:[%s6480_s27 + $0x1d8] sm:$0xff]  }
  0xb3   : > { %v695_v57 = vunpack.c.h.s8.bf16 %v527_v47 }
  0xb4   : > { %1466 = vmatpush1.bf16.msra.mxu0 %v5881_v12  ;;  %1755 = vmatpush1.bf16.msra.mxu1 %v5882_v13  ;;  %v5916_v12 = vld [vmem:[%s6480_s27 + $0x188] sm:$0xff]   ;;  %v511_v13 = vld [vmem:[%s6458_s22 + $0x80] sm:$0xff] }
  0xb5   : > { %1467 = vmatprep.subr.bf16.mxu0 %v6239_v2  ;;  %1756 = vmatprep.subr.bf16.mxu1 %v6239_v2 }
  0xb8   : > { %1468 = vmatpush1.bf16.msra.mxu0 %v5883_v14  ;;  %1757 = vmatpush1.bf16.msra.mxu1 %v5884_v15  ;;  %v513_v14 = vld [vmem:[%s6458_s22 + $0x90] sm:$0xff]  ;;  %v5917_v15 = vld [vmem:[%s6480_s27 + $0x100] sm:$0xff]  }
  0xb9   : > { %1469 = vmatprep.subr.bf16.mxu0 %v6239_v2  ;;  %1758 = vmatprep.subr.bf16.mxu1 %v6239_v2 }
  0xbc   : > { %1470 = vmatpush1.bf16.msra.mxu0 %v5885_v16  ;;  %1759 = vmatpush1.bf16.msra.mxu1 %v5886_v17  ;;  %v5918_v16 = vld [vmem:[%s6480_s27 + $0x180] sm:$0xff]   ;;  %v655_v17 = vunpack.c.l.s8.bf16 %v511_v13 }
  0xbd   : > { %1471 = vmatprep.subr.bf16.mxu0 %v6239_v2  ;;  %1760 = vmatprep.subr.bf16.mxu1 %v6239_v2 }
  0xc0   : > { %1472 = vmatpush2.bf16.msra.mxu0 %v5887_v18  ;;  %1761 = vmatpush2.bf16.msra.mxu1 %v5888_v19  ;;  %v657_v18 = vunpack.c.l.s8.bf16 %v513_v14  ;;  %v664_v19 = vunpack.c.h.s8.bf16 %v512_v3 }
  0xc1   : > { %1473 = vmatprep.subr.bf16.mxu0 %v6239_v2  ;;  %1762 = vmatprep.subr.bf16.mxu1 %v6239_v2 }
  0xc4   : > { %1474 = vmatpush2.bf16.msra.mxu0 %v5889_v24  ;;  %1763 = vmatpush2.bf16.msra.mxu1 %v5890_v25  ;;  %v5921_v24 = vld [vmem:[%s6480_s27 + $0x170] sm:$0xff]   ;;  %v522_v25 = vld [vmem:[%s6458_s22 + $0xd8] sm:$0xff] }
  0xc5   : > { %1475 = vmatprep.subr.bf16.mxu0 %v6239_v2  ;;  %1764 = vmatprep.subr.bf16.mxu1 %v6239_v2 }
  0xc8   : > { %1476 = vmatpush2.bf16.msra.mxu0 %v5891_v26  ;;  %1765 = vmatpush2.bf16.msra.mxu1 %v5892_v27  ;;  %v5922_v26 = vld [vmem:[%s6480_s27 + $0x1f0] sm:$0xff]   ;;  %v663_v27 = vunpack.c.h.s8.bf16 %v511_v13 }
  0xc9   : > { %1477 = vmatprep.subr.bf16.mxu0 %v6239_v2  ;;  %1766 = vmatprep.subr.bf16.mxu1 %v6239_v2  ;;  %v545_v13 = vld [vmem:[%s6458_s22 + $0x190] sm:$0xff] }
  0xcc   : > { %1478 = vmatpush2.bf16.msra.mxu0 %v5893_v28  ;;  %1767 = vmatpush2.bf16.msra.mxu1 %v5894_v29  ;;  %v665_v28 = vunpack.c.h.s8.bf16 %v513_v14  ;;  %v672_v29 = vunpack.c.l.s8.bf16 %v520_v23  ;;  %v729_v23 = vunpack.c.h.s8.bf16 %v545_v13 }
  0xcd   : > { %1479 = vmatprep.subr.bf16.mxu0 %v6239_v2  ;;  %1768 = vmatprep.subr.bf16.mxu1 %v6239_v2 }
  0xd0   : > { %1480 = vmatpush2.bf16.msra.mxu0 %v5895_v30  ;;  %1769 = vmatpush2.bf16.msra.mxu1 %v5896_v31  ;;  %v674_v30 = vunpack.c.l.s8.bf16 %v522_v25  ;;  %v5923_v31 = vld [vmem:[%s6480_s27 + $0x168] sm:$0xff]  }
  0xd1   : > { %1481 = vmatprep.subr.bf16.mxu0 %v6239_v2  ;;  %1770 = vmatprep.subr.bf16.mxu1 %v6239_v2 }
  0xd4   : > { %1482 = vmatpush2.bf16.msra.mxu0 %v5897_v32  ;;  %1771 = vmatpush2.bf16.msra.mxu1 %v5898_v33  ;;  %v5924_v32 = vld [vmem:[%s6480_s27 + $0x1e8] sm:$0xff]   ;;  %v519_v33 = vld [vmem:[%s6458_s22 + $0xc0] sm:$0xff] }
  0xd5   : > { %1483 = vmatprep.subr.bf16.mxu0 %v6239_v2  ;;  %1772 = vmatprep.subr.bf16.mxu1 %v6239_v2 }
  0xd8   : > { %1484 = vmatpush2.bf16.msra.mxu0 %v5899_v34  ;;  %1773 = vmatpush2.bf16.msra.mxu1 %v5900_v35  ;;  %v521_v34 = vld [vmem:[%s6458_s22 + $0xd0] sm:$0xff]  ;;  %v671_v35 = vunpack.c.l.s8.bf16 %v519_v33 }
  0xd9   : > { %1485 = vmatprep.subr.bf16.mxu0 %v6239_v2  ;;  %1774 = vmatprep.subr.bf16.mxu1 %v6239_v2 }
  0xdc   : > { %1486 = vmatpush2.bf16.msra.mxu0 %v5901_v36  ;;  %1775 = vmatpush2.bf16.msra.mxu1 %v5902_v38  ;;  %v673_v36 = vunpack.c.l.s8.bf16 %v521_v34  ;;  %v682_v38 = vunpack.c.h.s8.bf16 %v522_v25 }
  0xdd   : > { %2033 = vmatprep.subr.bf16.mxu0 %v6239_v2  ;;  %2322 = vmatprep.subr.bf16.mxu1 %v6239_v2 }
  0xdf   : > { %1488 = vmatmul.mubr.bf16.vlgmr.msra.gmra.mxu0 %v623_v41  ;;  %1777 = vmatmul.mubr.bf16.vlgmr.msra.gmra.mxu1 %v625_v42  ;;  %v528_v41 = vld [vmem:[%s6458_s22 + $0x108] sm:$0xff]  ;;  %v530_v42 = vld [vmem:[%s6458_s22 + $0x118] sm:$0xff] }
  0xe0   : > { %2034 = vmatpush1.bf16.msra.mxu0 %v5903_v40  ;;  %2323 = vmatpush1.bf16.msra.mxu1 %v5904_v44  ;;  %v5926_v40 = vld [vmem:[%s6480_s27 + $0x1e0] sm:$0xff]   ;;  %v681_v44 = vunpack.c.h.s8.bf16 %v521_v34  ;;  %v690_v46 = vunpack.c.l.s8.bf16 %v530_v42 }
  0xe1   : > { %1495 = vmatprep.mubr.bf16.mxu0 %v632_v43  ;;  %1784 = vmatprep.mubr.bf16.mxu1 %v634_v45  ;;  %v679_v43 = vunpack.c.h.s8.bf16 %v519_v33  ;;  %v688_v45 = vunpack.c.l.s8.bf16 %v528_v41  ;;  %v562_v33 = vld [vmem:[%s6458_s22 + $0x218] sm:$0xff]  ;;  %v5934_v34 = vld [vmem:[%s6480_s27 + $0x1c0] sm:$0xff]  }
  0xe2   : > { %2035 = vmatprep.subr.bf16.mxu0 %v6239_v2  ;;  %2324 = vmatprep.subr.bf16.mxu1 %v6239_v2 }
  0xe4   : > { %2036 = vmatpush1.bf16.msra.mxu0 %v5905_v48  ;;  %2325 = vmatpush1.bf16.msra.mxu1 %v5906_v49  ;;  %v529_v48 = vld [vmem:[%s6458_s22 + $0x110] sm:$0xff]  ;;  %v687_v49 = vunpack.c.l.s8.bf16 %v527_v47 }
  0xe5   : > { %2037 = vmatprep.subr.bf16.mxu0 %v6239_v2  ;;  %2326 = vmatprep.subr.bf16.mxu1 %v6239_v2 }
  0xe7   : > { %1496 = vmatmul.mubr.bf16.gmra.mxu0 %v631_v50  ;;  %1785 = vmatmul.mubr.bf16.gmra.mxu1 %v633_v51  ;;  %v689_v50 = vunpack.c.l.s8.bf16 %v529_v48  ;;  %v696_v51 = vunpack.c.h.s8.bf16 %v528_v41 }
  0xe8   : > { %1503 = vmatprep.mubr.bf16.mxu0 %v640_v52  ;;  %1792 = vmatprep.mubr.bf16.mxu1 %v642_v53  ;;  %v698_v52 = vunpack.c.h.s8.bf16 %v530_v42  ;;  %v536_v53 = vld [vmem:[%s6458_s22 + $0x148] sm:$0xff] }
  0xe9   : > { %2038 = vmatpush1.bf16.msra.mxu0 %v5907_v54  ;;  %2327 = vmatpush1.bf16.msra.mxu1 %v5908_v55  ;;  %v5927_v54 = vld [vmem:[%s6480_s27 + $0x158] sm:$0xff]  }
  0xea   : > { %2039 = vmatprep.subr.bf16.mxu0 %v6239_v2  ;;  %2328 = vmatprep.subr.bf16.mxu1 %v6239_v2  ;;  %v538_v55 = vld [vmem:[%s6458_s22 + $0x158] sm:$0xff] }
  0xeb   : > { %v714_v3 = vunpack.c.h.s8.bf16 %v538_v55 }
  0xed   : > { %2040 = vmatpush1.bf16.msra.mxu0 %v5909_v58  ;;  %2329 = vmatpush1.bf16.msra.mxu1 %v5910_v59  ;;  %v697_v58 = vunpack.c.h.s8.bf16 %v529_v48  ;;  %v704_v59 = vunpack.c.l.s8.bf16 %v536_v53 }
  0xee   : > { %2041 = vmatprep.subr.bf16.mxu0 %v6239_v2  ;;  %2330 = vmatprep.subr.bf16.mxu1 %v6239_v2 }
  0xef   : > { %1504 = vmatmul.mubr.bf16.gmra.mxu0 %v639_v60  ;;  %1793 = vmatmul.mubr.bf16.gmra.mxu1 %v641_v61  ;;  %v706_v60 = vunpack.c.l.s8.bf16 %v538_v55  ;;  %v535_v61 = vld [vmem:[%s6458_s22 + $0x140] sm:$0xff] }
  0xf0   : > { %1511 = vmatprep.mubr.bf16.mxu0 %v648_v62  ;;  %1800 = vmatprep.mubr.bf16.mxu1 %v650_v63  ;;  %v537_v62 = vld [vmem:[%s6458_s22 + $0x150] sm:$0xff]  ;;  %v703_v63 = vunpack.c.l.s8.bf16 %v535_v61 }
  0xf1   : > { %2042 = vmatpush1.bf16.msra.mxu0 %v5911_v0  ;;  %2331 = vmatpush1.bf16.msra.mxu1 %v5912_v1  ;;  %v705_v0 = vunpack.c.l.s8.bf16 %v537_v62  ;;  %v712_v1 = vunpack.c.h.s8.bf16 %v536_v53 }
  0xf2   : > { %2043 = vmatprep.subr.bf16.mxu0 %v6239_v2  ;;  %2332 = vmatprep.subr.bf16.mxu1 %v6239_v2 }
  0xf5   : > { %2044 = vmatpush1.bf16.msra.mxu0 %v5913_v4  ;;  %2333 = vmatpush1.bf16.msra.mxu1 %v5914_v6  ;;  %v544_v4 = vld [vmem:[%s6458_s22 + $0x188] sm:$0xff]  ;;  %v546_v6 = vld [vmem:[%s6458_s22 + $0x198] sm:$0xff] }
  0xf6   : > { %2045 = vmatprep.subr.bf16.mxu0 %v6239_v2  ;;  %2334 = vmatprep.subr.bf16.mxu1 %v6239_v2 }
  0xf7   : > { %1512 = vmatmul.mubr.bf16.gmra.mxu0 %v647_v7  ;;  %1801 = vmatmul.mubr.bf16.gmra.mxu1 %v649_v8  ;;  %v5930_v7 = vld [vmem:[%s6480_s27 + $0x1d0] sm:$0xff]   ;;  %v711_v8 = vunpack.c.h.s8.bf16 %v535_v61 }
  0xf8   : > { %1519 = vmatprep.mubr.bf16.mxu0 %v656_v9  ;;  %1808 = vmatprep.mubr.bf16.mxu1 %v658_v10  ;;  %v713_v9 = vunpack.c.h.s8.bf16 %v537_v62  ;;  %v720_v10 = vunpack.c.l.s8.bf16 %v544_v4 }
  0xf9   : > { %2046 = vmatpush1.bf16.msra.mxu0 %v5915_v11  ;;  %2335 = vmatpush1.bf16.msra.mxu1 %v5916_v12  ;;  %v722_v11 = vunpack.c.l.s8.bf16 %v546_v6  ;;  %v543_v12 = vld [vmem:[%s6458_s22 + $0x180] sm:$0xff] }
  0xfa   : > { %2047 = vmatprep.subr.bf16.mxu0 %v6239_v2  ;;  %2336 = vmatprep.subr.bf16.mxu1 %v6239_v2  ;;  %v719_v14 = vunpack.c.l.s8.bf16 %v543_v12 }
  0xfd   : > { %2048 = vmatpush1.bf16.msra.mxu0 %v5917_v15  ;;  %2337 = vmatpush1.bf16.msra.mxu1 %v5918_v16  ;;  %v721_v15 = vunpack.c.l.s8.bf16 %v545_v13  ;;  %v728_v16 = vunpack.c.h.s8.bf16 %v544_v4  ;;  %v585_v13 = vld [vmem:[%s6458_s22 + $0x2d0] sm:$0xff] }
  0xfe   : > { %2049 = vmatprep.subr.bf16.mxu0 %v6239_v2  ;;  %2338 = vmatprep.subr.bf16.mxu1 %v6239_v2 }
  0xff   : > { %1520 = vmatmul.mubr.bf16.gmra.mxu0 %v655_v17  ;;  %1809 = vmatmul.mubr.bf16.gmra.mxu1 %v657_v18  ;;  %v730_v17 = vunpack.c.h.s8.bf16 %v546_v6  ;;  %v552_v18 = vld [vmem:[%s6458_s22 + $0x1c8] sm:$0xff] }
 0x100   : > { %1527 = vmatprep.mubr.bf16.mxu0 %v664_v19  ;;  %1816 = vmatprep.mubr.bf16.mxu1 %v666_v20  ;;  %v5931_v19 = vld [vmem:[%s6480_s27 + $0x148] sm:$0xff]   ;;  %v554_v20 = vld [vmem:[%s6458_s22 + $0x1d8] sm:$0xff] }
 0x101   : > { %2050 = vmatpush2.bf16.msra.mxu0 %v5919_v21  ;;  %2339 = vmatpush2.bf16.msra.mxu1 %v5920_v22  ;;  %v5932_v21 = vld [vmem:[%s6480_s27 + $0x1c8] sm:$0xff]   ;;  %v727_v22 = vunpack.c.h.s8.bf16 %v543_v12  ;;  %v738_v25 = vunpack.c.l.s8.bf16 %v554_v20  ;;  %v583_v12 = vld [vmem:[%s6458_s22 + $0x2c0] sm:$0xff] }
 0x102   : > { %2051 = vmatprep.subr.bf16.mxu0 %v6239_v2  ;;  %2340 = vmatprep.subr.bf16.mxu1 %v6239_v2  ;;  %v584_v6 = vld [vmem:[%s6458_s22 + $0x2c8] sm:$0xff] }
 0x105   : > { %2052 = vmatpush2.bf16.msra.mxu0 %v5921_v24  ;;  %2341 = vmatpush2.bf16.msra.mxu1 %v5922_v26  ;;  %v736_v24 = vunpack.c.l.s8.bf16 %v552_v18  ;;  %v551_v26 = vld [vmem:[%s6458_s22 + $0x1c0] sm:$0xff] }
 0x106   : > { %2053 = vmatprep.subr.bf16.mxu0 %v6239_v2  ;;  %2342 = vmatprep.subr.bf16.mxu1 %v6239_v2 }
 0x107   : > { %1528 = vmatmul.mubr.bf16.gmra.mxu0 %v663_v27  ;;  %1817 = vmatmul.mubr.bf16.gmra.mxu1 %v665_v28  ;;  %v553_v27 = vld [vmem:[%s6458_s22 + $0x1d0] sm:$0xff]  ;;  %v735_v28 = vunpack.c.l.s8.bf16 %v551_v26 }
 0x108   : > { %1535 = vmatprep.mubr.bf16.mxu0 %v672_v29  ;;  %1824 = vmatprep.mubr.bf16.mxu1 %v674_v30  ;;  %v737_v29 = vunpack.c.l.s8.bf16 %v553_v27  ;;  %v744_v30 = vunpack.c.h.s8.bf16 %v552_v18  ;;  %v592_v18 = vld [vmem:[%s6458_s22 + $0x308] sm:$0xff] }
 0x109   : > { %2054 = vmatpush2.bf16.msra.mxu0 %v5923_v31  ;;  %2343 = vmatpush2.bf16.msra.mxu1 %v5924_v32  ;;  %v746_v31 = vunpack.c.h.s8.bf16 %v554_v20  ;;  %v5933_v32 = vld [vmem:[%s6480_s27 + $0x140] sm:$0xff]   ;;  %v807_v20 = vunpack.c.h.s8.bf16 %v583_v12 }
 0x10a   : > { %2055 = vmatprep.subr.bf16.mxu0 %v6239_v2  ;;  %2344 = vmatprep.subr.bf16.mxu1 %v6239_v2 }
 0x10d   : > { %2056 = vmatpush2.bf16.msra.mxu0 %v5925_v39  ;;  %2345 = vmatpush2.bf16.msra.mxu1 %v5926_v40  ;;  %v559_v39 = vld [vmem:[%s6458_s22 + $0x200] sm:$0xff]  ;;  %v561_v40 = vld [vmem:[%s6458_s22 + $0x210] sm:$0xff] }
 0x10e   : > { %2057 = vmatprep.subr.bf16.mxu0 %v6239_v2  ;;  %2346 = vmatprep.subr.bf16.mxu1 %v6239_v2  ;;  %v751_v41 = vunpack.c.l.s8.bf16 %v559_v39  ;;  %v753_v42 = vunpack.c.l.s8.bf16 %v561_v40  ;;  %v759_v47 = vunpack.c.h.s8.bf16 %v559_v39  ;;  %v761_v48 = vunpack.c.h.s8.bf16 %v561_v40 }
 0x10f   : > { %1536 = vmatmul.mubr.bf16.gmra.mxu0 %v671_v35  ;;  %1825 = vmatmul.mubr.bf16.gmra.mxu1 %v673_v36  ;;  %v743_v35 = vunpack.c.h.s8.bf16 %v551_v26  ;;  %v745_v36 = vunpack.c.h.s8.bf16 %v553_v27 }
 0x110   : > { %1543 = vmatprep.mubr.bf16.mxu0 %v680_v37  ;;  %1832 = vmatprep.mubr.bf16.mxu1 %v682_v38  ;;  %v754_v38 = vunpack.c.l.s8.bf16 %v562_v33 }
 0x111   : > { %2058 = vmatpush2.bf16.msra.mxu0 %v5927_v54  ;;  %2347 = vmatpush2.bf16.msra.mxu1 %v5928_v56 }
 0x112   : > { %2059 = vmatprep.subr.bf16.mxu0 %v6239_v2  ;;  %2348 = vmatprep.subr.bf16.mxu1 %v6239_v2 }
 0x115   : > { %2060 = vmatpush2.bf16.msra.mxu0 %v5929_v5  ;;  %2349 = vmatpush2.bf16.msra.mxu1 %v5930_v7  ;;  %v586_v7 = vld [vmem:[%s6458_s22 + $0x2d8] sm:$0xff] }
 0x116   : > { %2061 = vmatprep.subr.bf16.mxu0 %v6239_v2  ;;  %2350 = vmatprep.subr.bf16.mxu1 %v6239_v2 }
 0x117   : > { %1544 = vmatmul.mubr.bf16.gmra.mxu0 %v679_v43  ;;  %1833 = vmatmul.mubr.bf16.gmra.mxu1 %v681_v44  ;;  %v762_v44 = vunpack.c.h.s8.bf16 %v562_v33  ;;  %v600_v33 = vld [vmem:[%s6458_s22 + $0x348] sm:$0xff] }
 0x118   : > { %1551 = vmatprep.mubr.bf16.mxu0 %v688_v45  ;;  %1840 = vmatprep.mubr.bf16.mxu1 %v690_v46  ;;  %v568_v45 = vld [vmem:[%s6458_s22 + $0x248] sm:$0xff]  ;;  %v570_v46 = vld [vmem:[%s6458_s22 + $0x258] sm:$0xff]  ;;  %v832_v40 = vunpack.c.l.s8.bf16 %v600_v33 }
 0x119   : > { %2062 = vmatpush2.bf16.msra.mxu0 %v5931_v19  ;;  %2351 = vmatpush2.bf16.msra.mxu1 %v5932_v21  ;;  %v776_v55 = vunpack.c.h.s8.bf16 %v568_v45  ;;  %v778_v56 = vunpack.c.h.s8.bf16 %v570_v46  ;;  %v594_v19 = vld [vmem:[%s6458_s22 + $0x318] sm:$0xff]  ;;  %v809_v21 = vunpack.c.h.s8.bf16 %v585_v13 }
 0x11a   : > { %2063 = vmatprep.subr.bf16.mxu0 %v6239_v2  ;;  %2352 = vmatprep.subr.bf16.mxu1 %v6239_v2  ;;  %v560_v2 = vld [vmem:[%s6458_s22 + $0x208] sm:$0xff] }
 0x11b   : > { %v752_v37 = vunpack.c.l.s8.bf16 %v560_v2  ;;  %v760_v43 = vunpack.c.h.s8.bf16 %v560_v2 }
 0x11d   : > { %2064 = vmatpush2.bf16.msra.mxu0 %v5933_v32  ;;  %2353 = vmatpush2.bf16.msra.mxu1 %v5934_v34 }
 0x11f   : > { %1552 = vmatmul.mubr.bf16.gmra.mxu0 %v687_v49  ;;  %1841 = vmatmul.mubr.bf16.gmra.mxu1 %v689_v50  ;;  %v768_v49 = vunpack.c.l.s8.bf16 %v568_v45  ;;  %v770_v50 = vunpack.c.l.s8.bf16 %v570_v46 }
 0x120   : > { %1559 = vmatprep.mubr.bf16.mxu0 %v696_v51  ;;  %1848 = vmatprep.mubr.bf16.mxu1 %v698_v52  ;;  %v567_v51 = vld [vmem:[%s6458_s22 + $0x240] sm:$0xff]  ;;  %v569_v52 = vld [vmem:[%s6458_s22 + $0x250] sm:$0xff] }
 0x121   : > { %v767_v53 = vunpack.c.l.s8.bf16 %v567_v51  ;;  %v769_v54 = vunpack.c.l.s8.bf16 %v569_v52 }
 0x127   : > { %1560 = vmatmul.mubr.bf16.gmra.mxu0 %v695_v57  ;;  %1849 = vmatmul.mubr.bf16.gmra.mxu1 %v697_v58  ;;  %v576_v57 = vld [vmem:[%s6458_s22 + $0x288] sm:$0xff]  ;;  %v578_v58 = vld [vmem:[%s6458_s22 + $0x298] sm:$0xff] }
 0x128   : > { %1567 = vmatprep.mubr.bf16.mxu0 %v704_v59  ;;  %1856 = vmatprep.mubr.bf16.mxu1 %v706_v60  ;;  %v775_v59 = vunpack.c.h.s8.bf16 %v567_v51  ;;  %v777_v60 = vunpack.c.h.s8.bf16 %v569_v52  ;;  %v784_v61 = vunpack.c.l.s8.bf16 %v576_v57  ;;  %v786_v62 = vunpack.c.l.s8.bf16 %v578_v58 }
 0x129   : > { %v792_v4 = vunpack.c.h.s8.bf16 %v576_v57  ;;  %v794_v5 = vunpack.c.h.s8.bf16 %v578_v58 }
 0x12f   : > { %1568 = vmatmul.mubr.bf16.gmra.mxu0 %v703_v63  ;;  %1857 = vmatmul.mubr.bf16.gmra.mxu1 %v705_v0  ;;  %v575_v63 = vld [vmem:[%s6458_s22 + $0x280] sm:$0xff]  ;;  %v577_v0 = vld [vmem:[%s6458_s22 + $0x290] sm:$0xff] }
 0x130   : > { %1575 = vmatprep.mubr.bf16.mxu0 %v712_v1  ;;  %1864 = vmatprep.mubr.bf16.mxu1 %v714_v3  ;;  %v783_v1 = vunpack.c.l.s8.bf16 %v575_v63  ;;  %v785_v3 = vunpack.c.l.s8.bf16 %v577_v0 }
 0x137   : > { %1576 = vmatmul.mubr.bf16.gmra.mxu0 %v711_v8  ;;  %1865 = vmatmul.mubr.bf16.gmra.mxu1 %v713_v9  ;;  %v791_v8 = vunpack.c.h.s8.bf16 %v575_v63  ;;  %v793_v9 = vunpack.c.h.s8.bf16 %v577_v0 }
 0x138   : > { %1583 = vmatprep.mubr.bf16.mxu0 %v720_v10  ;;  %1872 = vmatprep.mubr.bf16.mxu1 %v722_v11  ;;  %v800_v10 = vunpack.c.l.s8.bf16 %v584_v6  ;;  %v802_v11 = vunpack.c.l.s8.bf16 %v586_v7 }
 0x13f   : > { %1584 = vmatmul.mubr.bf16.gmra.mxu0 %v719_v14  ;;  %1873 = vmatmul.mubr.bf16.gmra.mxu1 %v721_v15  ;;  %v799_v14 = vunpack.c.l.s8.bf16 %v583_v12  ;;  %v801_v15 = vunpack.c.l.s8.bf16 %v585_v13 }
 0x140   : > { %1591 = vmatprep.mubr.bf16.mxu0 %v728_v16  ;;  %1880 = vmatprep.mubr.bf16.mxu1 %v730_v17  ;;  %v808_v16 = vunpack.c.h.s8.bf16 %v584_v6  ;;  %v810_v17 = vunpack.c.h.s8.bf16 %v586_v7 }
 0x147   : > { %1592 = vmatmul.mubr.bf16.gmra.mxu0 %v727_v22  ;;  %1881 = vmatmul.mubr.bf16.gmra.mxu1 %v729_v23  ;;  %v816_v22 = vunpack.c.l.s8.bf16 %v592_v18  ;;  %v818_v23 = vunpack.c.l.s8.bf16 %v594_v19 }
 0x148   : > { %1599 = vmatprep.mubr.bf16.mxu0 %v736_v24  ;;  %1888 = vmatprep.mubr.bf16.mxu1 %v738_v25  ;;  %v591_v24 = vld [vmem:[%s6458_s22 + $0x300] sm:$0xff]  ;;  %v593_v25 = vld [vmem:[%s6458_s22 + $0x310] sm:$0xff] }
 0x149   : > { %v815_v26 = vunpack.c.l.s8.bf16 %v591_v24  ;;  %v817_v27 = vunpack.c.l.s8.bf16 %v593_v25  ;;  %v825_v39 = vunpack.c.h.s8.bf16 %v593_v25 }
 0x14f   : > { %1600 = vmatmul.mubr.bf16.gmra.mxu0 %v735_v28  ;;  %1889 = vmatmul.mubr.bf16.gmra.mxu1 %v737_v29  ;;  %v824_v28 = vunpack.c.h.s8.bf16 %v592_v18  ;;  %v826_v29 = vunpack.c.h.s8.bf16 %v594_v19  ;;  %v609_v19 = vld [vmem:[%s6458_s22 + $0x390] sm:$0xff] }
 0x150   : > { %1607 = vmatprep.mubr.bf16.mxu0 %v744_v30  ;;  %1896 = vmatprep.mubr.bf16.mxu1 %v746_v31 }
 0x157   : > { %1608 = vmatmul.mubr.bf16.gmra.mxu0 %v743_v35  ;;  %1897 = vmatmul.mubr.bf16.gmra.mxu1 %v745_v36  ;;  %v602_v35 = vld [vmem:[%s6458_s22 + $0x358] sm:$0xff] }
 0x158   : > { %1615 = vmatprep.mubr.bf16.mxu0 %v752_v37  ;;  %1904 = vmatprep.mubr.bf16.mxu1 %v754_v38  ;;  %v823_v37 = vunpack.c.h.s8.bf16 %v591_v24  ;;  %v849_v24 = vunpack.c.l.s8.bf16 %v609_v19 }
 0x15f   : > { %1616 = vmatmul.mubr.bf16.gmra.mxu0 %v751_v41  ;;  %1905 = vmatmul.mubr.bf16.gmra.mxu1 %v753_v42 }
 0x160   : > { %1623 = vmatprep.mubr.bf16.mxu0 %v760_v43  ;;  %1912 = vmatprep.mubr.bf16.mxu1 %v762_v44  ;;  %v834_v43 = vunpack.c.l.s8.bf16 %v602_v35 }
 0x167   : > { %1624 = vmatmul.mubr.bf16.gmra.mxu0 %v759_v47  ;;  %1913 = vmatmul.mubr.bf16.gmra.mxu1 %v761_v48  ;;  %v599_v47 = vld [vmem:[%s6458_s22 + $0x340] sm:$0xff] }
 0x168   : > { %1631 = vmatprep.mubr.bf16.mxu0 %v768_v49  ;;  %1920 = vmatprep.mubr.bf16.mxu1 %v770_v50  ;;  %v601_v50 = vld [vmem:[%s6458_s22 + $0x350] sm:$0xff]  ;;  %v839_v6 = vunpack.c.h.s8.bf16 %v599_v47 }
 0x16f   : > { %1632 = vmatmul.mubr.bf16.gmra.mxu0 %v767_v53  ;;  %1921 = vmatmul.mubr.bf16.gmra.mxu1 %v769_v54  ;;  %v831_v53 = vunpack.c.l.s8.bf16 %v599_v47 }
 0x170   : > { %1639 = vmatprep.mubr.bf16.mxu0 %v776_v55  ;;  %1928 = vmatprep.mubr.bf16.mxu1 %v778_v56  ;;  %v833_v55 = vunpack.c.l.s8.bf16 %v601_v50  ;;  %v840_v56 = vunpack.c.h.s8.bf16 %v600_v33 }
 0x177   : > { %1640 = vmatmul.mubr.bf16.gmra.mxu0 %v775_v59  ;;  %1929 = vmatmul.mubr.bf16.gmra.mxu1 %v777_v60  ;;  %v842_v59 = vunpack.c.h.s8.bf16 %v602_v35 }
 0x178   : > { %1647 = vmatprep.mubr.bf16.mxu0 %v784_v61  ;;  %1936 = vmatprep.mubr.bf16.mxu1 %v786_v62 }
 0x17f   : > { %1648 = vmatmul.mubr.bf16.gmra.mxu0 %v783_v1  ;;  %1937 = vmatmul.mubr.bf16.gmra.mxu1 %v785_v3  ;;  %v608_v1 = vld [vmem:[%s6458_s22 + $0x388] sm:$0xff] }
 0x180   : > { %1655 = vmatprep.mubr.bf16.mxu0 %v792_v4  ;;  %1944 = vmatprep.mubr.bf16.mxu1 %v794_v5  ;;  %v610_v4 = vld [vmem:[%s6458_s22 + $0x398] sm:$0xff]  ;;  %v856_v25 = vunpack.c.h.s8.bf16 %v608_v1 }
 0x181   : > { %v850_v12 = vunpack.c.l.s8.bf16 %v610_v4 }
 0x187   : > { %1656 = vmatmul.mubr.bf16.gmra.mxu0 %v791_v8  ;;  %1945 = vmatmul.mubr.bf16.gmra.mxu1 %v793_v9  ;;  %v841_v8 = vunpack.c.h.s8.bf16 %v601_v50  ;;  %v848_v9 = vunpack.c.l.s8.bf16 %v608_v1  ;;  %v615_v50 = vld [vmem:[%s6458_s22 + $0x3c0] sm:$0xff] }
 0x188   : > { %1663 = vmatprep.mubr.bf16.mxu0 %v800_v10  ;;  %1952 = vmatprep.mubr.bf16.mxu1 %v802_v11 }
 0x18f   : > { %1664 = vmatmul.mubr.bf16.gmra.mxu0 %v799_v14  ;;  %1953 = vmatmul.mubr.bf16.gmra.mxu1 %v801_v15 }
 0x190   : > { %1671 = vmatprep.mubr.bf16.mxu0 %v808_v16  ;;  %1960 = vmatprep.mubr.bf16.mxu1 %v810_v17  ;;  %v607_v16 = vld [vmem:[%s6458_s22 + $0x380] sm:$0xff] }
 0x197   : > { %1672 = vmatmul.mubr.bf16.gmra.mxu0 %v807_v20  ;;  %1961 = vmatmul.mubr.bf16.gmra.mxu1 %v809_v21 }
 0x198   : > { %1679 = vmatprep.mubr.bf16.mxu0 %v816_v22  ;;  %1968 = vmatprep.mubr.bf16.mxu1 %v818_v23  ;;  %v847_v22 = vunpack.c.l.s8.bf16 %v607_v16 }
 0x19f   : > { %v1489_v30 = vpop.f32.mrf.mxu0  ;;  %1680 = vmatmul.mubr.bf16.gmra.mxu0 %v815_v26  ;;  %v1778_v31 = vpop.f32.mrf.mxu1  ;;  %1969 = vmatmul.mubr.bf16.gmra.mxu1 %v817_v27 }
 0x1a0   : > { %1687 = vmatprep.mubr.bf16.mxu0 %v824_v28  ;;  %v6811_v2 = vadd.f32 %v1778_v31, %v1489_v30  ;;  %1976 = vmatprep.mubr.bf16.mxu1 %v826_v29  ;;  %v858_v28 = vunpack.c.h.s8.bf16 %v610_v4 }
 0x1a1   : > { %v1491_v32 = vpop.f32.mrf.mxu0  ;;  %v1780_v34 = vpop.f32.mrf.mxu1 }
 0x1a2   : > { %v616_v34 = vld [vmem:[%s6458_s22 + $0x3c8] sm:$0xff] }
 0x1a3   : > { %v1492_v36 = vpop.f32.mrf.mxu0  ;;  %v1781_v38 = vpop.f32.mrf.mxu1 }
 0x1a4   : > { %v6815_v41 = vadd.f32 %v1781_v38, %v1492_v36  ;;  %v618_v36 = vld [vmem:[%s6458_s22 + $0x3d8] sm:$0xff]  ;;  %v855_v38 = vunpack.c.h.s8.bf16 %v607_v16 }
 0x1a5   : > { %v1494_v42 = vpop.f32.mrf.mxu0  ;;  %v1783_v44 = vpop.f32.mrf.mxu1 }
 0x1a6   : > { %v864_v42 = vunpack.c.l.s8.bf16 %v616_v34 }
 0x1a7   : > { %v1497_v45 = vpop.f32.mrf.mxu0  ;;  %1688 = vmatmul.mubr.bf16.gmra.mxu0 %v823_v37  ;;  %v1786_v46 = vpop.f32.mrf.mxu1  ;;  %1977 = vmatmul.mubr.bf16.gmra.mxu1 %v825_v39 }
 0x1a8   : > { %1695 = vmatprep.mubr.bf16.mxu0 %v832_v40  ;;  %v6818_v48 = vadd.f32 %v1786_v46, %v1497_v45  ;;  %1984 = vmatprep.mubr.bf16.mxu1 %v834_v43  ;;  %v857_v40 = vunpack.c.h.s8.bf16 %v609_v19  ;;  %v866_v45 = vunpack.c.l.s8.bf16 %v618_v36 }
 0x1a9   : > { %v1499_v49 = vpop.f32.mrf.mxu0  ;;  %v1788_v51 = vpop.f32.mrf.mxu1 }
 0x1ab   : > { %v1500_v52 = vpop.f32.mrf.mxu0  ;;  %v1789_v54 = vpop.f32.mrf.mxu1 }
 0x1ac   : > { %v6821_v57 = vadd.f32 %v1789_v54, %v1500_v52 }
 0x1ad   : > { %v1502_v58 = vpop.f32.mrf.mxu0  ;;  %v1791_v60 = vpop.f32.mrf.mxu1 }
 0x1ae   : > { %v872_v60 = vunpack.c.h.s8.bf16 %v616_v34 }
 0x1af   : > { %v1505_v61 = vpop.f32.mrf.mxu0  ;;  %1696 = vmatmul.mubr.bf16.gmra.mxu0 %v831_v53  ;;  %v1794_v62 = vpop.f32.mrf.mxu1  ;;  %1985 = vmatmul.mubr.bf16.gmra.mxu1 %v833_v55  ;;  %v617_v53 = vld [vmem:[%s6458_s22 + $0x3d0] sm:$0xff] }
 0x1b0   : > { %1703 = vmatprep.mubr.bf16.mxu0 %v840_v56  ;;  %v6823_v63 = vadd.f32 %v1794_v62, %v1505_v61  ;;  %1992 = vmatprep.mubr.bf16.mxu1 %v842_v59  ;;  %v863_v56 = vunpack.c.l.s8.bf16 %v615_v50  ;;  %v865_v59 = vunpack.c.l.s8.bf16 %v617_v53 }
 0x1b1   : > { %v1507_v0 = vpop.f32.mrf.mxu0  ;;  %v1796_v3 = vpop.f32.mrf.mxu1 }
 0x1b2   : > { %v874_v0 = vunpack.c.h.s8.bf16 %v618_v36 }
 0x1b3   : > { %v1508_v5 = vpop.f32.mrf.mxu0  ;;  %v1797_v7 = vpop.f32.mrf.mxu1 }
 0x1b4   : > { %v6827_v10 = vadd.f32 %v1797_v7, %v1508_v5  ;;  %v500_v7 = vld [vmem:[%s6458_s22 + $0x28] sm:$0xff] }
 0x1b5   : > { %v1510_v11 = vpop.f32.mrf.mxu0  ;;  %v1799_v13 = vpop.f32.mrf.mxu1  ;;  %v636_v34 = vunpack.c.h.s8.bf16 %v500_v7 }
 0x1b7   : > { %v1513_v14 = vpop.f32.mrf.mxu0  ;;  %1704 = vmatmul.mubr.bf16.gmra.mxu0 %v839_v6  ;;  %v1802_v15 = vpop.f32.mrf.mxu1  ;;  %1993 = vmatmul.mubr.bf16.gmra.mxu1 %v841_v8 }
 0x1b8   : > { %1711 = vmatprep.mubr.bf16.mxu0 %v848_v9  ;;  %v6830_v17 = vadd.f32 %v1802_v15, %v1513_v14  ;;  %2000 = vmatprep.mubr.bf16.mxu1 %v850_v12  ;;  %v502_v9 = vld [vmem:[%s6458_s22 + $0x38] sm:$0xff]  ;;  %v871_v12 = vunpack.c.h.s8.bf16 %v615_v50  ;;  %v873_v14 = vunpack.c.h.s8.bf16 %v617_v53  ;;  %v628_v15 = vunpack.c.l.s8.bf16 %v500_v7 }
 0x1b9   : > { %v1515_v18 = vpop.f32.mrf.mxu0  ;;  %v1804_v20 = vpop.f32.mrf.mxu1  ;;  %v630_v19 = vunpack.c.l.s8.bf16 %v502_v9 }
 0x1bb   : > { %v1516_v21 = vpop.f32.mrf.mxu0  ;;  %v1805_v23 = vpop.f32.mrf.mxu1 }
 0x1bc   : > { %v6833_v26 = vadd.f32 %v1805_v23, %v1516_v21  ;;  %v499_v23 = vld [vmem:[%s6458_s22 + $0x20] sm:$0xff] }
 0x1bd   : > { %v1518_v27 = vpop.f32.mrf.mxu0  ;;  %v1807_v29 = vpop.f32.mrf.mxu1  ;;  %v635_v50 = vunpack.c.h.s8.bf16 %v499_v23 }
 0x1be   : > { %v501_v27 = vld [vmem:[%s6458_s22 + $0x30] sm:$0xff] }
 0x1bf   : > { %v1521_v30 = vpop.f32.mrf.mxu0  ;;  %1712 = vmatmul.mubr.bf16.gmra.mxu0 %v847_v22  ;;  %v1810_v31 = vpop.f32.mrf.mxu1  ;;  %2001 = vmatmul.mubr.bf16.gmra.mxu1 %v849_v24  ;;  %v637_v53 = vunpack.c.h.s8.bf16 %v501_v27 }
 0x1c0   : > { %1719 = vmatprep.mubr.bf16.mxu0 %v856_v25  ;;  %v6835_v32 = vadd.f32 %v1810_v31, %v1521_v30  ;;  %2008 = vmatprep.mubr.bf16.mxu1 %v858_v28  ;;  %v627_v30 = vunpack.c.l.s8.bf16 %v499_v23  ;;  %v516_v23 = vld [vmem:[%s6458_s22 + $0xa8] sm:$0xff] }
 0x1c1   : > { %v1523_v33 = vpop.f32.mrf.mxu0  ;;  %v1812_v35 = vpop.f32.mrf.mxu1 }
 0x1c2   : > { %v629_v33 = vunpack.c.l.s8.bf16 %v501_v27  ;;  %v518_v27 = vld [vmem:[%s6458_s22 + $0xb8] sm:$0xff] }
 0x1c3   : > { %v1524_v37 = vpop.f32.mrf.mxu0  ;;  %v1813_v39 = vpop.f32.mrf.mxu1 }
 0x1c4   : > { %v6839_v43 = vadd.f32 %v1813_v39, %v1524_v37  ;;  %v638_v37 = vunpack.c.h.s8.bf16 %v502_v9 }
 0x1c5   : > { %v1526_v44 = vpop.f32.mrf.mxu0  ;;  %v1815_v46 = vpop.f32.mrf.mxu1 }
 0x1c7   : > { %v1529_v47 = vpop.f32.mrf.mxu0  ;;  %1720 = vmatmul.mubr.bf16.gmra.mxu0 %v855_v38  ;;  %v1818_v49 = vpop.f32.mrf.mxu1  ;;  %2009 = vmatmul.mubr.bf16.gmra.mxu1 %v857_v40 }
 0x1c8   : > { %1727 = vmatprep.mubr.bf16.mxu0 %v864_v42  ;;  %v6842_v51 = vadd.f32 %v1818_v49, %v1529_v47  ;;  %2016 = vmatprep.mubr.bf16.mxu1 %v866_v45  ;;  %v508_v45 = vld [vmem:[%s6458_s22 + $0x68] sm:$0xff]  ;;  %v510_v47 = vld [vmem:[%s6458_s22 + $0x78] sm:$0xff] }
 0x1c9   : > { %v1531_v52 = vpop.f32.mrf.mxu0  ;;  %v1820_v54 = vpop.f32.mrf.mxu1 }
 0x1ca   : > { %v644_v54 = vunpack.c.l.s8.bf16 %v508_v45 }
 0x1cb   : > { %v1532_v55 = vpop.f32.mrf.mxu0  ;;  %v1821_v58 = vpop.f32.mrf.mxu1 }
 0x1cc   : > { %v6845_v61 = vadd.f32 %v1821_v58, %v1532_v55  ;;  %v646_v58 = vunpack.c.l.s8.bf16 %v510_v47 }
 0x1cd   : > { %v1534_v62 = vpop.f32.mrf.mxu0  ;;  %v1823_v1 = vpop.f32.mrf.mxu1 }
 0x1cf   : > { %v1537_v3 = vpop.f32.mrf.mxu0  ;;  %1728 = vmatmul.mubr.bf16.gmra.mxu0 %v863_v56  ;;  %v1826_v4 = vpop.f32.mrf.mxu1  ;;  %2017 = vmatmul.mubr.bf16.gmra.mxu1 %v865_v59 }
 0x1d0   : > { %1735 = vmatprep.mubr.bf16.mxu0 %v872_v60  ;;  %v6847_v5 = vadd.f32 %v1826_v4, %v1537_v3  ;;  %2024 = vmatprep.mubr.bf16.mxu1 %v874_v0  ;;  %v507_v0 = vld [vmem:[%s6458_s22 + $0x60] sm:$0xff]  ;;  %v509_v4 = vld [vmem:[%s6458_s22 + $0x70] sm:$0xff] }
 0x1d1   : > { %v1539_v6 = vpop.f32.mrf.mxu0  ;;  %v1828_v8 = vpop.f32.mrf.mxu1 }
 0x1d2   : > { %v643_v8 = vunpack.c.l.s8.bf16 %v507_v0 }
 0x1d3   : > { %v1540_v11 = vpop.f32.mrf.mxu0  ;;  %v1829_v13 = vpop.f32.mrf.mxu1 }
 0x1d4   : > { %v6851_v16 = vadd.f32 %v1829_v13, %v1540_v11  ;;  %v645_v11 = vunpack.c.l.s8.bf16 %v509_v4 }
 0x1d5   : > { %v1542_v18 = vpop.f32.mrf.mxu0  ;;  %v1831_v20 = vpop.f32.mrf.mxu1 }
 0x1d7   : > { %v1545_v21 = vpop.f32.mrf.mxu0  ;;  %1736 = vmatmul.mubr.bf16.gmra.mxu0 %v871_v12  ;;  %v1834_v22 = vpop.f32.mrf.mxu1  ;;  %2025 = vmatmul.mubr.bf16.gmra.mxu1 %v873_v14  ;;  %v652_v12 = vunpack.c.h.s8.bf16 %v508_v45 }
 0x1d8   : > { %2065 = vmatprep.mubr.bf16.mxu0 %v628_v15  ;;  %v6854_v24 = vadd.f32 %v1834_v22, %v1545_v21  ;;  %2354 = vmatprep.mubr.bf16.mxu1 %v630_v19  ;;  %v654_v15 = vunpack.c.h.s8.bf16 %v510_v47  ;;  %v517_v47 = vld [vmem:[%s6458_s22 + $0xb0] sm:$0xff] }
 0x1d9   : > { %v1547_v25 = vpop.f32.mrf.mxu0  ;;  %v1836_v28 = vpop.f32.mrf.mxu1 }
 0x1db   : > { %v1548_v29 = vpop.f32.mrf.mxu0  ;;  %v1837_v31 = vpop.f32.mrf.mxu1 }
 0x1dc   : > { %v6857_v35 = vadd.f32 %v1837_v31, %v1548_v29  ;;  %v651_v29 = vunpack.c.h.s8.bf16 %v507_v0  ;;  %v653_v31 = vunpack.c.h.s8.bf16 %v509_v4 }
 0x1dd   : > { %v1550_v36 = vpop.f32.mrf.mxu0  ;;  %v1839_v38 = vpop.f32.mrf.mxu1 }
 0x1df   : > { %v1553_v39 = vpop.f32.mrf.mxu0  ;;  %2066 = vmatmul.mubr.bf16.vlgmr.msra.gmra.mxu0 %v627_v30  ;;  %v1842_v40 = vpop.f32.mrf.mxu1  ;;  %2355 = vmatmul.mubr.bf16.vlgmr.msra.gmra.mxu1 %v629_v33  ;;  %v660_v33 = vunpack.c.l.s8.bf16 %v516_v23 }
 0x1e0   : > { %2073 = vmatprep.mubr.bf16.mxu0 %v636_v34  ;;  %v6859_v42 = vadd.f32 %v1842_v40, %v1553_v39  ;;  %2362 = vmatprep.mubr.bf16.mxu1 %v638_v37  ;;  %v662_v37 = vunpack.c.l.s8.bf16 %v518_v27 }
 0x1e1   : > { %v1555_v44 = vpop.f32.mrf.mxu0  ;;  %v1844_v46 = vpop.f32.mrf.mxu1 }
 0x1e2   : > { %v515_v44 = vld [vmem:[%s6458_s22 + $0xa0] sm:$0xff] }
 0x1e3   : > { %v1556_v49 = vpop.f32.mrf.mxu0  ;;  %v1845_v52 = vpop.f32.mrf.mxu1 }
 0x1e4   : > { %v6863_v55 = vadd.f32 %v1845_v52, %v1556_v49  ;;  %v659_v52 = vunpack.c.l.s8.bf16 %v515_v44 }
 0x1e5   : > { %v1558_v56 = vpop.f32.mrf.mxu0  ;;  %v1847_v59 = vpop.f32.mrf.mxu1 }
 0x1e6   : > { %v668_v56 = vunpack.c.h.s8.bf16 %v516_v23 }
 0x1e7   : > { %v1561_v60 = vpop.f32.mrf.mxu0  ;;  %2074 = vmatmul.mubr.bf16.gmra.mxu0 %v635_v50  ;;  %v1850_v62 = vpop.f32.mrf.mxu1  ;;  %2363 = vmatmul.mubr.bf16.gmra.mxu1 %v637_v53 }
 0x1e8   : > { %2081 = vmatprep.mubr.bf16.mxu0 %v644_v54  ;;  %v6866_v1 = vadd.f32 %v1850_v62, %v1561_v60  ;;  %2370 = vmatprep.mubr.bf16.mxu1 %v646_v58  ;;  %v661_v54 = vunpack.c.l.s8.bf16 %v517_v47  ;;  %v670_v60 = vunpack.c.h.s8.bf16 %v518_v27 }
 0x1e9   : > { %v1563_v3 = vpop.f32.mrf.mxu0  ;;  %v1852_v6 = vpop.f32.mrf.mxu1 }
 0x1eb   : > { %v1564_v7 = vpop.f32.mrf.mxu0  ;;  %v1853_v9 = vpop.f32.mrf.mxu1 }
 0x1ec   : > { %v6869_v13 = vadd.f32 %v1853_v9, %v1564_v7  ;;  %v524_v7 = vld [vmem:[%s6458_s22 + $0xe8] sm:$0xff]  ;;  %v526_v9 = vld [vmem:[%s6458_s22 + $0xf8] sm:$0xff] }
 0x1ed   : > { %v1566_v14 = vpop.f32.mrf.mxu0  ;;  %v1855_v18 = vpop.f32.mrf.mxu1 }
 0x1ee   : > { %v676_v18 = vunpack.c.l.s8.bf16 %v524_v7 }
 0x1ef   : > { %v1569_v19 = vpop.f32.mrf.mxu0  ;;  %2082 = vmatmul.mubr.bf16.gmra.mxu0 %v643_v8  ;;  %v1858_v20 = vpop.f32.mrf.mxu1  ;;  %2371 = vmatmul.mubr.bf16.gmra.mxu1 %v645_v11 }
 0x1f0   : > { %2089 = vmatprep.mubr.bf16.mxu0 %v652_v12  ;;  %v6871_v21 = vadd.f32 %v1858_v20, %v1569_v19  ;;  %2378 = vmatprep.mubr.bf16.mxu1 %v654_v15  ;;  %v667_v12 = vunpack.c.h.s8.bf16 %v515_v44  ;;  %v669_v15 = vunpack.c.h.s8.bf16 %v517_v47  ;;  %v686_v47 = vunpack.c.h.s8.bf16 %v526_v9 }
 0x1f1   : > { %v1571_v22 = vpop.f32.mrf.mxu0  ;;  %v1860_v25 = vpop.f32.mrf.mxu1 }
 0x1f2   : > { %v678_v22 = vunpack.c.l.s8.bf16 %v526_v9 }
 0x1f3   : > { %v1572_v28 = vpop.f32.mrf.mxu0  ;;  %v1861_v30 = vpop.f32.mrf.mxu1 }
 0x1f4   : > { %v6875_v34 = vadd.f32 %v1861_v30, %v1572_v28  ;;  %v523_v28 = vld [vmem:[%s6458_s22 + $0xe0] sm:$0xff] }
 0x1f5   : > { %v1574_v36 = vpop.f32.mrf.mxu0  ;;  %v1863_v38 = vpop.f32.mrf.mxu1 }
 0x1f7   : > { %v1577_v39 = vpop.f32.mrf.mxu0  ;;  %2090 = vmatmul.mubr.bf16.gmra.mxu0 %v651_v29  ;;  %v1866_v40 = vpop.f32.mrf.mxu1  ;;  %2379 = vmatmul.mubr.bf16.gmra.mxu1 %v653_v31  ;;  %v525_v31 = vld [vmem:[%s6458_s22 + $0xf0] sm:$0xff] }
 0x1f8   : > { %2097 = vmatprep.mubr.bf16.mxu0 %v660_v33  ;;  %v6878_v45 = vadd.f32 %v1866_v40, %v1577_v39  ;;  %2386 = vmatprep.mubr.bf16.mxu1 %v662_v37  ;;  %v675_v37 = vunpack.c.l.s8.bf16 %v523_v28  ;;  %v677_v39 = vunpack.c.l.s8.bf16 %v525_v31  ;;  %v684_v40 = vunpack.c.h.s8.bf16 %v524_v7 }
 0x1f9   : > { %v1579_v46 = vpop.f32.mrf.mxu0  ;;  %v1868_v49 = vpop.f32.mrf.mxu1 }
 0x1fb   : > { %v1580_v50 = vpop.f32.mrf.mxu0  ;;  %v1869_v53 = vpop.f32.mrf.mxu1 }
 0x1fc   : > { %v6881_v58 = vadd.f32 %v1869_v53, %v1580_v50 }
 0x1fd   : > { %v1582_v59 = vpop.f32.mrf.mxu0  ;;  %v1871_v62 = vpop.f32.mrf.mxu1 }
 0x1ff   : > { %v1585_v0 = vpop.f32.mrf.mxu0  ;;  %2098 = vmatmul.mubr.bf16.gmra.mxu0 %v659_v52  ;;  %v1874_v3 = vpop.f32.mrf.mxu1  ;;  %2387 = vmatmul.mubr.bf16.gmra.mxu1 %v661_v54 }
 0x200   : > { %2105 = vmatprep.mubr.bf16.mxu0 %v668_v56  ;;  %v6883_v4 = vadd.f32 %v1874_v3, %v1585_v0  ;;  %2394 = vmatprep.mubr.bf16.mxu1 %v670_v60  ;;  %v532_v56 = vld [vmem:[%s6458_s22 + $0x128] sm:$0xff]  ;;  %v534_v60 = vld [vmem:[%s6458_s22 + $0x138] sm:$0xff]  ;;  %v683_v0 = vunpack.c.h.s8.bf16 %v523_v28 }
 0x201   : > { %v1587_v6 = vpop.f32.mrf.mxu0  ;;  %v1876_v8 = vpop.f32.mrf.mxu1  ;;  %v692_v7 = vunpack.c.l.s8.bf16 %v532_v56 }
 0x202   : > { %v685_v6 = vunpack.c.h.s8.bf16 %v525_v31 }
 0x203   : > { %v1588_v11 = vpop.f32.mrf.mxu0  ;;  %v1877_v14 = vpop.f32.mrf.mxu1 }
 0x204   : > { %v6887_v19 = vadd.f32 %v1877_v14, %v1588_v11  ;;  %v694_v11 = vunpack.c.l.s8.bf16 %v534_v60 }
 0x205   : > { %v1590_v20 = vpop.f32.mrf.mxu0  ;;  %v1879_v23 = vpop.f32.mrf.mxu1 }
 0x206   : > { %v533_v23 = vld [vmem:[%s6458_s22 + $0x130] sm:$0xff] }
 0x207   : > { %v1593_v25 = vpop.f32.mrf.mxu0  ;;  %2106 = vmatmul.mubr.bf16.gmra.mxu0 %v667_v12  ;;  %v1882_v27 = vpop.f32.mrf.mxu1  ;;  %2395 = vmatmul.mubr.bf16.gmra.mxu1 %v669_v15  ;;  %v693_v31 = vunpack.c.l.s8.bf16 %v533_v23 }
 0x208   : > { %2113 = vmatprep.mubr.bf16.mxu0 %v676_v18  ;;  %v6890_v29 = vadd.f32 %v1882_v27, %v1593_v25  ;;  %2402 = vmatprep.mubr.bf16.mxu1 %v678_v22  ;;  %v531_v18 = vld [vmem:[%s6458_s22 + $0x120] sm:$0xff] }
 0x209   : > { %v1595_v30 = vpop.f32.mrf.mxu0  ;;  %v1884_v33 = vpop.f32.mrf.mxu1  ;;  %v691_v28 = vunpack.c.l.s8.bf16 %v531_v18 }
 0x20a   : > { %v700_v33 = vunpack.c.h.s8.bf16 %v532_v56  ;;  %v699_v56 = vunpack.c.h.s8.bf16 %v531_v18  ;;  %v541_v18 = vld [vmem:[%s6458_s22 + $0x170] sm:$0xff] }
 0x20b   : > { %v1596_v36 = vpop.f32.mrf.mxu0  ;;  %v1885_v38 = vpop.f32.mrf.mxu1 }
 0x20c   : > { %v6893_v44 = vadd.f32 %v1885_v38, %v1596_v36  ;;  %v702_v38 = vunpack.c.h.s8.bf16 %v534_v60 }
 0x20d   : > { %v1598_v46 = vpop.f32.mrf.mxu0  ;;  %v1887_v49 = vpop.f32.mrf.mxu1 }
 0x20f   : > { %v1601_v50 = vpop.f32.mrf.mxu0  ;;  %2114 = vmatmul.mubr.bf16.gmra.mxu0 %v675_v37  ;;  %v1890_v52 = vpop.f32.mrf.mxu1  ;;  %2403 = vmatmul.mubr.bf16.gmra.mxu1 %v677_v39 }
 0x210   : > { %2121 = vmatprep.mubr.bf16.mxu0 %v684_v40  ;;  %v6895_v53 = vadd.f32 %v1890_v52, %v1601_v50  ;;  %2410 = vmatprep.mubr.bf16.mxu1 %v686_v47  ;;  %v540_v50 = vld [vmem:[%s6458_s22 + $0x168] sm:$0xff] }
 0x211   : > { %v1603_v54 = vpop.f32.mrf.mxu0  ;;  %v1892_v59 = vpop.f32.mrf.mxu1  ;;  %v708_v60 = vunpack.c.l.s8.bf16 %v540_v50 }
 0x212   : > { %v542_v54 = vld [vmem:[%s6458_s22 + $0x178] sm:$0xff] }
 0x213   : > { %v1604_v62 = vpop.f32.mrf.mxu0  ;;  %v1893_v3 = vpop.f32.mrf.mxu1 }
 0x214   : > { %v6899_v8 = vadd.f32 %v1893_v3, %v1604_v62 }
 0x215   : > { %v1606_v9 = vpop.f32.mrf.mxu0  ;;  %v1895_v12 = vpop.f32.mrf.mxu1 }
 0x217   : > { %v1609_v14 = vpop.f32.mrf.mxu0  ;;  %2122 = vmatmul.mubr.bf16.gmra.mxu0 %v683_v0  ;;  %v1898_v15 = vpop.f32.mrf.mxu1  ;;  %2411 = vmatmul.mubr.bf16.gmra.mxu1 %v685_v6  ;;  %v701_v0 = vunpack.c.h.s8.bf16 %v533_v23 }
 0x218   : > { %2129 = vmatprep.mubr.bf16.mxu0 %v692_v7  ;;  %v6902_v20 = vadd.f32 %v1898_v15, %v1609_v14  ;;  %2418 = vmatprep.mubr.bf16.mxu1 %v694_v11  ;;  %v710_v7 = vunpack.c.l.s8.bf16 %v542_v54  ;;  %v539_v14 = vld [vmem:[%s6458_s22 + $0x160] sm:$0xff] }
 0x219   : > { %v1611_v22 = vpop.f32.mrf.mxu0  ;;  %v1900_v25 = vpop.f32.mrf.mxu1  ;;  %v707_v23 = vunpack.c.l.s8.bf16 %v539_v14 }
 0x21b   : > { %v1612_v27 = vpop.f32.mrf.mxu0  ;;  %v1901_v30 = vpop.f32.mrf.mxu1 }
 0x21c   : > { %v6905_v36 = vadd.f32 %v1901_v30, %v1612_v27  ;;  %v709_v30 = vunpack.c.l.s8.bf16 %v541_v18 }
 0x21d   : > { %v1614_v37 = vpop.f32.mrf.mxu0  ;;  %v1903_v39 = vpop.f32.mrf.mxu1 }
 0x21f   : > { %v1617_v40 = vpop.f32.mrf.mxu0  ;;  %2130 = vmatmul.mubr.bf16.gmra.mxu0 %v691_v28  ;;  %v1906_v46 = vpop.f32.mrf.mxu1  ;;  %2419 = vmatmul.mubr.bf16.gmra.mxu1 %v693_v31  ;;  %v716_v31 = vunpack.c.h.s8.bf16 %v540_v50  ;;  %v715_v50 = vunpack.c.h.s8.bf16 %v539_v14  ;;  %v549_v14 = vld [vmem:[%s6458_s22 + $0x1b0] sm:$0xff] }
 0x220   : > { %2137 = vmatprep.mubr.bf16.mxu0 %v700_v33  ;;  %v6907_v47 = vadd.f32 %v1906_v46, %v1617_v40  ;;  %2426 = vmatprep.mubr.bf16.mxu1 %v702_v38  ;;  %v718_v38 = vunpack.c.h.s8.bf16 %v542_v54 }
 0x221   : > { %v1619_v49 = vpop.f32.mrf.mxu0  ;;  %v1908_v52 = vpop.f32.mrf.mxu1 }
 0x223   : > { %v1620_v59 = vpop.f32.mrf.mxu0  ;;  %v1909_v62 = vpop.f32.mrf.mxu1 }
 0x224   : > { %v6911_v3 = vadd.f32 %v1909_v62, %v1620_v59  ;;  %v548_v59 = vld [vmem:[%s6458_s22 + $0x1a8] sm:$0xff]  ;;  %v550_v62 = vld [vmem:[%s6458_s22 + $0x1b8] sm:$0xff] }
 0x225   : > { %v1622_v6 = vpop.f32.mrf.mxu0  ;;  %v1911_v9 = vpop.f32.mrf.mxu1  ;;  %v724_v54 = vunpack.c.l.s8.bf16 %v548_v59 }
 0x226   : > { %v717_v6 = vunpack.c.h.s8.bf16 %v541_v18 }
 0x227   : > { %v1625_v11 = vpop.f32.mrf.mxu0  ;;  %2138 = vmatmul.mubr.bf16.gmra.mxu0 %v699_v56  ;;  %v1914_v12 = vpop.f32.mrf.mxu1  ;;  %2427 = vmatmul.mubr.bf16.gmra.mxu1 %v701_v0 }
 0x228   : > { %2145 = vmatprep.mubr.bf16.mxu0 %v708_v60  ;;  %v6914_v15 = vadd.f32 %v1914_v12, %v1625_v11  ;;  %2434 = vmatprep.mubr.bf16.mxu1 %v710_v7  ;;  %v726_v11 = vunpack.c.l.s8.bf16 %v550_v62 }
 0x229   : > { %v1627_v22 = vpop.f32.mrf.mxu0  ;;  %v1916_v25 = vpop.f32.mrf.mxu1 }
 0x22b   : > { %v1628_v27 = vpop.f32.mrf.mxu0  ;;  %v1917_v28 = vpop.f32.mrf.mxu1 }
 0x22c   : > { %v6917_v33 = vadd.f32 %v1917_v28, %v1628_v27  ;;  %v547_v27 = vld [vmem:[%s6458_s22 + $0x1a0] sm:$0xff] }
 0x22d   : > { %v1630_v37 = vpop.f32.mrf.mxu0  ;;  %v1919_v39 = vpop.f32.mrf.mxu1  ;;  %v723_v18 = vunpack.c.l.s8.bf16 %v547_v27 }
 0x22e   : > { %v732_v39 = vunpack.c.h.s8.bf16 %v548_v59  ;;  %v731_v59 = vunpack.c.h.s8.bf16 %v547_v27  ;;  %v557_v27 = vld [vmem:[%s6458_s22 + $0x1f0] sm:$0xff] }
 0x22f   : > { %v1633_v40 = vpop.f32.mrf.mxu0  ;;  %2146 = vmatmul.mubr.bf16.gmra.mxu0 %v707_v23  ;;  %v1922_v46 = vpop.f32.mrf.mxu1  ;;  %2435 = vmatmul.mubr.bf16.gmra.mxu1 %v709_v30 }
 0x230   : > { %2153 = vmatprep.mubr.bf16.mxu0 %v716_v31  ;;  %v6919_v49 = vadd.f32 %v1922_v46, %v1633_v40  ;;  %2442 = vmatprep.mubr.bf16.mxu1 %v718_v38  ;;  %v725_v38 = vunpack.c.l.s8.bf16 %v549_v14 }
 0x231   : > { %v1635_v52 = vpop.f32.mrf.mxu0  ;;  %v1924_v56 = vpop.f32.mrf.mxu1 }
 0x232   : > { %v734_v52 = vunpack.c.h.s8.bf16 %v550_v62 }
 0x233   : > { %v1636_v0 = vpop.f32.mrf.mxu0  ;;  %v1925_v60 = vpop.f32.mrf.mxu1 }
 0x234   : > { %v6923_v7 = vadd.f32 %v1925_v60, %v1636_v0 }
 0x235   : > { %v1638_v9 = vpop.f32.mrf.mxu0  ;;  %v1927_v12 = vpop.f32.mrf.mxu1 }
 0x237   : > { %v1641_v22 = vpop.f32.mrf.mxu0  ;;  %2154 = vmatmul.mubr.bf16.gmra.mxu0 %v715_v50  ;;  %v1930_v25 = vpop.f32.mrf.mxu1  ;;  %2443 = vmatmul.mubr.bf16.gmra.mxu1 %v717_v6 }
 0x238   : > { %2161 = vmatprep.mubr.bf16.mxu0 %v724_v54  ;;  %v6926_v23 = vadd.f32 %v1930_v25, %v1641_v22  ;;  %2450 = vmatprep.mubr.bf16.mxu1 %v726_v11  ;;  %v556_v54 = vld [vmem:[%s6458_s22 + $0x1e8] sm:$0xff]  ;;  %v558_v11 = vld [vmem:[%s6458_s22 + $0x1f8] sm:$0xff]  ;;  %v733_v25 = vunpack.c.h.s8.bf16 %v549_v14 }
 0x239   : > { %v1643_v28 = vpop.f32.mrf.mxu0  ;;  %v1932_v30 = vpop.f32.mrf.mxu1  ;;  %v740_v62 = vunpack.c.l.s8.bf16 %v556_v54 }
 0x23b   : > { %v1644_v31 = vpop.f32.mrf.mxu0  ;;  %v1933_v37 = vpop.f32.mrf.mxu1 }
 0x23c   : > { %v6929_v40 = vadd.f32 %v1933_v37, %v1644_v31  ;;  %v742_v31 = vunpack.c.l.s8.bf16 %v558_v11 }
 0x23d   : > { %v1646_v46 = vpop.f32.mrf.mxu0  ;;  %v1935_v56 = vpop.f32.mrf.mxu1 }
 0x23f   : > { %v1649_v0 = vpop.f32.mrf.mxu0  ;;  %2162 = vmatmul.mubr.bf16.gmra.mxu0 %v723_v18  ;;  %v1938_v50 = vpop.f32.mrf.mxu1  ;;  %2451 = vmatmul.mubr.bf16.gmra.mxu1 %v725_v38 }
 0x240   : > { %2169 = vmatprep.mubr.bf16.mxu0 %v732_v39  ;;  %v6931_v60 = vadd.f32 %v1938_v50, %v1649_v0  ;;  %2458 = vmatprep.mubr.bf16.mxu1 %v734_v52  ;;  %v555_v39 = vld [vmem:[%s6458_s22 + $0x1e0] sm:$0xff] }
 0x241   : > { %v1651_v6 = vpop.f32.mrf.mxu0  ;;  %v1940_v9 = vpop.f32.mrf.mxu1  ;;  %v739_v14 = vunpack.c.l.s8.bf16 %v555_v39 }
 0x242   : > { %v741_v6 = vunpack.c.l.s8.bf16 %v557_v27  ;;  %v748_v9 = vunpack.c.h.s8.bf16 %v556_v54  ;;  %v747_v54 = vunpack.c.h.s8.bf16 %v555_v39  ;;  %v565_v39 = vld [vmem:[%s6458_s22 + $0x230] sm:$0xff] }
 0x243   : > { %v1652_v12 = vpop.f32.mrf.mxu0  ;;  %v1941_v22 = vpop.f32.mrf.mxu1 }
 0x244   : > { %v6935_v28 = vadd.f32 %v1941_v22, %v1652_v12  ;;  %v750_v22 = vunpack.c.h.s8.bf16 %v558_v11 }
 0x245   : > { %v1654_v30 = vpop.f32.mrf.mxu0  ;;  %v1943_v18 = vpop.f32.mrf.mxu1 }
 0x247   : > { %v1657_v37 = vpop.f32.mrf.mxu0  ;;  %2170 = vmatmul.mubr.bf16.gmra.mxu0 %v731_v59  ;;  %v1946_v38 = vpop.f32.mrf.mxu1  ;;  %2459 = vmatmul.mubr.bf16.gmra.mxu1 %v733_v25 }
 0x248   : > { %2177 = vmatprep.mubr.bf16.mxu0 %v740_v62  ;;  %v6938_v46 = vadd.f32 %v1946_v38, %v1657_v37  ;;  %2466 = vmatprep.mubr.bf16.mxu1 %v742_v31  ;;  %v564_v37 = vld [vmem:[%s6458_s22 + $0x228] sm:$0xff] }
 0x249   : > { %v1659_v52 = vpop.f32.mrf.mxu0  ;;  %v1948_v56 = vpop.f32.mrf.mxu1  ;;  %v756_v11 = vunpack.c.l.s8.bf16 %v564_v37 }
 0x24a   : > { %v566_v52 = vld [vmem:[%s6458_s22 + $0x238] sm:$0xff] }
 0x24b   : > { %v1660_v0 = vpop.f32.mrf.mxu0  ;;  %v1949_v50 = vpop.f32.mrf.mxu1 }
 0x24c   : > { %v6941_v12 = vadd.f32 %v1949_v50, %v1660_v0  ;;  %v749_v50 = vunpack.c.h.s8.bf16 %v557_v27 }
 0x24d   : > { %v1662_v59 = vpop.f32.mrf.mxu0  ;;  %v1951_v25 = vpop.f32.mrf.mxu1 }
 0x24e   : > { %8039 = vst [vmem:[#allocation22_spill] sm:$0xff] %v6941_v12  ;;  %v758_v25 = vunpack.c.l.s8.bf16 %v566_v52 }
 0x24f   : > { %v1665_v62 = vpop.f32.mrf.mxu0  ;;  %2178 = vmatmul.mubr.bf16.gmra.mxu0 %v739_v14  ;;  %v1954_v30 = vpop.f32.mrf.mxu1  ;;  %2467 = vmatmul.mubr.bf16.gmra.mxu1 %v741_v6 }
 0x250   : > { %2185 = vmatprep.mubr.bf16.mxu0 %v748_v9  ;;  %v6943_v31 = vadd.f32 %v1954_v30, %v1665_v62  ;;  %2474 = vmatprep.mubr.bf16.mxu1 %v750_v22  ;;  %v563_v22 = vld [vmem:[%s6458_s22 + $0x220] sm:$0xff] }
 0x251   : > { %v1667_v18 = vpop.f32.mrf.mxu0  ;;  %v1956_v38 = vpop.f32.mrf.mxu1  ;;  %v755_v27 = vunpack.c.l.s8.bf16 %v563_v22 }
 0x252   : > { %8040 = vst [vmem:[#allocation23_spill] sm:$0xff] %v6943_v31 }
 0x253   : > { %v1668_v56 = vpop.f32.mrf.mxu0  ;;  %v1957_v0 = vpop.f32.mrf.mxu1 }
 0x254   : > { %v6947_v59 = vadd.f32 %v1957_v0, %v1668_v56  ;;  %v757_v0 = vunpack.c.l.s8.bf16 %v565_v39 }
 0x255   : > { %v1670_v14 = vpop.f32.mrf.mxu0  ;;  %v1959_v6 = vpop.f32.mrf.mxu1 }
 0x256   : > { %8041 = vst [vmem:[#allocation24_spill] sm:$0xff] %v6947_v59  ;;  %v764_v14 = vunpack.c.h.s8.bf16 %v564_v37  ;;  %v766_v59 = vunpack.c.h.s8.bf16 %v566_v52  ;;  %v763_v37 = vunpack.c.h.s8.bf16 %v563_v22  ;;  %v573_v22 = vld [vmem:[%s6458_s22 + $0x270] sm:$0xff] }
 0x257   : > { %v1673_v9 = vpop.f32.mrf.mxu0  ;;  %2186 = vmatmul.mubr.bf16.gmra.mxu0 %v747_v54  ;;  %v1962_v62 = vpop.f32.mrf.mxu1  ;;  %2475 = vmatmul.mubr.bf16.gmra.mxu1 %v749_v50 }
 0x258   : > { %2193 = vmatprep.mubr.bf16.mxu0 %v756_v11  ;;  %v6950_v30 = vadd.f32 %v1962_v62, %v1673_v9  ;;  %2482 = vmatprep.mubr.bf16.mxu1 %v758_v25 }
 0x259   : > { %v1675_v18 = vpop.f32.mrf.mxu0  ;;  %v1964_v38 = vpop.f32.mrf.mxu1 }
 0x25a   : > { %8042 = vst [vmem:[#allocation25_spill] sm:$0xff] %v6950_v30  ;;  %v572_v18 = vld [vmem:[%s6458_s22 + $0x268] sm:$0xff]  ;;  %v574_v30 = vld [vmem:[%s6458_s22 + $0x278] sm:$0xff] }
 0x25b   : > { %v1676_v31 = vpop.f32.mrf.mxu0  ;;  %v1965_v56 = vpop.f32.mrf.mxu1  ;;  %v772_v52 = vunpack.c.l.s8.bf16 %v572_v18 }
 0x25c   : > { %v6953_v6 = vadd.f32 %v1965_v56, %v1676_v31  ;;  %v765_v56 = vunpack.c.h.s8.bf16 %v565_v39 }
 0x25d   : > { %v1678_v54 = vpop.f32.mrf.mxu0  ;;  %v1967_v50 = vpop.f32.mrf.mxu1 }
 0x25e   : > { %8043 = vst [vmem:[#allocation26_spill] sm:$0xff] %v6953_v6  ;;  %v774_v50 = vunpack.c.l.s8.bf16 %v574_v30 }
 0x25f   : > { %v1681_v11 = vpop.f32.mrf.mxu0  ;;  %2194 = vmatmul.mubr.bf16.gmra.mxu0 %v755_v27  ;;  %v1970_v9 = vpop.f32.mrf.mxu1  ;;  %2483 = vmatmul.mubr.bf16.gmra.mxu1 %v757_v0 }
 0x260   : > { %2201 = vmatprep.mubr.bf16.mxu0 %v764_v14  ;;  %v6955_v25 = vadd.f32 %v1970_v9, %v1681_v11  ;;  %2490 = vmatprep.mubr.bf16.mxu1 %v766_v59  ;;  %v571_v59 = vld [vmem:[%s6458_s22 + $0x260] sm:$0xff] }
 0x261   : > { %v1683_v62 = vpop.f32.mrf.mxu0  ;;  %v1972_v38 = vpop.f32.mrf.mxu1  ;;  %v771_v39 = vunpack.c.l.s8.bf16 %v571_v59 }
 0x262   : > { %8044 = vst [vmem:[#allocation27_spill] sm:$0xff] %v6955_v25 }
 0x263   : > { %v1684_v12 = vpop.f32.mrf.mxu0  ;;  %v1973_v31 = vpop.f32.mrf.mxu1 }
 0x264   : > { %v6959_v54 = vadd.f32 %v1973_v31, %v1684_v12  ;;  %v773_v31 = vunpack.c.l.s8.bf16 %v573_v22 }
 0x265   : > { %v1686_v27 = vpop.f32.mrf.mxu0  ;;  %v1975_v0 = vpop.f32.mrf.mxu1 }
 0x266   : > { %8045 = vst [vmem:[#allocation28_spill] sm:$0xff] %v6959_v54  ;;  %v780_v27 = vunpack.c.h.s8.bf16 %v572_v18  ;;  %v782_v54 = vunpack.c.h.s8.bf16 %v574_v30  ;;  %v779_v18 = vunpack.c.h.s8.bf16 %v571_v59  ;;  %v581_v59 = vld [vmem:[%s6458_s22 + $0x2b0] sm:$0xff] }
 0x267   : > { %v1689_v14 = vpop.f32.mrf.mxu0  ;;  %2202 = vmatmul.mubr.bf16.gmra.mxu0 %v763_v37  ;;  %v1978_v11 = vpop.f32.mrf.mxu1  ;;  %2491 = vmatmul.mubr.bf16.gmra.mxu1 %v765_v56 }
 0x268   : > { %2209 = vmatprep.mubr.bf16.mxu0 %v772_v52  ;;  %v6962_v9 = vadd.f32 %v1978_v11, %v1689_v14  ;;  %2498 = vmatprep.mubr.bf16.mxu1 %v774_v50 }
 0x269   : > { %v1691_v62 = vpop.f32.mrf.mxu0  ;;  %v1980_v38 = vpop.f32.mrf.mxu1 }
 0x26a   : > { %8046 = vst [vmem:[#allocation29_spill] sm:$0xff] %v6962_v9  ;;  %v580_v62 = vld [vmem:[%s6458_s22 + $0x2a8] sm:$0xff]  ;;  %v582_v9 = vld [vmem:[%s6458_s22 + $0x2b8] sm:$0xff] }
 0x26b   : > { %v1692_v25 = vpop.f32.mrf.mxu0  ;;  %v1981_v12 = vpop.f32.mrf.mxu1  ;;  %v788_v30 = vunpack.c.l.s8.bf16 %v580_v62 }
 0x26c   : > { %v6965_v0 = vadd.f32 %v1981_v12, %v1692_v25  ;;  %v781_v12 = vunpack.c.h.s8.bf16 %v573_v22 }
 0x26d   : > { %v1694_v37 = vpop.f32.mrf.mxu0  ;;  %v1983_v56 = vpop.f32.mrf.mxu1 }
 0x26e   : > { %8047 = vst [vmem:[#allocation30_spill] sm:$0xff] %v6965_v0  ;;  %v790_v56 = vunpack.c.l.s8.bf16 %v582_v9 }
 0x26f   : > { %v1697_v52 = vpop.f32.mrf.mxu0  ;;  %2210 = vmatmul.mubr.bf16.gmra.mxu0 %v771_v39  ;;  %v1986_v14 = vpop.f32.mrf.mxu1  ;;  %2499 = vmatmul.mubr.bf16.gmra.mxu1 %v773_v31 }
 0x270   : > { %2217 = vmatprep.mubr.bf16.mxu0 %v780_v27  ;;  %v6967_v50 = vadd.f32 %v1986_v14, %v1697_v52  ;;  %2506 = vmatprep.mubr.bf16.mxu1 %v782_v54  ;;  %v579_v54 = vld [vmem:[%s6458_s22 + $0x2a0] sm:$0xff] }
 0x271   : > { %v1699_v11 = vpop.f32.mrf.mxu0  ;;  %v1988_v38 = vpop.f32.mrf.mxu1  ;;  %v787_v22 = vunpack.c.l.s8.bf16 %v579_v54 }
 0x272   : > { %8048 = vst [vmem:[#allocation31_spill] sm:$0xff] %v6967_v50 }
 0x273   : > { %v1700_v6 = vpop.f32.mrf.mxu0  ;;  %v1989_v25 = vpop.f32.mrf.mxu1 }
 0x274   : > { %v6971_v37 = vadd.f32 %v1989_v25, %v1700_v6  ;;  %v789_v25 = vunpack.c.l.s8.bf16 %v581_v59 }
 0x275   : > { %v1702_v39 = vpop.f32.mrf.mxu0  ;;  %v1991_v31 = vpop.f32.mrf.mxu1 }
 0x276   : > { %8049 = vst [vmem:[#allocation32_spill] sm:$0xff] %v6971_v37  ;;  %v796_v39 = vunpack.c.h.s8.bf16 %v580_v62  ;;  %v798_v37 = vunpack.c.h.s8.bf16 %v582_v9  ;;  %v795_v62 = vunpack.c.h.s8.bf16 %v579_v54  ;;  %v589_v54 = vld [vmem:[%s6458_s22 + $0x2f0] sm:$0xff] }
 0x277   : > { %v1705_v27 = vpop.f32.mrf.mxu0  ;;  %2218 = vmatmul.mubr.bf16.gmra.mxu0 %v779_v18  ;;  %v1994_v52 = vpop.f32.mrf.mxu1  ;;  %2507 = vmatmul.mubr.bf16.gmra.mxu1 %v781_v12 }
 0x278   : > { %2225 = vmatprep.mubr.bf16.mxu0 %v788_v30  ;;  %v6974_v14 = vadd.f32 %v1994_v52, %v1705_v27  ;;  %2514 = vmatprep.mubr.bf16.mxu1 %v790_v56 }
 0x279   : > { %v1707_v11 = vpop.f32.mrf.mxu0  ;;  %v1996_v38 = vpop.f32.mrf.mxu1 }
 0x27a   : > { %8050 = vst [vmem:[#allocation33_spill] sm:$0xff] %v6974_v14  ;;  %v588_v11 = vld [vmem:[%s6458_s22 + $0x2e8] sm:$0xff]  ;;  %v590_v14 = vld [vmem:[%s6458_s22 + $0x2f8] sm:$0xff] }
 0x27b   : > { %v1708_v50 = vpop.f32.mrf.mxu0  ;;  %v1997_v6 = vpop.f32.mrf.mxu1  ;;  %v804_v9 = vunpack.c.l.s8.bf16 %v588_v11 }
 0x27c   : > { %v6977_v31 = vadd.f32 %v1997_v6, %v1708_v50  ;;  %v797_v6 = vunpack.c.h.s8.bf16 %v581_v59 }
 0x27d   : > { %v1710_v18 = vpop.f32.mrf.mxu0  ;;  %v1999_v12 = vpop.f32.mrf.mxu1 }
 0x27e   : > { %8051 = vst [vmem:[#allocation34_spill] sm:$0xff] %v6977_v31  ;;  %v806_v12 = vunpack.c.l.s8.bf16 %v590_v14 }
 0x27f   : > { %v1713_v30 = vpop.f32.mrf.mxu0  ;;  %2226 = vmatmul.mubr.bf16.gmra.mxu0 %v787_v22  ;;  %v2002_v27 = vpop.f32.mrf.mxu1  ;;  %2515 = vmatmul.mubr.bf16.gmra.mxu1 %v789_v25 }
 0x280   : > { %2233 = vmatprep.mubr.bf16.mxu0 %v796_v39  ;;  %v6979_v56 = vadd.f32 %v2002_v27, %v1713_v30  ;;  %2522 = vmatprep.mubr.bf16.mxu1 %v798_v37  ;;  %v587_v37 = vld [vmem:[%s6458_s22 + $0x2e0] sm:$0xff] }
 0x281   : > { %v1715_v52 = vpop.f32.mrf.mxu0  ;;  %v2004_v38 = vpop.f32.mrf.mxu1  ;;  %v803_v59 = vunpack.c.l.s8.bf16 %v587_v37 }
 0x282   : > { %8052 = vst [vmem:[#allocation35_spill] sm:$0xff] %v6979_v56 }
 0x283   : > { %v1716_v0 = vpop.f32.mrf.mxu0  ;;  %v2005_v50 = vpop.f32.mrf.mxu1 }
 0x284   : > { %v6983_v18 = vadd.f32 %v2005_v50, %v1716_v0  ;;  %v805_v50 = vunpack.c.l.s8.bf16 %v589_v54 }
 0x285   : > { %v1718_v22 = vpop.f32.mrf.mxu0  ;;  %v2007_v25 = vpop.f32.mrf.mxu1 }
 0x286   : > { %8053 = vst [vmem:[#allocation36_spill] sm:$0xff] %v6983_v18  ;;  %v812_v22 = vunpack.c.h.s8.bf16 %v588_v11  ;;  %v814_v18 = vunpack.c.h.s8.bf16 %v590_v14  ;;  %v811_v11 = vunpack.c.h.s8.bf16 %v587_v37  ;;  %v597_v37 = vld [vmem:[%s6458_s22 + $0x330] sm:$0xff] }
 0x287   : > { %v1721_v39 = vpop.f32.mrf.mxu0  ;;  %2234 = vmatmul.mubr.bf16.gmra.mxu0 %v795_v62  ;;  %v2010_v30 = vpop.f32.mrf.mxu1  ;;  %2523 = vmatmul.mubr.bf16.gmra.mxu1 %v797_v6 }
 0x288   : > { %2241 = vmatprep.mubr.bf16.mxu0 %v804_v9  ;;  %v6986_v27 = vadd.f32 %v2010_v30, %v1721_v39  ;;  %2530 = vmatprep.mubr.bf16.mxu1 %v806_v12 }
 0x289   : > { %v1723_v52 = vpop.f32.mrf.mxu0  ;;  %v2012_v38 = vpop.f32.mrf.mxu1 }
 0x28a   : > { %8054 = vst [vmem:[#allocation37_spill] sm:$0xff] %v6986_v27  ;;  %v596_v52 = vld [vmem:[%s6458_s22 + $0x328] sm:$0xff]  ;;  %v598_v27 = vld [vmem:[%s6458_s22 + $0x338] sm:$0xff] }
 0x28b   : > { %v1724_v56 = vpop.f32.mrf.mxu0  ;;  %v2013_v0 = vpop.f32.mrf.mxu1  ;;  %v820_v14 = vunpack.c.l.s8.bf16 %v596_v52 }
 0x28c   : > { %v6989_v25 = vadd.f32 %v2013_v0, %v1724_v56  ;;  %v813_v0 = vunpack.c.h.s8.bf16 %v589_v54 }
 0x28d   : > { %v1726_v62 = vpop.f32.mrf.mxu0  ;;  %v2015_v6 = vpop.f32.mrf.mxu1 }
 0x28e   : > { %8055 = vst [vmem:[#allocation38_spill] sm:$0xff] %v6989_v25  ;;  %v822_v6 = vunpack.c.l.s8.bf16 %v598_v27 }
 0x28f   : > { %v1729_v9 = vpop.f32.mrf.mxu0  ;;  %2242 = vmatmul.mubr.bf16.gmra.mxu0 %v803_v59  ;;  %v2018_v39 = vpop.f32.mrf.mxu1  ;;  %2531 = vmatmul.mubr.bf16.gmra.mxu1 %v805_v50 }
 0x290   : > { %2249 = vmatprep.mubr.bf16.mxu0 %v812_v22  ;;  %v6991_v12 = vadd.f32 %v2018_v39, %v1729_v9  ;;  %2538 = vmatprep.mubr.bf16.mxu1 %v814_v18  ;;  %v595_v18 = vld [vmem:[%s6458_s22 + $0x320] sm:$0xff] }
 0x291   : > { %v1731_v30 = vpop.f32.mrf.mxu0  ;;  %v2020_v38 = vpop.f32.mrf.mxu1  ;;  %v819_v54 = vunpack.c.l.s8.bf16 %v595_v18 }
 0x292   : > { %8056 = vst [vmem:[#allocation39_spill] sm:$0xff] %v6991_v12 }
 0x293   : > { %v1732_v31 = vpop.f32.mrf.mxu0  ;;  %v2021_v56 = vpop.f32.mrf.mxu1 }
 0x294   : > { %v6995_v62 = vadd.f32 %v2021_v56, %v1732_v31  ;;  %v821_v31 = vunpack.c.l.s8.bf16 %v597_v37  ;;  %v828_v56 = vunpack.c.h.s8.bf16 %v596_v52  ;;  %v606_v52 = vld [vmem:[%s6458_s22 + $0x378] sm:$0xff] }
 0x295   : > { %v1734_v59 = vpop.f32.mrf.mxu0  ;;  %v2023_v50 = vpop.f32.mrf.mxu1 }
 0x296   : > { %8057 = vst [vmem:[#allocation40_spill] sm:$0xff] %v6995_v62  ;;  %v830_v50 = vunpack.c.h.s8.bf16 %v598_v27 }
 0x297   : > { %v1737_v22 = vpop.f32.mrf.mxu0  ;;  %2250 = vmatmul.mubr.bf16.gmra.mxu0 %v811_v11  ;;  %v2026_v9 = vpop.f32.mrf.mxu1  ;;  %2539 = vmatmul.mubr.bf16.gmra.mxu1 %v813_v0 }
 0x298   : > { %2257 = vmatprep.mubr.bf16.mxu0 %v820_v14  ;;  %v6998_v39 = vadd.f32 %v2026_v9, %v1737_v22  ;;  %2546 = vmatprep.mubr.bf16.mxu1 %v822_v6  ;;  %v879_v6 = vld [vmem:[#allocation2] sm:$0xff] }
 0x299   : > { %v1739_v30 = vpop.f32.mrf.mxu0  ;;  %v2028_v38 = vpop.f32.mrf.mxu1 }
 0x29a   : > { %8058 = vst [vmem:[#allocation41_spill] sm:$0xff] %v6998_v39  ;;  %v604_v38 = vld [vmem:[%s6458_s22 + $0x368] sm:$0xff] }
 0x29b   : > { %v1740_v12 = vpop.f32.mrf.mxu0  ;;  %v2029_v25 = vpop.f32.mrf.mxu1 }
 0x29c   : > { %v7001_v59 = vadd.f32 %v2029_v25, %v1740_v12  ;;  %v827_v12 = vunpack.c.h.s8.bf16 %v595_v18 }
 0x29d   : > { %v1742_v11 = vpop.f32.mrf.mxu0  ;;  %v2031_v0 = vpop.f32.mrf.mxu1 }
 0x29f   : > { %v2067_v14 = vpop.f32.mrf.mxu0  ;;  %2258 = vmatmul.mubr.bf16.gmra.mxu0 %v819_v54  ;;  %v2356_v9 = vpop.f32.mrf.mxu1  ;;  %2547 = vmatmul.mubr.bf16.gmra.mxu1 %v821_v31  ;;  %v829_v54 = vunpack.c.h.s8.bf16 %v597_v37 }
 0x2a0   : > { %v2068_v22 = vadd.f32 %v2067_v14, %v6811_v2  ;;  %2265 = vmatprep.mubr.bf16.mxu0 %v828_v56  ;;  %2554 = vmatprep.mubr.bf16.mxu1 %v830_v50  ;;  %v836_v2 = vunpack.c.l.s8.bf16 %v604_v38  ;;  %v880_v14 = vld [vmem:[#allocation2 + $0x8] sm:$0xff]  ;;  %v838_v56 = vunpack.c.l.s8.bf16 %v606_v52 }
 0x2a1   : > { %v2069_v30 = vpop.f32.mrf.mxu0  ;;  %v2358_v62 = vpop.f32.mrf.mxu1 }
 0x2a2   : > { %v2357_v39 = vadd.f32 %v2356_v9, %v2068_v22  ;;  %v605_v30 = vld [vmem:[%s6458_s22 + $0x370] sm:$0xff] }
 0x2a3   : > { %v2070_v25 = vpop.f32.mrf.mxu0  ;;  %v2359_v0 = vpop.f32.mrf.mxu1 }
 0x2a4   : > { %v2611_v11 = vadd.f32 %v2357_v39, %v879_v6  ;;  %v2071_v27 = vadd.f32 %v2070_v25, %v6815_v41  ;;  %v603_v41 = vld [vmem:[%s6458_s22 + $0x360] sm:$0xff]  ;;  %v881_v6 = vld [vmem:[#allocation2 + $0x10] sm:$0xff] }
 0x2a5   : > { %v2072_v31 = vpop.f32.mrf.mxu0  ;;  %v2361_v22 = vpop.f32.mrf.mxu1 }
 0x2a6   : > { %2676 = vst.msk [vmem:[#allocation2] sm:$0xff] %vm2675_vm1, %v2611_v11  ;;  %v2360_v50 = vadd.f32 %v2359_v0, %v2071_v27  ;;  %v835_v27 = vunpack.c.l.s8.bf16 %v603_v41  ;;  %v882_v22 = vld [vmem:[#allocation2 + $0x18] sm:$0xff] }
 0x2a7   : > { %v2075_v62 = vpop.f32.mrf.mxu0  ;;  %2266 = vmatmul.mubr.bf16.gmra.mxu0 %v827_v12  ;;  %v2364_v39 = vpop.f32.mrf.mxu1  ;;  %2555 = vmatmul.mubr.bf16.gmra.mxu1 %v829_v54 }
 0x2a8   : > { %v2612_v9 = vadd.f32 %v2360_v50, %v880_v14  ;;  %v2076_v18 = vadd.f32 %v2075_v62, %v6818_v48  ;;  %2273 = vmatprep.mubr.bf16.mxu0 %v836_v2  ;;  %2562 = vmatprep.mubr.bf16.mxu1 %v838_v56  ;;  %v837_v50 = vunpack.c.l.s8.bf16 %v605_v30  ;;  %v844_v48 = vunpack.c.h.s8.bf16 %v604_v38  ;;  %v612_v38 = vld [vmem:[%s6458_s22 + $0x3a8] sm:$0xff] }
 0x2a9   : > { %v2077_v37 = vpop.f32.mrf.mxu0  ;;  %v2366_v31 = vpop.f32.mrf.mxu1  ;;  %v846_v2 = vunpack.c.h.s8.bf16 %v606_v52 }
 0x2aa   : > { %2677 = vst.msk [vmem:[#allocation2 + $0x8] sm:$0xff] %vm2675_vm1, %v2612_v9  ;;  %v2365_v25 = vadd.f32 %v2364_v39, %v2076_v18  ;;  %v614_v31 = vld [vmem:[%s6458_s22 + $0x3b8] sm:$0xff] }
 0x2ab   : > { %v2078_v11 = vpop.f32.mrf.mxu0  ;;  %v2367_v14 = vpop.f32.mrf.mxu1 }
 0x2ac   : > { %v2613_v0 = vadd.f32 %v2365_v25, %v881_v6  ;;  %v2079_v12 = vadd.f32 %v2078_v11, %v6821_v57  ;;  %v883_v57 = vld [vmem:[#allocation2 + $0x20] sm:$0xff] }
 0x2ad   : > { %v2080_v54 = vpop.f32.mrf.mxu0  ;;  %v2369_v62 = vpop.f32.mrf.mxu1 }
 0x2ae   : > { %2678 = vst.msk [vmem:[#allocation2 + $0x10] sm:$0xff] %vm2675_vm1, %v2613_v0  ;;  %v2368_v56 = vadd.f32 %v2367_v14, %v2079_v12  ;;  %v843_v0 = vunpack.c.h.s8.bf16 %v603_v41  ;;  %v854_v54 = vunpack.c.l.s8.bf16 %v614_v31 }
 0x2af   : > { %v2083_v9 = vpop.f32.mrf.mxu0  ;;  %2274 = vmatmul.mubr.bf16.gmra.mxu0 %v835_v27  ;;  %v2372_v6 = vpop.f32.mrf.mxu1  ;;  %2563 = vmatmul.mubr.bf16.gmra.mxu1 %v837_v50  ;;  %v884_v50 = vld [vmem:[#allocation2 + $0x28] sm:$0xff] }
 0x2b0   : > { %v2614_v18 = vadd.f32 %v2368_v56, %v882_v22  ;;  %v2084_v39 = vadd.f32 %v2083_v9, %v6823_v63  ;;  %2281 = vmatprep.mubr.bf16.mxu0 %v844_v48  ;;  %2570 = vmatprep.mubr.bf16.mxu1 %v846_v2  ;;  %v845_v63 = vunpack.c.h.s8.bf16 %v605_v30  ;;  %v852_v22 = vunpack.c.l.s8.bf16 %v612_v38 }
 0x2b1   : > { %v2085_v37 = vpop.f32.mrf.mxu0  ;;  %v2374_v25 = vpop.f32.mrf.mxu1 }
 0x2b2   : > { %2679 = vst.msk [vmem:[#allocation2 + $0x18] sm:$0xff] %vm2675_vm1, %v2614_v18  ;;  %v2373_v52 = vadd.f32 %v2372_v6, %v2084_v39  ;;  %v885_v39 = vld [vmem:[#allocation2 + $0x30] sm:$0xff] }
 0x2b3   : > { %v2086_v11 = vpop.f32.mrf.mxu0  ;;  %v2375_v14 = vpop.f32.mrf.mxu1  ;;  %v613_v6 = vld [vmem:[%s6458_s22 + $0x3b0] sm:$0xff] }
 0x2b4   : > { %v2615_v12 = vadd.f32 %v2373_v52, %v883_v57  ;;  %v2087_v27 = vadd.f32 %v2086_v11, %v6827_v10  ;;  %v611_v10 = vld [vmem:[%s6458_s22 + $0x3a0] sm:$0xff] }
 0x2b5   : > { %v2088_v48 = vpop.f32.mrf.mxu0  ;;  %v2377_v56 = vpop.f32.mrf.mxu1  ;;  %v851_v25 = vunpack.c.l.s8.bf16 %v611_v10 }
 0x2b6   : > { %2680 = vst.msk [vmem:[#allocation2 + $0x20] sm:$0xff] %vm2675_vm1, %v2615_v12  ;;  %v2376_v2 = vadd.f32 %v2375_v14, %v2087_v27  ;;  %v853_v27 = vunpack.c.l.s8.bf16 %v613_v6  ;;  %v886_v14 = vld [vmem:[#allocation2 + $0x38] sm:$0xff] }
 0x2b7   : > { %v2091_v62 = vpop.f32.mrf.mxu0  ;;  %2282 = vmatmul.mubr.bf16.gmra.mxu0 %v843_v0  ;;  %v2380_v18 = vpop.f32.mrf.mxu1  ;;  %2571 = vmatmul.mubr.bf16.gmra.mxu1 %v845_v63 }
 0x2b8   : > { %v2616_v9 = vadd.f32 %v2376_v2, %v884_v50  ;;  %v2092_v41 = vadd.f32 %v2091_v62, %v6830_v17  ;;  %2289 = vmatprep.mubr.bf16.mxu0 %v852_v22  ;;  %2578 = vmatprep.mubr.bf16.mxu1 %v854_v54  ;;  %v860_v17 = vunpack.c.h.s8.bf16 %v612_v38  ;;  %v862_v22 = vunpack.c.h.s8.bf16 %v614_v31  ;;  %v620_v38 = vld [vmem:[%s6458_s22 + $0x3e8] sm:$0xff] }
 0x2b9   : > { %v2093_v30 = vpop.f32.mrf.mxu0  ;;  %v2382_v37 = vpop.f32.mrf.mxu1 }
 0x2ba   : > { %2681 = vst.msk [vmem:[#allocation2 + $0x28] sm:$0xff] %vm2675_vm1, %v2616_v9  ;;  %v2381_v57 = vadd.f32 %v2380_v18, %v2092_v41  ;;  %v622_v18 = vld [vmem:[%s6458_s22 + $0x3f8] sm:$0xff]  ;;  %v859_v30 = vunpack.c.h.s8.bf16 %v611_v10 }
 0x2bb   : > { %v2094_v52 = vpop.f32.mrf.mxu0  ;;  %v2383_v12 = vpop.f32.mrf.mxu1 }
 0x2bc   : > { %v2617_v11 = vadd.f32 %v2381_v57, %v885_v39  ;;  %v2095_v0 = vadd.f32 %v2094_v52, %v6833_v26  ;;  %v887_v26 = vld [vmem:[#allocation2 + $0x40] sm:$0xff] }
 0x2bd   : > { %v2096_v63 = vpop.f32.mrf.mxu0  ;;  %v2385_v48 = vpop.f32.mrf.mxu1 }
 0x2be   : > { %2682 = vst.msk [vmem:[#allocation2 + $0x30] sm:$0xff] %vm2675_vm1, %v2617_v11  ;;  %v2384_v50 = vadd.f32 %v2383_v12, %v2095_v0  ;;  %v888_v11 = vld [vmem:[#allocation2 + $0x48] sm:$0xff]  ;;  %v870_v12 = vunpack.c.l.s8.bf16 %v622_v18  ;;  %v621_v48 = vld [vmem:[%s6458_s22 + $0x3f0] sm:$0xff] }
 0x2bf   : > { %v2099_v54 = vpop.f32.mrf.mxu0  ;;  %2290 = vmatmul.mubr.bf16.gmra.mxu0 %v851_v25  ;;  %v2388_v62 = vpop.f32.mrf.mxu1  ;;  %2579 = vmatmul.mubr.bf16.gmra.mxu1 %v853_v27  ;;  %v868_v25 = vunpack.c.l.s8.bf16 %v620_v38 }
 0x2c0   : > { %v2618_v2 = vadd.f32 %v2384_v50, %v886_v14  ;;  %v2100_v56 = vadd.f32 %v2099_v54, %v6835_v32  ;;  %2297 = vmatprep.mubr.bf16.mxu0 %v860_v17  ;;  %2586 = vmatprep.mubr.bf16.mxu1 %v862_v22  ;;  %v861_v32 = vunpack.c.h.s8.bf16 %v613_v6  ;;  %v889_v50 = vld [vmem:[#allocation2 + $0x50] sm:$0xff] }
 0x2c1   : > { %v2101_v9 = vpop.f32.mrf.mxu0  ;;  %v2390_v41 = vpop.f32.mrf.mxu1 }
 0x2c2   : > { %2683 = vst.msk [vmem:[#allocation2 + $0x38] sm:$0xff] %vm2675_vm1, %v2618_v2  ;;  %v2389_v31 = vadd.f32 %v2388_v62, %v2100_v56  ;;  %v869_v41 = vunpack.c.l.s8.bf16 %v621_v48 }
 0x2c3   : > { %v2102_v39 = vpop.f32.mrf.mxu0  ;;  %v2391_v52 = vpop.f32.mrf.mxu1 }
 0x2c4   : > { %v2619_v57 = vadd.f32 %v2389_v31, %v887_v26  ;;  %v2103_v37 = vadd.f32 %v2102_v39, %v6839_v43  ;;  %v619_v43 = vld [vmem:[%s6458_s22 + $0x3e0] sm:$0xff]  ;;  %v890_v39 = vld [vmem:[#allocation2 + $0x58] sm:$0xff] }
 0x2c5   : > { %v2104_v0 = vpop.f32.mrf.mxu0  ;;  %v2393_v17 = vpop.f32.mrf.mxu1  ;;  %v867_v62 = vunpack.c.l.s8.bf16 %v619_v43 }
 0x2c6   : > { %2684 = vst.msk [vmem:[#allocation2 + $0x40] sm:$0xff] %vm2675_vm1, %v2619_v57  ;;  %v2392_v27 = vadd.f32 %v2391_v52, %v2103_v37  ;;  %v878_v57 = vunpack.c.h.s8.bf16 %v622_v18  ;;  %v875_v17 = vunpack.c.h.s8.bf16 %v619_v43 }
 0x2c7   : > { %v2107_v14 = vpop.f32.mrf.mxu0  ;;  %2298 = vmatmul.mubr.bf16.gmra.mxu0 %v859_v30  ;;  %v2396_v22 = vpop.f32.mrf.mxu1  ;;  %2587 = vmatmul.mubr.bf16.gmra.mxu1 %v861_v32 }
 0x2c8   : > { %v2620_v63 = vadd.f32 %v2392_v27, %v888_v11  ;;  %v2108_v10 = vadd.f32 %v2107_v14, %v6842_v51  ;;  %2305 = vmatprep.mubr.bf16.mxu0 %v868_v25  ;;  %2594 = vmatprep.mubr.bf16.mxu1 %v870_v12  ;;  %v876_v51 = vunpack.c.h.s8.bf16 %v620_v38  ;;  %v891_v12 = vld [vmem:[#allocation2 + $0x60] sm:$0xff] }
 0x2c9   : > { %v2109_v6 = vpop.f32.mrf.mxu0  ;;  %v2398_v2 = vpop.f32.mrf.mxu1 }
 0x2ca   : > { %2685 = vst.msk [vmem:[#allocation2 + $0x48] sm:$0xff] %vm2675_vm1, %v2620_v63  ;;  %v2397_v54 = vadd.f32 %v2396_v22, %v2108_v10  ;;  %v877_v22 = vunpack.c.h.s8.bf16 %v621_v48 }
 0x2cb   : > { %v2110_v56 = vpop.f32.mrf.mxu0  ;;  %v2399_v31 = vpop.f32.mrf.mxu1 }
 0x2cc   : > { %v2621_v26 = vadd.f32 %v2397_v54, %v889_v50  ;;  %v2111_v9 = vadd.f32 %v2110_v56, %v6845_v61  ;;  %v892_v50 = vld [vmem:[#allocation2 + $0x68] sm:$0xff] }
 0x2cd   : > { %v2112_v30 = vpop.f32.mrf.mxu0  ;;  %v2401_v52 = vpop.f32.mrf.mxu1 }
 0x2ce   : > { %2686 = vst.msk [vmem:[#allocation2 + $0x50] sm:$0xff] %vm2675_vm1, %v2621_v26  ;;  %v2400_v37 = vadd.f32 %v2399_v31, %v2111_v9  ;;  %v893_v9 = vld [vmem:[#allocation2 + $0x70] sm:$0xff]  ;;  %v894_v30 = vld [vmem:[#allocation2 + $0x78] sm:$0xff] }
 0x2cf   : > { %v2115_v32 = vpop.f32.mrf.mxu0  ;;  %2306 = vmatmul.mubr.bf16.gmra.mxu0 %v867_v62  ;;  %v2404_v0 = vpop.f32.mrf.mxu1  ;;  %2595 = vmatmul.mubr.bf16.gmra.mxu1 %v869_v41 }
 0x2d0   : > { %v2622_v25 = vadd.f32 %v2400_v37, %v890_v39  ;;  %v2116_v11 = vadd.f32 %v2115_v32, %v6847_v5  ;;  %2313 = vmatprep.mubr.bf16.mxu0 %v876_v51  ;;  %2602 = vmatprep.mubr.bf16.mxu1 %v878_v57 }
 0x2d1   : > { %v2117_v61 = vpop.f32.mrf.mxu0  ;;  %v2406_v27 = vpop.f32.mrf.mxu1 }
 0x2d2   : > { %2687 = vst.msk [vmem:[#allocation2 + $0x58] sm:$0xff] %vm2675_vm1, %v2622_v25  ;;  %v2405_v38 = vadd.f32 %v2404_v0, %v2116_v11  ;;  %v895_v0 = vld [vmem:[#allocation2 + $0x80] sm:$0xff] }
 0x2d3   : > { %v2118_v18 = vpop.f32.mrf.mxu0  ;;  %v2407_v10 = vpop.f32.mrf.mxu1 }
 0x2d4   : > { %v2623_v14 = vadd.f32 %v2405_v38, %v891_v12  ;;  %v2119_v63 = vadd.f32 %v2118_v18, %v6851_v16 }
 0x2d5   : > { %v2120_v6 = vpop.f32.mrf.mxu0  ;;  %v2409_v54 = vpop.f32.mrf.mxu1 }
 0x2d6   : > { %2688 = vst.msk [vmem:[#allocation2 + $0x60] sm:$0xff] %vm2675_vm1, %v2623_v14  ;;  %v2408_v5 = vadd.f32 %v2407_v10, %v2119_v63  ;;  %v896_v14 = vld [vmem:[#allocation2 + $0x88] sm:$0xff]  ;;  %v897_v54 = vld [vmem:[#allocation2 + $0x90] sm:$0xff] }
 0x2d7   : > { %v2123_v2 = vpop.f32.mrf.mxu0  ;;  %2314 = vmatmul.mubr.bf16.gmra.mxu0 %v875_v17  ;;  %v2412_v26 = vpop.f32.mrf.mxu1  ;;  %2603 = vmatmul.mubr.bf16.gmra.mxu1 %v877_v22 }
 0x2d8   : > { %v2624_v56 = vadd.f32 %v2408_v5, %v892_v50  ;;  %v2124_v62 = vadd.f32 %v2123_v2, %v6854_v24 }
 0x2d9   : > { %v2125_v43 = vpop.f32.mrf.mxu0  ;;  %v2414_v31 = vpop.f32.mrf.mxu1 }
 0x2da   : > { %2689 = vst.msk [vmem:[#allocation2 + $0x68] sm:$0xff] %vm2675_vm1, %v2624_v56  ;;  %v2413_v16 = vadd.f32 %v2412_v26, %v2124_v62 }
 0x2db   : > { %v2126_v48 = vpop.f32.mrf.mxu0  ;;  %v2415_v39 = vpop.f32.mrf.mxu1 }
 0x2dc   : > { %v2625_v41 = vadd.f32 %v2413_v16, %v893_v9  ;;  %v2127_v51 = vadd.f32 %v2126_v48, %v6857_v35  ;;  %v898_v16 = vld [vmem:[#allocation2 + $0x98] sm:$0xff] }
 0x2dd   : > { %v2128_v57 = vpop.f32.mrf.mxu0  ;;  %v2417_v52 = vpop.f32.mrf.mxu1 }
 0x2de   : > { %2690 = vst.msk [vmem:[#allocation2 + $0x70] sm:$0xff] %vm2675_vm1, %v2625_v41  ;;  %v2416_v37 = vadd.f32 %v2415_v39, %v2127_v51  ;;  %v899_v57 = vld [vmem:[#allocation2 + $0xa0] sm:$0xff] }
 0x2df   : > { %v2131_v24 = vpop.f32.mrf.mxu0  ;;  %v2420_v11 = vpop.f32.mrf.mxu1 }
 0x2e0   : > { %v2626_v32 = vadd.f32 %v2416_v37, %v894_v30  ;;  %v2132_v25 = vadd.f32 %v2131_v24, %v6859_v42 }
 0x2e1   : > { %v2133_v12 = vpop.f32.mrf.mxu0  ;;  %v2422_v38 = vpop.f32.mrf.mxu1 }
 0x2e2   : > { %2691 = vst.msk [vmem:[#allocation2 + $0x78] sm:$0xff] %vm2675_vm1, %v2626_v32  ;;  %v2421_v61 = vadd.f32 %v2420_v11, %v2132_v25 }
 0x2e3   : > { %v2134_v27 = vpop.f32.mrf.mxu0  ;;  %v2423_v17 = vpop.f32.mrf.mxu1 }
 0x2e4   : > { %v2627_v35 = vadd.f32 %v2421_v61, %v895_v0  ;;  %v2135_v18 = vadd.f32 %v2134_v27, %v6863_v55  ;;  %v900_v0 = vld [vmem:[#allocation2 + $0xa8] sm:$0xff] }
 0x2e5   : > { %v2136_v63 = vpop.f32.mrf.mxu0  ;;  %v2425_v22 = vpop.f32.mrf.mxu1 }
 0x2e6   : > { %2692 = vst.msk [vmem:[#allocation2 + $0x80] sm:$0xff] %vm2675_vm1, %v2627_v35  ;;  %v2424_v10 = vadd.f32 %v2423_v17, %v2135_v18  ;;  %v901_v17 = vld [vmem:[#allocation2 + $0xb0] sm:$0xff] }
 0x2e7   : > { %v2139_v50 = vpop.f32.mrf.mxu0  ;;  %v2428_v5 = vpop.f32.mrf.mxu1 }
 0x2e8   : > { %v2628_v42 = vadd.f32 %v2424_v10, %v896_v14  ;;  %v2140_v6 = vadd.f32 %v2139_v50, %v6866_v1 }
 0x2e9   : > { %v2141_v2 = vpop.f32.mrf.mxu0  ;;  %v2430_v62 = vpop.f32.mrf.mxu1 }
 0x2ea   : > { %2693 = vst.msk [vmem:[#allocation2 + $0x88] sm:$0xff] %vm2675_vm1, %v2628_v42  ;;  %v2429_v56 = vadd.f32 %v2428_v5, %v2140_v6  ;;  %v902_v6 = vld [vmem:[#allocation2 + $0xb8] sm:$0xff] }
 0x2eb   : > { %v2142_v26 = vpop.f32.mrf.mxu0  ;;  %v2431_v43 = vpop.f32.mrf.mxu1 }
 0x2ec   : > { %v2629_v55 = vadd.f32 %v2429_v56, %v897_v54  ;;  %v2143_v9 = vadd.f32 %v2142_v26, %v6869_v13 }
 0x2ed   : > { %v2144_v31 = vpop.f32.mrf.mxu0  ;;  %v2433_v41 = vpop.f32.mrf.mxu1 }
 0x2ee   : > { %2694 = vst.msk [vmem:[#allocation2 + $0x90] sm:$0xff] %vm2675_vm1, %v2629_v55  ;;  %v2432_v48 = vadd.f32 %v2431_v43, %v2143_v9  ;;  %v903_v55 = vld [vmem:[#allocation2 + $0xc0] sm:$0xff] }
 0x2ef   : > { %v2147_v51 = vpop.f32.mrf.mxu0  ;;  %v2436_v30 = vpop.f32.mrf.mxu1 }
 0x2f0   : > { %v2630_v1 = vadd.f32 %v2432_v48, %v898_v16  ;;  %v2148_v39 = vadd.f32 %v2147_v51, %v6871_v21  ;;  %v904_v51 = vld [vmem:[#allocation2 + $0xc8] sm:$0xff] }
 0x2f1   : > { %v2149_v37 = vpop.f32.mrf.mxu0  ;;  %v2438_v24 = vpop.f32.mrf.mxu1 }
 0x2f2   : > { %2695 = vst.msk [vmem:[#allocation2 + $0x98] sm:$0xff] %vm2675_vm1, %v2630_v1  ;;  %v2437_v52 = vadd.f32 %v2436_v30, %v2148_v39  ;;  %v905_v24 = vld [vmem:[#allocation2 + $0xd0] sm:$0xff] }
 0x2f3   : > { %v2150_v32 = vpop.f32.mrf.mxu0  ;;  %v2439_v11 = vpop.f32.mrf.mxu1 }
 0x2f4   : > { %v2631_v13 = vadd.f32 %v2437_v52, %v899_v57  ;;  %v2151_v25 = vadd.f32 %v2150_v32, %v6875_v34 }
 0x2f5   : > { %v2152_v12 = vpop.f32.mrf.mxu0  ;;  %v2441_v38 = vpop.f32.mrf.mxu1 }
 0x2f6   : > { %2696 = vst.msk [vmem:[#allocation2 + $0xa0] sm:$0xff] %vm2675_vm1, %v2631_v13  ;;  %v2440_v61 = vadd.f32 %v2439_v11, %v2151_v25 }
 0x2f7   : > { %v2155_v27 = vpop.f32.mrf.mxu0  ;;  %v2444_v18 = vpop.f32.mrf.mxu1 }
 0x2f8   : > { %v2632_v21 = vadd.f32 %v2440_v61, %v900_v0  ;;  %v2156_v35 = vadd.f32 %v2155_v27, %v6878_v45  ;;  %v906_v61 = vld [vmem:[#allocation2 + $0xd8] sm:$0xff] }
 0x2f9   : > { %v2157_v14 = vpop.f32.mrf.mxu0  ;;  %v2446_v10 = vpop.f32.mrf.mxu1 }
 0x2fa   : > { %2697 = vst.msk [vmem:[#allocation2 + $0xa8] sm:$0xff] %vm2675_vm1, %v2632_v21  ;;  %v2445_v63 = vadd.f32 %v2444_v18, %v2156_v35  ;;  %v907_v14 = vld [vmem:[#allocation2 + $0xe0] sm:$0xff] }
 0x2fb   : > { %v2158_v22 = vpop.f32.mrf.mxu0  ;;  %v2447_v42 = vpop.f32.mrf.mxu1 }
 0x2fc   : > { %v2633_v34 = vadd.f32 %v2445_v63, %v901_v17  ;;  %v2159_v50 = vadd.f32 %v2158_v22, %v6881_v58 }
 0x2fd   : > { %v2160_v5 = vpop.f32.mrf.mxu0  ;;  %v2449_v2 = vpop.f32.mrf.mxu1 }
 0x2fe   : > { %2698 = vst.msk [vmem:[#allocation2 + $0xb0] sm:$0xff] %vm2675_vm1, %v2633_v34  ;;  %v2448_v54 = vadd.f32 %v2447_v42, %v2159_v50 }
 0x2ff   : > { %v2163_v56 = vpop.f32.mrf.mxu0  ;;  %v2452_v26 = vpop.f32.mrf.mxu1 }
 0x300   : > { %v2634_v45 = vadd.f32 %v2448_v54, %v902_v6  ;;  %v2164_v62 = vadd.f32 %v2163_v56, %v6883_v4  ;;  %v908_v6 = vld [vmem:[#allocation2 + $0xe8] sm:$0xff] }
 0x301   : > { %v2165_v9 = vpop.f32.mrf.mxu0  ;;  %v2454_v16 = vpop.f32.mrf.mxu1 }
 0x302   : > { %2699 = vst.msk [vmem:[#allocation2 + $0xb8] sm:$0xff] %vm2675_vm1, %v2634_v45  ;;  %v2453_v43 = vadd.f32 %v2452_v26, %v2164_v62  ;;  %v909_v26 = vld [vmem:[#allocation2 + $0xf0] sm:$0xff] }
 0x303   : > { %v2166_v31 = vpop.f32.mrf.mxu0  ;;  %v2455_v41 = vpop.f32.mrf.mxu1 }
 0x304   : > { %v2635_v58 = vadd.f32 %v2453_v43, %v903_v55  ;;  %v2167_v48 = vadd.f32 %v2166_v31, %v6887_v19 }
 0x305   : > { %v2168_v1 = vpop.f32.mrf.mxu0  ;;  %v2457_v30 = vpop.f32.mrf.mxu1 }
 0x306   : > { %2700 = vst.msk [vmem:[#allocation2 + $0xc0] sm:$0xff] %vm2675_vm1, %v2635_v58  ;;  %v2456_v39 = vadd.f32 %v2455_v41, %v2167_v48  ;;  %v910_v48 = vld [vmem:[#allocation2 + $0xf8] sm:$0xff] }
 0x307   : > { %v2171_v57 = vpop.f32.mrf.mxu0  ;;  %v2460_v52 = vpop.f32.mrf.mxu1 }
 0x308   : > { %v2636_v4 = vadd.f32 %v2456_v39, %v904_v51  ;;  %v2172_v37 = vadd.f32 %v2171_v57, %v6890_v29 }
 0x309   : > { %v2173_v32 = vpop.f32.mrf.mxu0  ;;  %v2462_v25 = vpop.f32.mrf.mxu1 }
 0x30a   : > { %2701 = vst.msk [vmem:[#allocation2 + $0xc8] sm:$0xff] %vm2675_vm1, %v2636_v4  ;;  %v2461_v13 = vadd.f32 %v2460_v52, %v2172_v37  ;;  %v911_v4 = vld [vmem:[#allocation2 + $0x100] sm:$0xff] }
 0x30b   : > { %v2174_v11 = vpop.f32.mrf.mxu0  ;;  %v2463_v12 = vpop.f32.mrf.mxu1 }
 0x30c   : > { %v2637_v19 = vadd.f32 %v2461_v13, %v905_v24  ;;  %v2175_v0 = vadd.f32 %v2174_v11, %v6893_v44  ;;  %v912_v11 = vld [vmem:[#allocation2 + $0x108] sm:$0xff] }
 0x30d   : > { %v2176_v38 = vpop.f32.mrf.mxu0  ;;  %v2465_v21 = vpop.f32.mrf.mxu1 }
 0x30e   : > { %2702 = vst.msk [vmem:[#allocation2 + $0xd0] sm:$0xff] %vm2675_vm1, %v2637_v19  ;;  %v2464_v27 = vadd.f32 %v2463_v12, %v2175_v0  ;;  %v913_v21 = vld [vmem:[#allocation2 + $0x110] sm:$0xff] }
 0x30f   : > { %v2179_v35 = vpop.f32.mrf.mxu0  ;;  %v2468_v17 = vpop.f32.mrf.mxu1 }
 0x310   : > { %v2638_v29 = vadd.f32 %v2464_v27, %v906_v61  ;;  %v2180_v18 = vadd.f32 %v2179_v35, %v6895_v53 }
 0x311   : > { %v2181_v63 = vpop.f32.mrf.mxu0  ;;  %v2470_v22 = vpop.f32.mrf.mxu1 }
 0x312   : > { %2703 = vst.msk [vmem:[#allocation2 + $0xd8] sm:$0xff] %vm2675_vm1, %v2638_v29  ;;  %v2469_v10 = vadd.f32 %v2468_v17, %v2180_v18 }
 0x313   : > { %v2182_v34 = vpop.f32.mrf.mxu0  ;;  %v2471_v42 = vpop.f32.mrf.mxu1 }
 0x314   : > { %v2639_v44 = vadd.f32 %v2469_v10, %v907_v14  ;;  %v2183_v50 = vadd.f32 %v2182_v34, %v6899_v8  ;;  %v914_v10 = vld [vmem:[#allocation2 + $0x118] sm:$0xff] }
 0x315   : > { %v2184_v5 = vpop.f32.mrf.mxu0  ;;  %v2473_v2 = vpop.f32.mrf.mxu1 }
 0x316   : > { %2704 = vst.msk [vmem:[#allocation2 + $0xe0] sm:$0xff] %vm2675_vm1, %v2639_v44  ;;  %v2472_v54 = vadd.f32 %v2471_v42, %v2183_v50  ;;  %v915_v5 = vld [vmem:[#allocation2 + $0x120] sm:$0xff] }
 0x317   : > { %v2187_v56 = vpop.f32.mrf.mxu0  ;;  %v2476_v62 = vpop.f32.mrf.mxu1 }
 0x318   : > { %v2640_v53 = vadd.f32 %v2472_v54, %v908_v6  ;;  %v2188_v45 = vadd.f32 %v2187_v56, %v6902_v20 }
 0x319   : > { %v2189_v55 = vpop.f32.mrf.mxu0  ;;  %v2478_v43 = vpop.f32.mrf.mxu1 }
 0x31a   : > { %2705 = vst.msk [vmem:[#allocation2 + $0xe8] sm:$0xff] %vm2675_vm1, %v2640_v53  ;;  %v2477_v9 = vadd.f32 %v2476_v62, %v2188_v45 }
 0x31b   : > { %v2190_v16 = vpop.f32.mrf.mxu0  ;;  %v2479_v58 = vpop.f32.mrf.mxu1 }
 0x31c   : > { %v2641_v8 = vadd.f32 %v2477_v9, %v909_v26  ;;  %v2191_v31 = vadd.f32 %v2190_v16, %v6905_v36  ;;  %v916_v26 = vld [vmem:[#allocation2 + $0x128] sm:$0xff] }
 0x31d   : > { %v2192_v41 = vpop.f32.mrf.mxu0  ;;  %v2481_v1 = vpop.f32.mrf.mxu1 }
 0x31e   : > { %2706 = vst.msk [vmem:[#allocation2 + $0xf0] sm:$0xff] %vm2675_vm1, %v2641_v8  ;;  %v2480_v51 = vadd.f32 %v2479_v58, %v2191_v31  ;;  %v917_v58 = vld [vmem:[#allocation2 + $0x130] sm:$0xff] }
 0x31f   : > { %v2195_v39 = vpop.f32.mrf.mxu0  ;;  %v2484_v57 = vpop.f32.mrf.mxu1 }
 0x320   : > { %v2642_v20 = vadd.f32 %v2480_v51, %v910_v48  ;;  %v2196_v30 = vadd.f32 %v2195_v39, %v6907_v47 }
 0x321   : > { %v2197_v37 = vpop.f32.mrf.mxu0  ;;  %v2486_v24 = vpop.f32.mrf.mxu1 }
 0x322   : > { %2707 = vst.msk [vmem:[#allocation2 + $0xf8] sm:$0xff] %vm2675_vm1, %v2642_v20  ;;  %v2485_v52 = vadd.f32 %v2484_v57, %v2196_v30  ;;  %v918_v30 = vld [vmem:[#allocation2 + $0x138] sm:$0xff] }
 0x323   : > { %v2198_v32 = vpop.f32.mrf.mxu0  ;;  %v2487_v25 = vpop.f32.mrf.mxu1 }
 0x324   : > { %v2643_v36 = vadd.f32 %v2485_v52, %v911_v4  ;;  %v2199_v13 = vadd.f32 %v2198_v32, %v6911_v3 }
 0x325   : > { %v2200_v19 = vpop.f32.mrf.mxu0  ;;  %v2489_v12 = vpop.f32.mrf.mxu1 }
 0x326   : > { %2708 = vst.msk [vmem:[#allocation2 + $0x100] sm:$0xff] %vm2675_vm1, %v2643_v36  ;;  %v2488_v0 = vadd.f32 %v2487_v25, %v2199_v13  ;;  %v919_v36 = vld [vmem:[#allocation2 + $0x140] sm:$0xff] }
 0x327   : > { %v2203_v61 = vpop.f32.mrf.mxu0  ;;  %v2492_v27 = vpop.f32.mrf.mxu1 }
 0x328   : > { %v2644_v47 = vadd.f32 %v2488_v0, %v912_v11  ;;  %v2204_v38 = vadd.f32 %v2203_v61, %v6914_v15  ;;  %v920_v61 = vld [vmem:[#allocation2 + $0x148] sm:$0xff] }
 0x329   : > { %v2205_v35 = vpop.f32.mrf.mxu0  ;;  %v2494_v18 = vpop.f32.mrf.mxu1 }
 0x32a   : > { %2709 = vst.msk [vmem:[#allocation2 + $0x108] sm:$0xff] %vm2675_vm1, %v2644_v47  ;;  %v2493_v29 = vadd.f32 %v2492_v27, %v2204_v38  ;;  %v921_v18 = vld [vmem:[#allocation2 + $0x150] sm:$0xff] }
 0x32b   : > { %v2206_v17 = vpop.f32.mrf.mxu0  ;;  %v2495_v63 = vpop.f32.mrf.mxu1 }
 0x32c   : > { %v2645_v3 = vadd.f32 %v2493_v29, %v913_v21  ;;  %v2207_v14 = vadd.f32 %v2206_v17, %v6917_v33 }
 0x32d   : > { %v2208_v22 = vpop.f32.mrf.mxu0  ;;  %v2497_v44 = vpop.f32.mrf.mxu1 }
 0x32e   : > { %2710 = vst.msk [vmem:[#allocation2 + $0x110] sm:$0xff] %vm2675_vm1, %v2645_v3  ;;  %v2496_v34 = vadd.f32 %v2495_v63, %v2207_v14  ;;  %v922_v44 = vld [vmem:[#allocation2 + $0x158] sm:$0xff] }
 0x32f   : > { %v2211_v50 = vpop.f32.mrf.mxu0  ;;  %v2500_v6 = vpop.f32.mrf.mxu1 }
 0x330   : > { %v2646_v15 = vadd.f32 %v2496_v34, %v914_v10  ;;  %v2212_v42 = vadd.f32 %v2211_v50, %v6919_v49  ;;  %v8059_v10 = vld [vmem:[#allocation22_spill] sm:$0xff] }
 0x331   : > { %v2213_v54 = vpop.f32.mrf.mxu0  ;;  %v2502_v56 = vpop.f32.mrf.mxu1 }
 0x332   : > { %2711 = vst.msk [vmem:[#allocation2 + $0x118] sm:$0xff] %vm2675_vm1, %v2646_v15  ;;  %v2501_v2 = vadd.f32 %v2500_v6, %v2212_v42  ;;  %v923_v56 = vld [vmem:[#allocation2 + $0x160] sm:$0xff] }
 0x333   : > { %v2214_v53 = vpop.f32.mrf.mxu0  ;;  %v2503_v62 = vpop.f32.mrf.mxu1 }
 0x334   : > { %v2647_v33 = vadd.f32 %v2501_v2, %v915_v5  ;;  %v2215_v45 = vadd.f32 %v2214_v53, %v6923_v7  ;;  %v8060_v5 = vld [vmem:[#allocation23_spill] sm:$0xff] }
 0x335   : > { %v2216_v55 = vpop.f32.mrf.mxu0  ;;  %v2505_v43 = vpop.f32.mrf.mxu1 }
 0x336   : > { %2712 = vst.msk [vmem:[#allocation2 + $0x120] sm:$0xff] %vm2675_vm1, %v2647_v33  ;;  %v2504_v9 = vadd.f32 %v2503_v62, %v2215_v45  ;;  %v8061_v55 = vld [vmem:[#allocation24_spill] sm:$0xff] }
 0x337   : > { %v2219_v16 = vpop.f32.mrf.mxu0  ;;  %v2508_v31 = vpop.f32.mrf.mxu1 }
 0x338   : > { %v2648_v49 = vadd.f32 %v2504_v9, %v916_v26  ;;  %v2220_v8 = vadd.f32 %v2219_v16, %v6926_v23  ;;  %v924_v16 = vld [vmem:[#allocation2 + $0x168] sm:$0xff] }
 0x339   : > { %v2221_v48 = vpop.f32.mrf.mxu0  ;;  %v2510_v51 = vpop.f32.mrf.mxu1 }
 0x33a   : > { %2713 = vst.msk [vmem:[#allocation2 + $0x128] sm:$0xff] %vm2675_vm1, %v2648_v49  ;;  %v2509_v41 = vadd.f32 %v2508_v31, %v2220_v8 }
 0x33b   : > { %v2222_v1 = vpop.f32.mrf.mxu0  ;;  %v2511_v20 = vpop.f32.mrf.mxu1 }
 0x33c   : > { %v2649_v7 = vadd.f32 %v2509_v41, %v917_v58  ;;  %v2223_v39 = vadd.f32 %v2222_v1, %v6929_v40  ;;  %v8062_v41 = vld [vmem:[#allocation25_spill] sm:$0xff] }
 0x33d   : > { %v2224_v57 = vpop.f32.mrf.mxu0  ;;  %v2513_v37 = vpop.f32.mrf.mxu1 }
 0x33e   : > { %2714 = vst.msk [vmem:[#allocation2 + $0x130] sm:$0xff] %vm2675_vm1, %v2649_v7  ;;  %v2512_v4 = vadd.f32 %v2511_v20, %v2223_v39  ;;  %v925_v7 = vld [vmem:[#allocation2 + $0x170] sm:$0xff]  ;;  %v8063_v37 = vld [vmem:[#allocation26_spill] sm:$0xff] }
 0x33f   : > { %v2227_v52 = vpop.f32.mrf.mxu0  ;;  %v2516_v32 = vpop.f32.mrf.mxu1 }
 0x340   : > { %v2650_v23 = vadd.f32 %v2512_v4, %v918_v30  ;;  %v2228_v24 = vadd.f32 %v2227_v52, %v6931_v60 }
 0x341   : > { %v2229_v13 = vpop.f32.mrf.mxu0  ;;  %v2518_v11 = vpop.f32.mrf.mxu1 }
 0x342   : > { %2715 = vst.msk [vmem:[#allocation2 + $0x138] sm:$0xff] %vm2675_vm1, %v2650_v23  ;;  %v2517_v25 = vadd.f32 %v2516_v32, %v2228_v24  ;;  %v926_v24 = vld [vmem:[#allocation2 + $0x178] sm:$0xff] }
 0x343   : > { %v2230_v19 = vpop.f32.mrf.mxu0  ;;  %v2519_v12 = vpop.f32.mrf.mxu1 }
 0x344   : > { %v2651_v40 = vadd.f32 %v2517_v25, %v919_v36  ;;  %v2231_v0 = vadd.f32 %v2230_v19, %v6935_v28  ;;  %v8064_v19 = vld [vmem:[#allocation27_spill] sm:$0xff] }
 0x345   : > { %v2232_v47 = vpop.f32.mrf.mxu0  ;;  %v2521_v27 = vpop.f32.mrf.mxu1 }
 0x346   : > { %2716 = vst.msk [vmem:[#allocation2 + $0x140] sm:$0xff] %vm2675_vm1, %v2651_v40  ;;  %v2520_v38 = vadd.f32 %v2519_v12, %v2231_v0  ;;  %v927_v12 = vld [vmem:[#allocation2 + $0x180] sm:$0xff] }
 0x347   : > { %v2235_v21 = vpop.f32.mrf.mxu0  ;;  %v2524_v29 = vpop.f32.mrf.mxu1 }
 0x348   : > { %v2652_v60 = vadd.f32 %v2520_v38, %v920_v61  ;;  %v2236_v35 = vadd.f32 %v2235_v21, %v6938_v46 }
 0x349   : > { %v2237_v17 = vpop.f32.mrf.mxu0  ;;  %v2526_v14 = vpop.f32.mrf.mxu1 }
 0x34a   : > { %2717 = vst.msk [vmem:[#allocation2 + $0x148] sm:$0xff] %vm2675_vm1, %v2652_v60  ;;  %v2525_v3 = vadd.f32 %v2524_v29, %v2236_v35  ;;  %v8065_v60 = vld [vmem:[#allocation28_spill] sm:$0xff] }
 0x34b   : > { %v2238_v63 = vpop.f32.mrf.mxu0  ;;  %v2527_v34 = vpop.f32.mrf.mxu1 }
 0x34c   : > { %v2653_v28 = vadd.f32 %v2525_v3, %v921_v18  ;;  %v2239_v22 = vadd.f32 %v2238_v63, %v8059_v10  ;;  %v928_v18 = vld [vmem:[#allocation2 + $0x188] sm:$0xff]  ;;  %v8066_v10 = vld [vmem:[#allocation29_spill] sm:$0xff] }
 0x34d   : > { %v2240_v50 = vpop.f32.mrf.mxu0  ;;  %v2529_v42 = vpop.f32.mrf.mxu1 }
 0x34e   : > { %2718 = vst.msk [vmem:[#allocation2 + $0x150] sm:$0xff] %vm2675_vm1, %v2653_v28  ;;  %v2528_v15 = vadd.f32 %v2527_v34, %v2239_v22 }
 0x34f   : > { %v2243_v6 = vpop.f32.mrf.mxu0  ;;  %v2532_v2 = vpop.f32.mrf.mxu1 }
 0x350   : > { %v2654_v46 = vadd.f32 %v2528_v15, %v922_v44  ;;  %v2244_v54 = vadd.f32 %v2243_v6, %v8060_v5  ;;  %v929_v44 = vld [vmem:[#allocation2 + $0x190] sm:$0xff]  ;;  %v8067_v5 = vld [vmem:[#allocation30_spill] sm:$0xff] }
 0x351   : > { %v2245_v53 = vpop.f32.mrf.mxu0  ;;  %v2534_v45 = vpop.f32.mrf.mxu1 }
 0x352   : > { %2719 = vst.msk [vmem:[#allocation2 + $0x158] sm:$0xff] %vm2675_vm1, %v2654_v46  ;;  %v2533_v33 = vadd.f32 %v2532_v2, %v2244_v54 }
 0x353   : > { %v2246_v62 = vpop.f32.mrf.mxu0  ;;  %v2535_v43 = vpop.f32.mrf.mxu1 }
 0x354   : > { %v2655_v26 = vadd.f32 %v2533_v33, %v923_v56  ;;  %v2247_v9 = vadd.f32 %v2246_v62, %v8061_v55  ;;  %v930_v56 = vld [vmem:[#allocation2 + $0x198] sm:$0xff]  ;;  %v8068_v55 = vld [vmem:[#allocation31_spill] sm:$0xff] }
 0x355   : > { %v2248_v49 = vpop.f32.mrf.mxu0  ;;  %v2537_v31 = vpop.f32.mrf.mxu1 }
 0x356   : > { %2720 = vst.msk [vmem:[#allocation2 + $0x160] sm:$0xff] %vm2675_vm1, %v2655_v26  ;;  %v2536_v8 = vadd.f32 %v2535_v43, %v2247_v9 }
 0x357   : > { %v2251_v58 = vpop.f32.mrf.mxu0  ;;  %v2540_v1 = vpop.f32.mrf.mxu1 }
 0x358   : > { %v2656_v48 = vadd.f32 %v2536_v8, %v924_v16  ;;  %v2252_v51 = vadd.f32 %v2251_v58, %v8062_v41  ;;  %v931_v16 = vld [vmem:[#allocation2 + $0x1a0] sm:$0xff]  ;;  %v8069_v41 = vld [vmem:[#allocation32_spill] sm:$0xff] }
 0x359   : > { %v2253_v39 = vpop.f32.mrf.mxu0  ;;  %v2542_v30 = vpop.f32.mrf.mxu1 }
 0x35a   : > { %2721 = vst.msk [vmem:[#allocation2 + $0x168] sm:$0xff] %vm2675_vm1, %v2656_v48  ;;  %v2541_v20 = vadd.f32 %v2540_v1, %v2252_v51 }
 0x35b   : > { %v2254_v57 = vpop.f32.mrf.mxu0  ;;  %v2543_v23 = vpop.f32.mrf.mxu1 }
 0x35c   : > { %v2657_v4 = vadd.f32 %v2541_v20, %v925_v7  ;;  %v2255_v52 = vadd.f32 %v2254_v57, %v8063_v37  ;;  %v932_v7 = vld [vmem:[#allocation2 + $0x1a8] sm:$0xff]  ;;  %v8070_v37 = vld [vmem:[#allocation33_spill] sm:$0xff] }
 0x35d   : > { %v2256_v32 = vpop.f32.mrf.mxu0  ;;  %v2545_v13 = vpop.f32.mrf.mxu1 }
 0x35e   : > { %2722 = vst.msk [vmem:[#allocation2 + $0x170] sm:$0xff] %vm2675_vm1, %v2657_v4  ;;  %v2544_v36 = vadd.f32 %v2543_v23, %v2255_v52 }
 0x35f   : > { %v2259_v25 = vpop.f32.mrf.mxu0  ;;  %v2548_v0 = vpop.f32.mrf.mxu1 }
 0x360   : > { %v2658_v11 = vadd.f32 %v2544_v36, %v926_v24  ;;  %v2260_v40 = vadd.f32 %v2259_v25, %v8064_v19  ;;  %v933_v24 = vld [vmem:[#allocation2 + $0x1b0] sm:$0xff]  ;;  %v8071_v19 = vld [vmem:[#allocation34_spill] sm:$0xff] }
 0x361   : > { %v2261_v61 = vpop.f32.mrf.mxu0  ;;  %v2550_v38 = vpop.f32.mrf.mxu1 }
 0x362   : > { %2723 = vst.msk [vmem:[#allocation2 + $0x178] sm:$0xff] %vm2675_vm1, %v2658_v11  ;;  %v2549_v47 = vadd.f32 %v2548_v0, %v2260_v40 }
 0x363   : > { %v2262_v27 = vpop.f32.mrf.mxu0  ;;  %v2551_v29 = vpop.f32.mrf.mxu1 }
 0x364   : > { %v2659_v21 = vadd.f32 %v2549_v47, %v927_v12  ;;  %v2263_v35 = vadd.f32 %v2262_v27, %v8065_v60  ;;  %v934_v12 = vld [vmem:[#allocation2 + $0x1b8] sm:$0xff]  ;;  %v8072_v60 = vld [vmem:[#allocation35_spill] sm:$0xff] }
 0x365   : > { %v2264_v17 = vpop.f32.mrf.mxu0  ;;  %v2553_v14 = vpop.f32.mrf.mxu1 }
 0x366   : > { %2724 = vst.msk [vmem:[#allocation2 + $0x180] sm:$0xff] %vm2675_vm1, %v2659_v21  ;;  %v2552_v3 = vadd.f32 %v2551_v29, %v2263_v35 }
 0x367   : > { %v2267_v63 = vpop.f32.mrf.mxu0  ;;  %v2556_v34 = vpop.f32.mrf.mxu1 }
 0x368   : > { %v2660_v28 = vadd.f32 %v2552_v3, %v928_v18  ;;  %v2268_v22 = vadd.f32 %v2267_v63, %v8066_v10  ;;  %v935_v18 = vld [vmem:[#allocation2 + $0x1c0] sm:$0xff]  ;;  %v8073_v10 = vld [vmem:[#allocation36_spill] sm:$0xff] }
 0x369   : > { %v2269_v50 = vpop.f32.mrf.mxu0  ;;  %v2558_v42 = vpop.f32.mrf.mxu1 }
 0x36a   : > { %2725 = vst.msk [vmem:[#allocation2 + $0x188] sm:$0xff] %vm2675_vm1, %v2660_v28  ;;  %v2557_v15 = vadd.f32 %v2556_v34, %v2268_v22 }
 0x36b   : > { %v2270_v6 = vpop.f32.mrf.mxu0  ;;  %v2559_v2 = vpop.f32.mrf.mxu1 }
 0x36c   : > { %v2661_v46 = vadd.f32 %v2557_v15, %v929_v44  ;;  %v2271_v54 = vadd.f32 %v2270_v6, %v8067_v5  ;;  %v936_v44 = vld [vmem:[#allocation2 + $0x1c8] sm:$0xff]  ;;  %v8074_v5 = vld [vmem:[#allocation37_spill] sm:$0xff] }
 0x36d   : > { %v2272_v53 = vpop.f32.mrf.mxu0  ;;  %v2561_v45 = vpop.f32.mrf.mxu1 }
 0x36e   : > { %2726 = vst.msk [vmem:[#allocation2 + $0x190] sm:$0xff] %vm2675_vm1, %v2661_v46  ;;  %v2560_v33 = vadd.f32 %v2559_v2, %v2271_v54 }
 0x36f   : > { %v2275_v62 = vpop.f32.mrf.mxu0  ;;  %v2564_v43 = vpop.f32.mrf.mxu1 }
 0x370   : > { %v2662_v26 = vadd.f32 %v2560_v33, %v930_v56  ;;  %v2276_v9 = vadd.f32 %v2275_v62, %v8068_v55  ;;  %v937_v56 = vld [vmem:[#allocation2 + $0x1d0] sm:$0xff]  ;;  %v8075_v55 = vld [vmem:[#allocation38_spill] sm:$0xff] }
 0x371   : > { %v2277_v49 = vpop.f32.mrf.mxu0  ;;  %v2566_v31 = vpop.f32.mrf.mxu1 }
 0x372   : > { %2727 = vst.msk [vmem:[#allocation2 + $0x198] sm:$0xff] %vm2675_vm1, %v2662_v26  ;;  %v2565_v8 = vadd.f32 %v2564_v43, %v2276_v9 }
 0x373   : > { %v2278_v58 = vpop.f32.mrf.mxu0  ;;  %v2567_v1 = vpop.f32.mrf.mxu1 }
 0x374   : > { %v2663_v48 = vadd.f32 %v2565_v8, %v931_v16  ;;  %v2279_v51 = vadd.f32 %v2278_v58, %v8069_v41  ;;  %v938_v16 = vld [vmem:[#allocation2 + $0x1d8] sm:$0xff]  ;;  %v8076_v41 = vld [vmem:[#allocation39_spill] sm:$0xff] }
 0x375   : > { %v2280_v39 = vpop.f32.mrf.mxu0  ;;  %v2569_v30 = vpop.f32.mrf.mxu1 }
 0x376   : > { %2728 = vst.msk [vmem:[#allocation2 + $0x1a0] sm:$0xff] %vm2675_vm1, %v2663_v48  ;;  %v2568_v20 = vadd.f32 %v2567_v1, %v2279_v51 }
 0x377   : > { %v2283_v57 = vpop.f32.mrf.mxu0  ;;  %v2572_v23 = vpop.f32.mrf.mxu1 }
 0x378   : > { %v2664_v4 = vadd.f32 %v2568_v20, %v932_v7  ;;  %v2284_v52 = vadd.f32 %v2283_v57, %v8070_v37  ;;  %v939_v7 = vld [vmem:[#allocation2 + $0x1e0] sm:$0xff]  ;;  %v8077_v37 = vld [vmem:[#allocation40_spill] sm:$0xff] }
 0x379   : > { %v2285_v32 = vpop.f32.mrf.mxu0  ;;  %v2574_v13 = vpop.f32.mrf.mxu1 }
 0x37a   : > { %2729 = vst.msk [vmem:[#allocation2 + $0x1a8] sm:$0xff] %vm2675_vm1, %v2664_v4  ;;  %v2573_v36 = vadd.f32 %v2572_v23, %v2284_v52 }
 0x37b   : > { %v2286_v25 = vpop.f32.mrf.mxu0  ;;  %v2575_v0 = vpop.f32.mrf.mxu1 }
 0x37c   : > { %v2665_v11 = vadd.f32 %v2573_v36, %v933_v24  ;;  %v2287_v40 = vadd.f32 %v2286_v25, %v8071_v19  ;;  %v940_v24 = vld [vmem:[#allocation2 + $0x1e8] sm:$0xff]  ;;  %v8078_v19 = vld [vmem:[#allocation41_spill] sm:$0xff] }
 0x37d   : > { %v2288_v61 = vpop.f32.mrf.mxu0  ;;  %v2577_v38 = vpop.f32.mrf.mxu1 }
 0x37e   : > { %2730 = vst.msk [vmem:[#allocation2 + $0x1b0] sm:$0xff] %vm2675_vm1, %v2665_v11  ;;  %v2576_v47 = vadd.f32 %v2575_v0, %v2287_v40 }
 0x37f   : > { %v2291_v27 = vpop.f32.mrf.mxu0  ;;  %v2580_v29 = vpop.f32.mrf.mxu1 }
 0x380   : > { %v2666_v21 = vadd.f32 %v2576_v47, %v934_v12  ;;  %v2292_v35 = vadd.f32 %v2291_v27, %v8072_v60  ;;  %v941_v12 = vld [vmem:[#allocation2 + $0x1f0] sm:$0xff] }
 0x381   : > { %v2293_v17 = vpop.f32.mrf.mxu0  ;;  %v2582_v14 = vpop.f32.mrf.mxu1 }
 0x382   : > { %2731 = vst.msk [vmem:[#allocation2 + $0x1b8] sm:$0xff] %vm2675_vm1, %v2666_v21  ;;  %v2581_v3 = vadd.f32 %v2580_v29, %v2292_v35  ;;  %v942_v29 = vld [vmem:[#allocation2 + $0x1f8] sm:$0xff] }
 0x383   : > { %v2294_v63 = vpop.f32.mrf.mxu0  ;;  %v2583_v34 = vpop.f32.mrf.mxu1 }
 0x384   : > { %v2667_v28 = vadd.f32 %v2581_v3, %v935_v18  ;;  %v2295_v22 = vadd.f32 %v2294_v63, %v8073_v10 }
 0x385   : > { %v2296_v50 = vpop.f32.mrf.mxu0  ;;  %v2585_v42 = vpop.f32.mrf.mxu1 }
 0x386   : > { %2732 = vst.msk [vmem:[#allocation2 + $0x1c0] sm:$0xff] %vm2675_vm1, %v2667_v28  ;;  %v2584_v15 = vadd.f32 %v2583_v34, %v2295_v22 }
 0x387   : > { %v2299_v6 = vpop.f32.mrf.mxu0  ;;  %v2588_v2 = vpop.f32.mrf.mxu1 }
 0x388   : > { %v2668_v46 = vadd.f32 %v2584_v15, %v936_v44  ;;  %v2300_v54 = vadd.f32 %v2299_v6, %v8074_v5 }
 0x389   : > { %v2301_v53 = vpop.f32.mrf.mxu0  ;;  %v2590_v45 = vpop.f32.mrf.mxu1 }
 0x38a   : > { %2733 = vst.msk [vmem:[#allocation2 + $0x1c8] sm:$0xff] %vm2675_vm1, %v2668_v46  ;;  %v2589_v33 = vadd.f32 %v2588_v2, %v2300_v54 }
 0x38b   : > { %v2302_v62 = vpop.f32.mrf.mxu0  ;;  %v2591_v43 = vpop.f32.mrf.mxu1 }
 0x38c   : > { %v2669_v26 = vadd.f32 %v2589_v33, %v937_v56  ;;  %v2303_v9 = vadd.f32 %v2302_v62, %v8075_v55 }
 0x38d   : > { %v2304_v49 = vpop.f32.mrf.mxu0  ;;  %v2593_v31 = vpop.f32.mrf.mxu1 }
 0x38e   : > { %2734 = vst.msk [vmem:[#allocation2 + $0x1d0] sm:$0xff] %vm2675_vm1, %v2669_v26  ;;  %v2592_v8 = vadd.f32 %v2591_v43, %v2303_v9 }
 0x38f   : > { %v2307_v58 = vpop.f32.mrf.mxu0  ;;  %v2596_v1 = vpop.f32.mrf.mxu1 }
 0x390   : > { %v2670_v48 = vadd.f32 %v2592_v8, %v938_v16  ;;  %v2308_v51 = vadd.f32 %v2307_v58, %v8076_v41 }
 0x391   : > { %v2309_v39 = vpop.f32.mrf.mxu0  ;;  %v2598_v30 = vpop.f32.mrf.mxu1 }
 0x392   : > { %2735 = vst.msk [vmem:[#allocation2 + $0x1d8] sm:$0xff] %vm2675_vm1, %v2670_v48  ;;  %v2597_v20 = vadd.f32 %v2596_v1, %v2308_v51 }
 0x393   : > { %v2310_v57 = vpop.f32.mrf.mxu0  ;;  %v2599_v23 = vpop.f32.mrf.mxu1 }
 0x394   : > { %v2671_v4 = vadd.f32 %v2597_v20, %v939_v7  ;;  %v2311_v52 = vadd.f32 %v2310_v57, %v8077_v37 }
 0x395   : > { %v2312_v32 = vpop.f32.mrf.mxu0  ;;  %v2601_v13 = vpop.f32.mrf.mxu1 }
 0x396   : > { %2736 = vst.msk [vmem:[#allocation2 + $0x1e0] sm:$0xff] %vm2675_vm1, %v2671_v4  ;;  %v2600_v36 = vadd.f32 %v2599_v23, %v2311_v52 }
 0x397   : > { %v2315_v25 = vpop.f32.mrf.mxu0  ;;  %v2604_v0 = vpop.f32.mrf.mxu1 }
 0x398   : > { %v2672_v11 = vadd.f32 %v2600_v36, %v940_v24  ;;  %v2316_v40 = vadd.f32 %v2315_v25, %v8078_v19 }
 0x399   : > { %v2317_v61 = vpop.f32.mrf.mxu0  ;;  %v2606_v38 = vpop.f32.mrf.mxu1 }
 0x39a   : > { %2737 = vst.msk [vmem:[#allocation2 + $0x1e8] sm:$0xff] %vm2675_vm1, %v2672_v11  ;;  %v2605_v47 = vadd.f32 %v2604_v0, %v2316_v40 }
 0x39b   : > { %v2318_v27 = vpop.f32.mrf.mxu0  ;;  %v2607_v35 = vpop.f32.mrf.mxu1 }
 0x39c   : > { %v2673_v21 = vadd.f32 %v2605_v47, %v941_v12  ;;  %v2319_v60 = vadd.f32 %v2318_v27, %v7001_v59 }
 0x39d   : > { %v2320_v18 = vpop.f32.mrf.mxu0  ;;  %v2609_v3 = vpop.f32.mrf.mxu1 }
 0x39e   : > { %2738 = vst.msk [vmem:[#allocation2 + $0x1f0] sm:$0xff] %vm2675_vm1, %v2673_v21  ;;  %v2608_v17 = vadd.f32 %v2607_v35, %v2319_v60  ;;  %2743 = sbr.rel (%p5478_p12) target bundleno = 1521 (0x5f1), region = 72 }
 0x3a0   : > { %v2674_v14 = vadd.f32 %v2608_v17, %v942_v29 }
 0x3a2   : > { %2739 = vst.msk [vmem:[#allocation2 + $0x1f8] sm:$0xff] %vm2675_vm1, %v2674_v14 }
 0x3a3   : > { %v2746_v59 = vld [vmem:[%s6490_s11 + $0x10] sm:$0xff]  ;;  %v2744_v63 = vld [vmem:[%s6490_s11] sm:$0xff]  ;;  %v8010_v28 = vmov 0   ;;  %v2747_v10 = vld [vmem:[%s6490_s11 + $0x18] sm:$0xff] }
 0x3a4   : > { %5936 = vset.pattern.permute.xlu1 %v8010_v28  ;;  %5935 = vset.pattern.permute.xlu0 %v8010_v28  ;;  %v2745_v22 = vld [vmem:[%s6490_s11 + $0x8] sm:$0xff]  ;;  %v2748_v44 = vld [vmem:[%s6490_s11 + $0x20] sm:$0xff]  ;;  %v2751_v50 = vld [vmem:[%s6490_s11 + $0x38] sm:$0xff] }
 0x3a5   : > { %2884 = vperm.xlu1 %5936, %v2746_v59   ;;  %2874 = vperm.xlu0 %5935, %v2744_v63   ;;  %v2749_v34 = vld [vmem:[%s6490_s11 + $0x28] sm:$0xff]  ;;  %v2750_v15 = vld [vmem:[%s6490_s11 + $0x30] sm:$0xff]  ;;  %v2752_v6 = vld [vmem:[%s6490_s11 + $0x40] sm:$0xff] }
 0x3a6   : > { %3696 = vmatprep.mubr.bf16.mxu0 %v8010_v28  ;;  %4185 = vmatprep.mubr.bf16.mxu1 %v8010_v28  ;;  %v2753_v42 = vld [vmem:[%s6490_s11 + $0x48] sm:$0xff]  ;;  %v2755_v46 = vld [vmem:[%s6490_s11 + $0x58] sm:$0xff]  ;;  %v2754_v5 = vld [vmem:[%s6490_s11 + $0x50] sm:$0xff] }
 0x3a7   : > { %v5937_v54 = vld [vmem:[#allocation8 + $0x34] ss:$8 sps:$4 sm:$0xff]   ;;  %v5939_v2 = vld [vmem:[#allocation8 + $0x30] ss:$8 sps:$4 sm:$0xff]   ;;  %v2757_v56 = vld [vmem:[%s6490_s11 + $0x68] sm:$0xff] }
 0x3a8   : > { %3672 = vmatprep.subr.bf16.mxu0 %v5937_v54  ;;  %v5940_v53 = vld [vmem:[#allocation8 + $0x24] ss:$8 sps:$4 sm:$0xff]   ;;  %v5943_v33 = vld [vmem:[#allocation6 + $0x34] ss:$8 sps:$4 sm:$0xff]   ;;  %v5942_v62 = vld [vmem:[#allocation8 + $0x20] ss:$8 sps:$4 sm:$0xff]  }
 0x3a9   : > { %2889 = vperm.xlu1 %5936, %v2747_v10   ;;  %2879 = vperm.xlu0 %5935, %v2745_v22   ;;  %v2756_v45 = vld [vmem:[%s6490_s11 + $0x60] sm:$0xff]  ;;  %v5945_v26 = vld [vmem:[#allocation6 + $0x30] ss:$8 sps:$4 sm:$0xff]   ;;  %v5946_v55 = vld [vmem:[#allocation8 + $0x14] ss:$8 sps:$4 sm:$0xff]  }
 0x3aa   : > { %3673 = vmatpush1.bf16.msra.mxu0 %v5939_v2  ;;  %4161 = vmatprep.subr.bf16.mxu1 %v5943_v33  ;;  %v2759_v9 = vld [vmem:[%s6490_s11 + $0x78] sm:$0xff]  ;;  %v2758_v43 = vld [vmem:[%s6490_s11 + $0x70] sm:$0xff]  ;;  %v5949_v49 = vld [vmem:[#allocation6 + $0x24] ss:$8 sps:$4 sm:$0xff]  }
 0x3ab   : > { %3674 = vmatprep.subr.bf16.mxu0 %v5940_v53  ;;  %4162 = vmatpush1.bf16.msra.mxu1 %v5945_v26  ;;  %v5948_v16 = vld [vmem:[#allocation8 + $0x10] ss:$8 sps:$4 sm:$0xff]   ;;  %v5951_v8 = vld [vmem:[#allocation6 + $0x20] ss:$8 sps:$4 sm:$0xff]   ;;  %v5952_v31 = vld [vmem:[#allocation8 + $0x4] ss:$8 sps:$4 sm:$0xff]  }
 0x3ac   : > { %4163 = vmatprep.subr.bf16.mxu1 %v5949_v49  ;;  %v2761_v58 = vld [vmem:[%s6490_s11 + $0x88] sm:$0xff]  ;;  %v2760_v48 = vld [vmem:[%s6490_s11 + $0x80] sm:$0xff]  ;;  %v5955_v51 = vld [vmem:[#allocation6 + $0x14] ss:$8 sps:$4 sm:$0xff]  }
 0x3ad   : > { %2899 = vperm.xlu1 %5936, %v2749_v34   ;;  %2894 = vperm.xlu0 %5935, %v2748_v44   ;;  %v5954_v41 = vld [vmem:[#allocation8] ss:$8 sps:$4 sm:$0xff]   ;;  %v5957_v1 = vld [vmem:[#allocation6 + $0x10] ss:$8 sps:$4 sm:$0xff]   ;;  %v5959_v7 = vld [vmem:[#allocation6 + $0x4] ss:$8 sps:$4 sm:$0xff]  }
 0x3ae   : > { %3675 = vmatpush1.bf16.msra.mxu0 %v5942_v62  ;;  %v2763_v39 = vld [vmem:[%s6490_s11 + $0x98] sm:$0xff]  ;;  %v2762_v20 = vld [vmem:[%s6490_s11 + $0x90] sm:$0xff]  ;;  %v5961_v30 = vld [vmem:[#allocation6] ss:$8 sps:$4 sm:$0xff]  }
 0x3af   : > { %3676 = vmatprep.subr.bf16.mxu0 %v5946_v55  ;;  %4164 = vmatpush1.bf16.msra.mxu1 %v5951_v8  ;;  %v5958_v57 = vld [vmem:[%s6485_s9] sm:$0xff]   ;;  %v2765_v4 = vld [vmem:[%s6490_s11 + $0xa8] sm:$0xff]  ;;  %v2767_v52 = vld [vmem:[%s6490_s11 + $0xb8] sm:$0xff] }
 0x3b0   : > { %4165 = vmatprep.subr.bf16.mxu1 %v5955_v51  ;;  %v2764_v37 = vld [vmem:[%s6490_s11 + $0xa0] sm:$0xff]  ;;  %v2766_v23 = vld [vmem:[%s6490_s11 + $0xb0] sm:$0xff]  ;;  %v5962_v24 = vld [vmem:[%s6485_s9 + $0x8] sm:$0xff]  }
 0x3b1   : > { %2909 = vperm.xlu1 %5936, %v2751_v50   ;;  %2904 = vperm.xlu0 %5935, %v2750_v15   ;;  %v2769_v32 = vld [vmem:[%s6490_s11 + $0xc8] sm:$0xff]  ;;  %v2768_v36 = vld [vmem:[%s6490_s11 + $0xc0] sm:$0xff]  ;;  %v2771_v13 = vld [vmem:[%s6490_s11 + $0xd8] sm:$0xff] }
 0x3b2   : > { %3677 = vmatpush1.bf16.msra.mxu0 %v5948_v16  ;;  %v2770_v25 = vld [vmem:[%s6490_s11 + $0xd0] sm:$0xff]  ;;  %v2773_v19 = vld [vmem:[%s6490_s11 + $0xe8] sm:$0xff]  ;;  %v2772_v40 = vld [vmem:[%s6490_s11 + $0xe0] sm:$0xff] }
 0x3b3   : > { %3678 = vmatprep.subr.bf16.mxu0 %v5952_v31  ;;  %4166 = vmatpush1.bf16.msra.mxu1 %v5957_v1  ;;  %v5963_v11 = vld [vmem:[%s6485_s9 + $0x10] sm:$0xff]   ;;  %v2775_v0 = vld [vmem:[%s6490_s11 + $0xf8] sm:$0xff]  ;;  %v2777_v47 = vld [vmem:[%s6490_s11 + $0x108] sm:$0xff] }
 0x3b4   : > { %4167 = vmatprep.subr.bf16.mxu1 %v5959_v7  ;;  %v2774_v12 = vld [vmem:[%s6490_s11 + $0xf0] sm:$0xff]  ;;  %v5964_v61 = vld [vmem:[%s6485_s9 + $0x18] sm:$0xff]   ;;  %v2776_v38 = vld [vmem:[%s6490_s11 + $0x100] sm:$0xff] }
 0x3b5   : > { %2919 = vperm.xlu1 %5936, %v2753_v42   ;;  %2914 = vperm.xlu0 %5935, %v2752_v6   ;;  %v2779_v27 = vld [vmem:[%s6490_s11 + $0x118] sm:$0xff]  ;;  %v2778_v21 = vld [vmem:[%s6490_s11 + $0x110] sm:$0xff]  ;;  %v5965_v60 = vld [vmem:[%s6485_s9 + $0x20] sm:$0xff]  }
 0x3b6   : > { %3679 = vmatpush1.bf16.msra.mxu0 %v5954_v41  ;;  %v2781_v35 = vld [vmem:[%s6490_s11 + $0x128] sm:$0xff]  ;;  %v2780_v29 = vld [vmem:[%s6490_s11 + $0x120] sm:$0xff]  ;;  %v2783_v18 = vld [vmem:[%s6490_s11 + $0x138] sm:$0xff] }
 0x3b7   : > { %4168 = vmatpush1.bf16.msra.mxu1 %v5961_v30  ;;  %v2782_v17 = vld [vmem:[%s6490_s11 + $0x130] sm:$0xff]  ;;  %v5966_v3 = vld [vmem:[%s6485_s9 + $0x28] sm:$0xff]   ;;  %v2784_v59 = vld [vmem:[%s6490_s11 + $0x140] sm:$0xff] }
 0x3b8   : > { %v2785_v14 = vld [vmem:[%s6490_s11 + $0x148] sm:$0xff]  ;;  %v2787_v63 = vld [vmem:[%s6490_s11 + $0x158] sm:$0xff]  ;;  %v2786_v10 = vld [vmem:[%s6490_s11 + $0x150] sm:$0xff] }
 0x3b9   : > { %2929 = vperm.xlu1 %5936, %v2755_v46   ;;  %2924 = vperm.xlu0 %5935, %v2754_v5   ;;  %v5967_v22 = vld [vmem:[%s6485_s9 + $0x30] sm:$0xff]   ;;  %v2789_v34 = vld [vmem:[%s6490_s11 + $0x168] sm:$0xff]  ;;  %v2788_v44 = vld [vmem:[%s6490_s11 + $0x160] sm:$0xff] }
 0x3ba   : > { %5519 = vmatmul.mubr.msk.bf16.vlgmr.msra.gmra.mxu0 %vm2675_vm1, %v5958_v57  ;;  %v2791_v50 = vld [vmem:[%s6490_s11 + $0x178] sm:$0xff]  ;;  %v2790_v15 = vld [vmem:[%s6490_s11 + $0x170] sm:$0xff]  ;;  %v2793_v6 = vld [vmem:[%s6490_s11 + $0x188] sm:$0xff] }
 0x3bb   : > { %3706 = vmatprep.mubr.bf16.mxu0 %v8010_v28  ;;  %v5968_v42 = vld [vmem:[%s6485_s9 + $0x38] sm:$0xff]   ;;  %v2792_v46 = vld [vmem:[%s6490_s11 + $0x180] sm:$0xff]  ;;  %v2794_v54 = vld [vmem:[%s6490_s11 + $0x190] sm:$0xff] }
 0x3bc   : > { %v2795_v5 = vld [vmem:[%s6490_s11 + $0x198] sm:$0xff]  ;;  %v5969_v2 = vld [vmem:[%s6485_s9 + $0x40] sm:$0xff]   ;;  %v5970_v62 = vld [vmem:[%s6485_s9 + $0x48] sm:$0xff]  }
 0x3bd   : > { %2939 = vperm.xlu1 %5936, %v2757_v56   ;;  %2934 = vperm.xlu0 %5935, %v2756_v45   ;;  %v2797_v56 = vld [vmem:[%s6490_s11 + $0x1a8] sm:$0xff]  ;;  %v2796_v53 = vld [vmem:[%s6490_s11 + $0x1a0] sm:$0xff]  ;;  %v2799_v33 = vld [vmem:[%s6490_s11 + $0x1b8] sm:$0xff] }
 0x3be   : > { %v2798_v45 = vld [vmem:[%s6490_s11 + $0x1b0] sm:$0xff]  ;;  %v2801_v26 = vld [vmem:[%s6490_s11 + $0x1c8] sm:$0xff]  ;;  %v2800_v55 = vld [vmem:[%s6490_s11 + $0x1c0] sm:$0xff] }
 0x3bf   : > { %v5971_v16 = vld [vmem:[%s6485_s9 + $0x50] sm:$0xff]   ;;  %v2805_v49 = vld [vmem:[%s6490_s11 + $0x1e8] sm:$0xff]  ;;  %v2804_v8 = vld [vmem:[%s6490_s11 + $0x1e0] sm:$0xff] }
 0x3c0   : > { %v2807_v31 = vld [vmem:[%s6490_s11 + $0x1f8] sm:$0xff]  ;;  %v2808_v51 = vld [vmem:[#allocation2] sm:$0xff]  ;;  %v2809_v1 = vld [vmem:[#allocation2 + $0x8] sm:$0xff] }
 0x3c1   : > { %2949 = vperm.xlu1 %5936, %v2759_v9   ;;  %2944 = vperm.xlu0 %5935, %v2758_v43   ;;  %v2803_v9 = vld [vmem:[%s6490_s11 + $0x1d8] sm:$0xff]  ;;  %v2802_v43 = vld [vmem:[%s6490_s11 + $0x1d0] sm:$0xff]  ;;  %v5973_v57 = vld [vmem:[%s6485_s9 + $0x60] sm:$0xff]  }
 0x3c2   : > { %5520 = vmatmul.mubr.msk.bf16.gmra.mxu0 %vm2675_vm1, %v5962_v24 }
 0x3c3   : > { %3716 = vmatprep.mubr.bf16.mxu0 %v8010_v28 }
 0x3c5   : > { %2959 = vperm.xlu1 %5936, %v2761_v58   ;;  %2954 = vperm.xlu0 %5935, %v2760_v48   ;;  %v2806_v58 = vld [vmem:[%s6490_s11 + $0x1f0] sm:$0xff]  ;;  %v5972_v48 = vld [vmem:[%s6485_s9 + $0x58] sm:$0xff]  }
 0x3c9   : > { %2969 = vperm.xlu1 %5936, %v2763_v39   ;;  %2964 = vperm.xlu0 %5935, %v2762_v20  }
 0x3ca   : > { %5521 = vmatmul.mubr.msk.bf16.gmra.mxu0 %vm2675_vm1, %v5963_v11 }
 0x3cb   : > { %3726 = vmatprep.mubr.bf16.mxu0 %v8010_v28 }
 0x3cd   : > { %2979 = vperm.xlu1 %5936, %v2765_v4   ;;  %2974 = vperm.xlu0 %5935, %v2764_v37   ;;  %v2810_v37 = vld [vmem:[#allocation2 + $0x10] sm:$0xff] }
 0x3d1   : > { %2989 = vperm.xlu1 %5936, %v2767_v52   ;;  %2984 = vperm.xlu0 %5935, %v2766_v23   ;;  %v2811_v52 = vld [vmem:[#allocation2 + $0x18] sm:$0xff] }
 0x3d2   : > { %5522 = vmatmul.mubr.msk.bf16.gmra.mxu0 %vm2675_vm1, %v5964_v61  ;;  %v5975_v61 = vld [vmem:[%s6485_s9 + $0x70] sm:$0xff]  }
 0x3d3   : > { %3736 = vmatprep.mubr.bf16.mxu0 %v8010_v28 }
 0x3d5   : > { %2999 = vperm.xlu1 %5936, %v2769_v32   ;;  %2994 = vperm.xlu0 %5935, %v2768_v36   ;;  %v5974_v36 = vld [vmem:[%s6485_s9 + $0x68] sm:$0xff]  }
 0x3d9   : > { %3009 = vperm.xlu1 %5936, %v2771_v13   ;;  %3004 = vperm.xlu0 %5935, %v2770_v25   ;;  %v2813_v25 = vld [vmem:[#allocation2 + $0x28] sm:$0xff] }
 0x3da   : > { %5523 = vmatmul.mubr.msk.bf16.gmra.mxu0 %vm2675_vm1, %v5965_v60 }
 0x3db   : > { %3746 = vmatprep.mubr.bf16.mxu0 %v8010_v28 }
 0x3dd   : > { %3019 = vperm.xlu1 %5936, %v2773_v19   ;;  %3014 = vperm.xlu0 %5935, %v2772_v40   ;;  %v2812_v19 = vld [vmem:[#allocation2 + $0x20] sm:$0xff] }
 0x3e1   : > { %3029 = vperm.xlu1 %5936, %v2775_v0   ;;  %3024 = vperm.xlu0 %5935, %v2774_v12  }
 0x3e2   : > { %5524 = vmatmul.mubr.msk.bf16.gmra.mxu0 %vm2675_vm1, %v5966_v3  ;;  %v2817_v3 = vld [vmem:[#allocation2 + $0x48] sm:$0xff] }
 0x3e3   : > { %3756 = vmatprep.mubr.bf16.mxu0 %v8010_v28 }
 0x3e5   : > { %3039 = vperm.xlu1 %5936, %v2777_v47   ;;  %3034 = vperm.xlu0 %5935, %v2776_v38   ;;  %v2815_v38 = vld [vmem:[#allocation2 + $0x38] sm:$0xff] }
 0x3e9   : > { %3049 = vperm.xlu1 %5936, %v2779_v27   ;;  %3044 = vperm.xlu0 %5935, %v2778_v21   ;;  %v2814_v21 = vld [vmem:[#allocation2 + $0x30] sm:$0xff] }
 0x3ea   : > { %5525 = vmatmul.mubr.msk.bf16.gmra.mxu0 %vm2675_vm1, %v5967_v22 }
 0x3eb   : > { %3766 = vmatprep.mubr.bf16.mxu0 %v8010_v28 }
 0x3ed   : > { %3059 = vperm.xlu1 %5936, %v2781_v35   ;;  %3054 = vperm.xlu0 %5935, %v2780_v29  }
 0x3f1   : > { %3069 = vperm.xlu1 %5936, %v2783_v18   ;;  %3064 = vperm.xlu0 %5935, %v2782_v17   ;;  %v5976_v18 = vld [vmem:[%s6485_s9 + $0x78] sm:$0xff]  }
 0x3f2   : > { %5526 = vmatmul.mubr.msk.bf16.gmra.mxu0 %vm2675_vm1, %v5968_v42  ;;  %v2818_v42 = vld [vmem:[#allocation2 + $0x50] sm:$0xff] }
 0x3f3   : > { %3776 = vmatprep.mubr.bf16.mxu0 %v8010_v28 }
 0x3f5   : > { %3079 = vperm.xlu1 %5936, %v2785_v14   ;;  %3074 = vperm.xlu0 %5935, %v2784_v59   ;;  %v2816_v59 = vld [vmem:[#allocation2 + $0x40] sm:$0xff] }
 0x3f9   : > { %3089 = vperm.xlu1 %5936, %v2787_v63   ;;  %3084 = vperm.xlu0 %5935, %v2786_v10  }
 0x3fa   : > { %5527 = vmatmul.mubr.msk.bf16.gmra.mxu0 %vm2675_vm1, %v5969_v2 }
 0x3fb   : > { %3786 = vmatprep.mubr.bf16.mxu0 %v8010_v28 }
 0x3fd   : > { %3099 = vperm.xlu1 %5936, %v2789_v34   ;;  %3094 = vperm.xlu0 %5935, %v2788_v44   ;;  %v5977_v34 = vld [vmem:[%s6485_s9 + $0x80] sm:$0xff]  }
 0x401   : > { %3109 = vperm.xlu1 %5936, %v2791_v50   ;;  %3104 = vperm.xlu0 %5935, %v2790_v15   ;;  %v2819_v50 = vld [vmem:[#allocation2 + $0x58] sm:$0xff] }
 0x402   : > { %5528 = vmatmul.mubr.msk.bf16.gmra.mxu0 %vm2675_vm1, %v5970_v62 }
 0x403   : > { %3796 = vmatprep.mubr.bf16.mxu0 %v8010_v28 }
 0x405   : > { %3119 = vperm.xlu1 %5936, %v2793_v6   ;;  %3114 = vperm.xlu0 %5935, %v2792_v46  }
 0x409   : > { %3129 = vperm.xlu1 %5936, %v2795_v5   ;;  %3124 = vperm.xlu0 %5935, %v2794_v54   ;;  %v5978_v54 = vld [vmem:[%s6485_s9 + $0x88] sm:$0xff]  }
 0x40a   : > { %5529 = vmatmul.mubr.msk.bf16.gmra.mxu0 %vm2675_vm1, %v5971_v16 }
 0x40b   : > { %3806 = vmatprep.mubr.bf16.mxu0 %v8010_v28 }
 0x40d   : > { %3139 = vperm.xlu1 %5936, %v2797_v56   ;;  %3134 = vperm.xlu0 %5935, %v2796_v53   ;;  %v2821_v56 = vld [vmem:[#allocation2 + $0x68] sm:$0xff] }
 0x411   : > { %3149 = vperm.xlu1 %5936, %v2799_v33   ;;  %3144 = vperm.xlu0 %5935, %v2798_v45   ;;  %v2820_v33 = vld [vmem:[#allocation2 + $0x60] sm:$0xff] }
 0x412   : > { %5530 = vmatmul.mubr.msk.bf16.gmra.mxu0 %vm2675_vm1, %v5972_v48  ;;  %v5980_v48 = vld [vmem:[%s6485_s9 + $0x98] sm:$0xff]  }
 0x413   : > { %3816 = vmatprep.mubr.bf16.mxu0 %v8010_v28 }
 0x415   : > { %3159 = vperm.xlu1 %5936, %v2801_v26   ;;  %3154 = vperm.xlu0 %5935, %v2800_v55   ;;  %v5979_v55 = vld [vmem:[%s6485_s9 + $0x90] sm:$0xff]  }
 0x419   : > { %3169 = vperm.xlu1 %5936, %v2803_v9   ;;  %3164 = vperm.xlu0 %5935, %v2802_v43   ;;  %v2823_v43 = vld [vmem:[#allocation2 + $0x78] sm:$0xff] }
 0x41a   : > { %5531 = vmatmul.mubr.msk.bf16.gmra.mxu0 %vm2675_vm1, %v5973_v57  ;;  %v5981_v57 = vld [vmem:[%s6485_s9 + $0xa0] sm:$0xff]  }
 0x41b   : > { %3826 = vmatprep.mubr.bf16.mxu0 %v8010_v28 }
 0x41d   : > { %3179 = vperm.xlu1 %5936, %v2805_v49   ;;  %3174 = vperm.xlu0 %5935, %v2804_v8   ;;  %v2822_v49 = vld [vmem:[#allocation2 + $0x70] sm:$0xff] }
 0x420   : > { %v2875_v41 = vpop.permute.xlu0 %2874  ;;  %v2885_v7 = vpop.permute.xlu1 %2884 }
 0x421   : > { %3189 = vperm.xlu1 %5936, %v2807_v31   ;;  %3184 = vperm.xlu0 %5935, %v2806_v58   ;;  %v3192_v20 = vmul.f32 %v2875_v41, %v2808_v51  ;;  %v3194_v24 = vmul.f32 %v2885_v7, %v2810_v37  ;;  %v2825_v51 = vld [vmem:[#allocation2 + $0x88] sm:$0xff]  ;;  %v2824_v7 = vld [vmem:[#allocation2 + $0x80] sm:$0xff]  ;;  %v2827_v37 = vld [vmem:[#allocation2 + $0x98] sm:$0xff] }
 0x422   : > { %5532 = vmatmul.mubr.msk.bf16.gmra.mxu0 %vm2675_vm1, %v5974_v36 }
 0x423   : > { %3836 = vmatprep.mubr.bf16.mxu0 %v8010_v28 }
 0x424   : > { %v2880_v39 = vpop.permute.xlu0 %2879  ;;  %v2890_v23 = vpop.permute.xlu1 %2889 }
 0x425   : > { %v3193_v30 = vmul.f32 %v2880_v39, %v2809_v1  ;;  %v3195_v32 = vmul.f32 %v2890_v23, %v2811_v52  ;;  %v2826_v23 = vld [vmem:[#allocation2 + $0x90] sm:$0xff] }
 0x427   : > { %v3256_v4 = vpack.c.bf16 %v3193_v30, %v3192_v20  ;;  %v3257_v13 = vpack.c.bf16 %v3195_v32, %v3194_v24 }
 0x428   : > { %v2900_v11 = vpop.permute.xlu1 %2899  ;;  %v2895_v40 = vpop.permute.xlu0 %2894 }
 0x429   : > { %5559 = vmatmul.mubr.msk.bf16.vlgmr.msra.gmra.mxu1 %vm2675_vm1, %v3256_v4  ;;  %v3197_v0 = vmul.f32 %v2900_v11, %v2813_v25  ;;  %v3196_v12 = vmul.f32 %v2895_v40, %v2812_v19  ;;  %v2829_v11 = vld [vmem:[#allocation2 + $0xa8] sm:$0xff]  ;;  %v2828_v40 = vld [vmem:[#allocation2 + $0xa0] sm:$0xff] }
 0x42a   : > { %4195 = vmatprep.mubr.bf16.mxu1 %v8010_v28  ;;  %5533 = vmatmul.mubr.msk.bf16.gmra.mxu0 %vm2675_vm1, %v5975_v61 }
 0x42b   : > { %v3258_v47 = vpack.c.bf16 %v3197_v0, %v3196_v12  ;;  %3846 = vmatprep.mubr.bf16.mxu0 %v8010_v28 }
 0x42c   : > { %v2910_v27 = vpop.permute.xlu1 %2909  ;;  %v2905_v60 = vpop.permute.xlu0 %2904 }
 0x42d   : > { %v3199_v35 = vmul.f32 %v2910_v27, %v2815_v38  ;;  %v3198_v29 = vmul.f32 %v2905_v60, %v2814_v21  ;;  %v2831_v27 = vld [vmem:[#allocation2 + $0xb8] sm:$0xff]  ;;  %v2830_v60 = vld [vmem:[#allocation2 + $0xb0] sm:$0xff] }
 0x42f   : > { %v3259_v17 = vpack.c.bf16 %v3199_v35, %v3198_v29 }
 0x430   : > { %v2920_v14 = vpop.permute.xlu1 %2919  ;;  %v2915_v63 = vpop.permute.xlu0 %2914 }
 0x431   : > { %5560 = vmatmul.mubr.msk.bf16.gmra.mxu1 %vm2675_vm1, %v3257_v13  ;;  %v3201_v10 = vmul.f32 %v2920_v14, %v2817_v3  ;;  %v3200_v22 = vmul.f32 %v2915_v63, %v2816_v59  ;;  %v5982_v13 = vld [vmem:[%s6485_s9 + $0xa8] sm:$0xff]   ;;  %v2832_v63 = vld [vmem:[#allocation2 + $0xc0] sm:$0xff] }
 0x432   : > { %4205 = vmatprep.mubr.bf16.mxu1 %v8010_v28  ;;  %5534 = vmatmul.mubr.msk.bf16.gmra.mxu0 %vm2675_vm1, %v5976_v18  ;;  %v2833_v14 = vld [vmem:[#allocation2 + $0xc8] sm:$0xff] }
 0x433   : > { %3856 = vmatprep.mubr.bf16.mxu0 %v8010_v28  ;;  %v3260_v44 = vpack.c.bf16 %v3201_v10, %v3200_v22 }
 0x434   : > { %v2930_v15 = vpop.permute.xlu1 %2929  ;;  %v2925_v6 = vpop.permute.xlu0 %2924 }
 0x435   : > { %v3203_v46 = vmul.f32 %v2930_v15, %v2819_v50  ;;  %v3202_v5 = vmul.f32 %v2925_v6, %v2818_v42  ;;  %v2835_v15 = vld [vmem:[#allocation2 + $0xd8] sm:$0xff]  ;;  %v2834_v6 = vld [vmem:[#allocation2 + $0xd0] sm:$0xff] }
 0x437   : > { %v3261_v2 = vpack.c.bf16 %v3203_v46, %v3202_v5 }
 0x438   : > { %v2940_v53 = vpop.permute.xlu1 %2939  ;;  %v2935_v45 = vpop.permute.xlu0 %2934 }
 0x439   : > { %5561 = vmatmul.mubr.msk.bf16.gmra.mxu1 %vm2675_vm1, %v3258_v47  ;;  %v3205_v62 = vmul.f32 %v2940_v53, %v2821_v56  ;;  %v3204_v26 = vmul.f32 %v2935_v45, %v2820_v33  ;;  %v5983_v47 = vld [vmem:[%s6485_s9 + $0xb0] sm:$0xff]   ;;  %v5986_v53 = vld [vmem:[%s6485_s9 + $0xc8] sm:$0xff]  }
 0x43a   : > { %4215 = vmatprep.mubr.bf16.mxu1 %v8010_v28  ;;  %5535 = vmatmul.mubr.msk.bf16.gmra.mxu0 %vm2675_vm1, %v5977_v34 }
 0x43b   : > { %3866 = vmatprep.mubr.bf16.mxu0 %v8010_v28  ;;  %v3262_v9 = vpack.c.bf16 %v3205_v62, %v3204_v26  ;;  %v2837_v62 = vld [vmem:[#allocation2 + $0xe8] sm:$0xff] }
 0x43c   : > { %v2950_v16 = vpop.permute.xlu1 %2949  ;;  %v2945_v8 = vpop.permute.xlu0 %2944 }
 0x43d   : > { %v3207_v31 = vmul.f32 %v2950_v16, %v2823_v43  ;;  %v3206_v58 = vmul.f32 %v2945_v8, %v2822_v49 }
 0x43f   : > { %v3263_v41 = vpack.c.bf16 %v3207_v31, %v3206_v58  ;;  %v5987_v58 = vld [vmem:[%s6485_s9 + $0xd0] sm:$0xff]  }
 0x440   : > { %v2960_v1 = vpop.permute.xlu1 %2959  ;;  %v2955_v39 = vpop.permute.xlu0 %2954 }
 0x441   : > { %5562 = vmatmul.mubr.msk.bf16.gmra.mxu1 %vm2675_vm1, %v3259_v17  ;;  %v3209_v20 = vmul.f32 %v2960_v1, %v2825_v51  ;;  %v3208_v30 = vmul.f32 %v2955_v39, %v2824_v7  ;;  %v5984_v17 = vld [vmem:[%s6485_s9 + $0xb8] sm:$0xff]   ;;  %v2838_v7 = vld [vmem:[#allocation2 + $0xf0] sm:$0xff] }
 0x442   : > { %4225 = vmatprep.mubr.bf16.mxu1 %v8010_v28  ;;  %5536 = vmatmul.mubr.msk.bf16.gmra.mxu0 %vm2675_vm1, %v5978_v54  ;;  %v2839_v51 = vld [vmem:[#allocation2 + $0xf8] sm:$0xff] }
 0x443   : > { %3876 = vmatprep.mubr.bf16.mxu0 %v8010_v28  ;;  %v3264_v4 = vpack.c.bf16 %v3209_v20, %v3208_v30 }
 0x444   : > { %v2970_v52 = vpop.permute.xlu1 %2969  ;;  %v2965_v24 = vpop.permute.xlu0 %2964 }
 0x445   : > { %v3211_v32 = vmul.f32 %v2970_v52, %v2827_v37  ;;  %v3210_v36 = vmul.f32 %v2965_v24, %v2826_v23  ;;  %v5988_v52 = vld [vmem:[%s6485_s9 + $0xd8] sm:$0xff]  }
 0x447   : > { %v3265_v25 = vpack.c.bf16 %v3211_v32, %v3210_v36  ;;  %v2841_v32 = vld [vmem:[#allocation2 + $0x108] sm:$0xff] }
 0x448   : > { %v2980_v19 = vpop.permute.xlu1 %2979  ;;  %v2975_v0 = vpop.permute.xlu0 %2974 }
 0x449   : > { %5563 = vmatmul.mubr.msk.bf16.gmra.mxu1 %vm2675_vm1, %v3260_v44  ;;  %v3213_v12 = vmul.f32 %v2980_v19, %v2829_v11  ;;  %v3212_v61 = vmul.f32 %v2975_v0, %v2828_v40  ;;  %v5985_v44 = vld [vmem:[%s6485_s9 + $0xc0] sm:$0xff]  }
 0x44a   : > { %4235 = vmatprep.mubr.bf16.mxu1 %v8010_v28  ;;  %5537 = vmatmul.mubr.msk.bf16.gmra.mxu0 %vm2675_vm1, %v5979_v55  ;;  %v2836_v55 = vld [vmem:[#allocation2 + $0xe0] sm:$0xff] }
 0x44b   : > { %3886 = vmatprep.mubr.bf16.mxu0 %v8010_v28  ;;  %v3266_v38 = vpack.c.bf16 %v3213_v12, %v3212_v61  ;;  %v5989_v61 = vld [vmem:[%s6485_s9 + $0xe0] sm:$0xff]  }
 0x44c   : > { %v2990_v21 = vpop.permute.xlu1 %2989  ;;  %v2985_v35 = vpop.permute.xlu0 %2984 }
 0x44d   : > { %v3215_v29 = vmul.f32 %v2990_v21, %v2831_v27  ;;  %v3214_v18 = vmul.f32 %v2985_v35, %v2830_v60  ;;  %v2843_v27 = vld [vmem:[#allocation2 + $0x118] sm:$0xff]  ;;  %v2842_v60 = vld [vmem:[#allocation2 + $0x110] sm:$0xff] }
 0x44f   : > { %v3267_v3 = vpack.c.bf16 %v3215_v29, %v3214_v18 }
 0x450   : > { %v3000_v59 = vpop.permute.xlu1 %2999  ;;  %v2995_v10 = vpop.permute.xlu0 %2994 }
 0x451   : > { %5564 = vmatmul.mubr.msk.bf16.gmra.mxu1 %vm2675_vm1, %v3261_v2  ;;  %v3217_v22 = vmul.f32 %v3000_v59, %v2833_v14  ;;  %v3216_v34 = vmul.f32 %v2995_v10, %v2832_v63  ;;  %v5990_v59 = vld [vmem:[%s6485_s9 + $0xe8] sm:$0xff]  }
 0x452   : > { %4245 = vmatprep.mubr.bf16.mxu1 %v8010_v28  ;;  %5538 = vmatmul.mubr.msk.bf16.gmra.mxu0 %vm2675_vm1, %v5980_v48 }
 0x453   : > { %3896 = vmatprep.mubr.bf16.mxu0 %v8010_v28  ;;  %v3268_v50 = vpack.c.bf16 %v3217_v22, %v3216_v34  ;;  %v2845_v22 = vld [vmem:[#allocation2 + $0x128] sm:$0xff] }
 0x454   : > { %v3010_v42 = vpop.permute.xlu1 %3009  ;;  %v3005_v46 = vpop.permute.xlu0 %3004 }
 0x455   : > { %v3219_v54 = vmul.f32 %v3010_v42, %v2835_v15  ;;  %v3218_v2 = vmul.f32 %v3005_v46, %v2834_v6 }
 0x457   : > { %v3269_v33 = vpack.c.bf16 %v3219_v54, %v3218_v2  ;;  %v5991_v2 = vld [vmem:[%s6485_s9 + $0xf0] sm:$0xff]  }
 0x458   : > { %v3020_v26 = vpop.permute.xlu1 %3019 }
 0x459   : > { %5565 = vmatmul.mubr.msk.bf16.gmra.mxu1 %vm2675_vm1, %v3262_v9  ;;  %v3015_v9 = vpop.permute.xlu0 %3014  ;;  %v3221_v16 = vmul.f32 %v3020_v26, %v2837_v62  ;;  %v2847_v62 = vld [vmem:[#allocation2 + $0x138] sm:$0xff] }
 0x45a   : > { %4255 = vmatprep.mubr.bf16.mxu1 %v8010_v28  ;;  %5539 = vmatmul.mubr.msk.bf16.gmra.mxu0 %vm2675_vm1, %v5981_v57  ;;  %v3220_v49 = vmul.f32 %v3015_v9, %v2836_v55  ;;  %v2846_v55 = vld [vmem:[#allocation2 + $0x130] sm:$0xff] }
 0x45b   : > { %3906 = vmatprep.mubr.bf16.mxu0 %v8010_v28 }
 0x45c   : > { %v3270_v48 = vpack.c.bf16 %v3221_v16, %v3220_v49  ;;  %v3030_v1 = vpop.permute.xlu1 %3029 }
 0x45d   : > { %v3025_v39 = vpop.permute.xlu0 %3024  ;;  %v3223_v30 = vmul.f32 %v3030_v1, %v2839_v51  ;;  %v5992_v1 = vld [vmem:[%s6485_s9 + $0xf8] sm:$0xff]  }
 0x45e   : > { %v3222_v57 = vmul.f32 %v3025_v39, %v2838_v7 }
 0x460   : > { %v3271_v23 = vpack.c.bf16 %v3223_v30, %v3222_v57  ;;  %v3040_v36 = vpop.permute.xlu1 %3039  ;;  %v2849_v30 = vld [vmem:[#allocation2 + $0x148] sm:$0xff] }
 0x461   : > { %5566 = vmatmul.mubr.msk.bf16.gmra.mxu1 %vm2675_vm1, %v3263_v41  ;;  %v3225_v19 = vmul.f32 %v3040_v36, %v2841_v32 }
 0x462   : > { %4265 = vmatprep.mubr.bf16.mxu1 %v8010_v28  ;;  %5540 = vmatmul.mubr.msk.bf16.gmra.mxu0 %vm2675_vm1, %v5982_v13  ;;  %v2840_v13 = vld [vmem:[#allocation2 + $0x100] sm:$0xff] }
 0x463   : > { %3916 = vmatprep.mubr.bf16.mxu0 %v8010_v28 }
 0x464   : > { %v3050_v21 = vpop.permute.xlu1 %3049 }
 0x465   : > { %v3227_v18 = vmul.f32 %v3050_v21, %v2843_v27  ;;  %v2850_v21 = vld [vmem:[#allocation2 + $0x150] sm:$0xff] }
 0x468   : > { %v3060_v34 = vpop.permute.xlu1 %3059 }
 0x469   : > { %5567 = vmatmul.mubr.msk.bf16.gmra.mxu1 %vm2675_vm1, %v3264_v4  ;;  %v3229_v42 = vmul.f32 %v3060_v34, %v2845_v22 }
 0x46a   : > { %4275 = vmatprep.mubr.bf16.mxu1 %v8010_v28  ;;  %5541 = vmatmul.mubr.msk.bf16.gmra.mxu0 %vm2675_vm1, %v5983_v47 }
 0x46b   : > { %3926 = vmatprep.mubr.bf16.mxu0 %v8010_v28 }
 0x46c   : > { %v3070_v26 = vpop.permute.xlu1 %3069 }
 0x46d   : > { %v3231_v49 = vmul.f32 %v3070_v26, %v2847_v62 }
 0x470   : > { %v3080_v57 = vpop.permute.xlu1 %3079 }
 0x471   : > { %5568 = vmatmul.mubr.msk.bf16.gmra.mxu1 %vm2675_vm1, %v3265_v25  ;;  %v3035_v25 = vpop.permute.xlu0 %3034  ;;  %v3233_v36 = vmul.f32 %v3080_v57, %v2849_v30 }
 0x472   : > { %4285 = vmatprep.mubr.bf16.mxu1 %v8010_v28  ;;  %5542 = vmatmul.mubr.msk.bf16.gmra.mxu0 %vm2675_vm1, %v5984_v17  ;;  %v3224_v40 = vmul.f32 %v3035_v25, %v2840_v13 }
 0x473   : > { %3936 = vmatprep.mubr.bf16.mxu0 %v8010_v28 }
 0x474   : > { %v3272_v47 = vpack.c.bf16 %v3225_v19, %v3224_v40  ;;  %v3090_v27 = vpop.permute.xlu1 %3089 }
 0x475   : > { %v3045_v35 = vpop.permute.xlu0 %3044 }
 0x476   : > { %v3226_v17 = vmul.f32 %v3045_v35, %v2842_v60 }
 0x478   : > { %v3273_v63 = vpack.c.bf16 %v3227_v18, %v3226_v17 }
 0x479   : > { %5569 = vmatmul.mubr.msk.bf16.gmra.mxu1 %vm2675_vm1, %v3266_v38 }
 0x47a   : > { %4295 = vmatprep.mubr.bf16.mxu1 %v8010_v28  ;;  %v7311_v5 = vpop.f32.mrf.mxu0  ;;  %5543 = vmatmul.mubr.msk.bf16.gmra.mxu0 %vm2675_vm1, %v5985_v44  ;;  %v2844_v44 = vld [vmem:[#allocation2 + $0x120] sm:$0xff] }
 0x47b   : > { %3946 = vmatprep.mubr.bf16.mxu0 %v8010_v28 }
 0x47c   : > { %v7315_v56 = vpop.f32.mrf.mxu0 }
 0x47e   : > { %v7318_v45 = vpop.f32.mrf.mxu0 }
 0x480   : > { %v7321_v43 = vpop.f32.mrf.mxu0 }
 0x481   : > { %5570 = vmatmul.mubr.msk.bf16.gmra.mxu1 %vm2675_vm1, %v3267_v3 }
 0x482   : > { %4305 = vmatprep.mubr.bf16.mxu1 %v8010_v28  ;;  %5544 = vmatmul.mubr.msk.bf16.gmra.mxu0 %vm2675_vm1, %v5986_v53  ;;  %v7325_v8 = vpop.f32.mrf.mxu0 }
 0x483   : > { %3956 = vmatprep.mubr.bf16.mxu0 %v8010_v28 }
 0x484   : > { %v7328_v31 = vpop.f32.mrf.mxu0 }
 0x486   : > { %v7331_v41 = vpop.f32.mrf.mxu0 }
 0x488   : > { %v7334_v20 = vpop.f32.mrf.mxu0 }
 0x489   : > { %5571 = vmatmul.mubr.msk.bf16.gmra.mxu1 %vm2675_vm1, %v3268_v50  ;;  %v3055_v50 = vpop.permute.xlu0 %3054 }
 0x48a   : > { %4315 = vmatprep.mubr.bf16.mxu1 %v8010_v28  ;;  %5545 = vmatmul.mubr.msk.bf16.gmra.mxu0 %vm2675_vm1, %v5987_v58  ;;  %v7338_v4 = vpop.f32.mrf.mxu0  ;;  %v3228_v6 = vmul.f32 %v3055_v50, %v2844_v44  ;;  %v2853_v44 = vld [vmem:[#allocation2 + $0x168] sm:$0xff]  ;;  %v3100_v50 = vpop.permute.xlu1 %3099 }
 0x48b   : > { %3966 = vmatprep.mubr.bf16.mxu0 %v8010_v28 }
 0x48c   : > { %v7341_v37 = vpop.f32.mrf.mxu0  ;;  %v3274_v53 = vpack.c.bf16 %v3229_v42, %v3228_v6  ;;  %v2852_v42 = vld [vmem:[#allocation2 + $0x160] sm:$0xff] }
 0x48d   : > { %v3065_v9 = vpop.permute.xlu0 %3064 }
 0x48e   : > { %v7344_v24 = vpop.f32.mrf.mxu0  ;;  %v3230_v58 = vmul.f32 %v3065_v9, %v2846_v55 }
 0x490   : > { %v7347_v11 = vpop.f32.mrf.mxu0  ;;  %v3275_v7 = vpack.c.bf16 %v3231_v49, %v3230_v58  ;;  %v2855_v58 = vld [vmem:[#allocation2 + $0x178] sm:$0xff] }
 0x491   : > { %5572 = vmatmul.mubr.msk.bf16.gmra.mxu1 %vm2675_vm1, %v3269_v33 }
 0x492   : > { %4325 = vmatprep.mubr.bf16.mxu1 %v8010_v28  ;;  %5546 = vmatmul.mubr.msk.bf16.gmra.mxu0 %vm2675_vm1, %v5988_v52  ;;  %v7351_v0 = vpop.f32.mrf.mxu0  ;;  %v2848_v52 = vld [vmem:[#allocation2 + $0x140] sm:$0xff] }
 0x493   : > { %3976 = vmatprep.mubr.bf16.mxu0 %v8010_v28 }
 0x494   : > { %v7354_v12 = vpop.f32.mrf.mxu0 }
 0x496   : > { %v7357_v38 = vpop.f32.mrf.mxu0 }
 0x498   : > { %v7360_v29 = vpop.f32.mrf.mxu0 }
 0x499   : > { %5573 = vmatmul.mubr.msk.bf16.gmra.mxu1 %vm2675_vm1, %v3270_v48 }
 0x49a   : > { %4335 = vmatprep.mubr.bf16.mxu1 %v8010_v28  ;;  %5547 = vmatmul.mubr.msk.bf16.gmra.mxu0 %vm2675_vm1, %v5989_v61  ;;  %v7364_v3 = vpop.f32.mrf.mxu0 }
 0x49b   : > { %3986 = vmatprep.mubr.bf16.mxu0 %v8010_v28 }
 0x49c   : > { %v7367_v14 = vpop.f32.mrf.mxu0 }
 0x49e   : > { %v7370_v10 = vpop.f32.mrf.mxu0 }
 0x4a0   : > { %v7373_v15 = vpop.f32.mrf.mxu0 }
 0x4a1   : > { %5574 = vmatmul.mubr.msk.bf16.gmra.mxu1 %vm2675_vm1, %v3271_v23  ;;  %v3075_v23 = vpop.permute.xlu0 %3074 }
 0x4a2   : > { %4345 = vmatprep.mubr.bf16.mxu1 %v8010_v28  ;;  %5548 = vmatmul.mubr.msk.bf16.gmra.mxu0 %vm2675_vm1, %v5990_v59  ;;  %v7377_v46 = vpop.f32.mrf.mxu0  ;;  %v3232_v13 = vmul.f32 %v3075_v23, %v2848_v52 }
 0x4a3   : > { %3996 = vmatprep.mubr.bf16.mxu0 %v8010_v28 }
 0x4a4   : > { %v7380_v54 = vpop.f32.mrf.mxu0  ;;  %v3276_v40 = vpack.c.bf16 %v3233_v36, %v3232_v13  ;;  %v4508_v13 = vlaneseq }
 0x4a5   : > { %v3085_v60 = vpop.permute.xlu0 %3084 }
 0x4a6   : > { %v7383_v33 = vpop.f32.mrf.mxu0  ;;  %v3234_v17 = vmul.f32 %v3085_v60, %v2850_v21  ;;  %v2857_v21 = vld [vmem:[#allocation2 + $0x188] sm:$0xff] }
 0x4a8   : > { %v7386_v16 = vpop.f32.mrf.mxu0 }
 0x4a9   : > { %5575 = vmatmul.mubr.msk.bf16.gmra.mxu1 %vm2675_vm1, %v3272_v47  ;;  %v2851_v47 = vld [vmem:[#allocation2 + $0x158] sm:$0xff]  ;;  %v3095_v6 = vpop.permute.xlu0 %3094 }
 0x4aa   : > { %4355 = vmatprep.mubr.bf16.mxu1 %v8010_v28  ;;  %5549 = vmatmul.mubr.msk.bf16.gmra.mxu0 %vm2675_vm1, %v5991_v2  ;;  %v7390_v48 = vpop.f32.mrf.mxu0  ;;  %v3235_v18 = vmul.f32 %v3090_v27, %v2851_v47  ;;  %v3236_v62 = vmul.f32 %v3095_v6, %v2852_v42 }
 0x4ab   : > { %4006 = vmatprep.mubr.bf16.mxu0 %v8010_v28 }
 0x4ac   : > { %v7393_v51 = vpop.f32.mrf.mxu0  ;;  %v3277_v22 = vpack.c.bf16 %v3235_v18, %v3234_v17  ;;  %v2856_v18 = vld [vmem:[#allocation2 + $0x180] sm:$0xff] }
 0x4ad   : > { %v3105_v30 = vpop.permute.xlu0 %3104 }
 0x4ae   : > { %v7396_v39 = vpop.f32.mrf.mxu0 }
 0x4b0   : > { %v7399_v32 = vpop.f32.mrf.mxu0 }
 0x4b1   : > { %5576 = vmatmul.mubr.msk.bf16.gmra.mxu1 %vm2675_vm1, %v3273_v63  ;;  %v3115_v17 = vpop.permute.xlu0 %3114 }
 0x4b2   : > { %4365 = vmatprep.mubr.bf16.mxu1 %v8010_v28  ;;  %5550 = vmatmul.mubr.msk.bf16.gmra.mxu0 %vm2675_vm1, %v5992_v1  ;;  %v7403_v25 = vpop.f32.mrf.mxu0  ;;  %v3110_v1 = vpop.permute.xlu1 %3109  ;;  %v3240_v42 = vmul.f32 %v3115_v17, %v2856_v18 }
 0x4b3   : > { %v3239_v52 = vmul.f32 %v3110_v1, %v2855_v58 }
 0x4b4   : > { %v7405_v19 = vpop.f32.mrf.mxu0 }
 0x4b6   : > { %v7407_v61 = vpop.f32.mrf.mxu0  ;;  %v3120_v60 = vpop.permute.xlu1 %3119 }
 0x4b8   : > { %v7410_v35 = vpop.f32.mrf.mxu0 }
 0x4b9   : > { %5577 = vmatmul.mubr.msk.bf16.gmra.mxu1 %vm2675_vm1, %v3274_v53  ;;  %v3237_v53 = vmul.f32 %v3100_v50, %v2853_v44  ;;  %v3241_v50 = vmul.f32 %v3120_v60, %v2857_v21 }
 0x4ba   : > { %4375 = vmatprep.mubr.bf16.mxu1 %v8010_v28  ;;  %v7413_v59 = vpop.f32.mrf.mxu0 }
 0x4bb   : > { %v3278_v9 = vpack.c.bf16 %v3237_v53, %v3236_v62  ;;  %v4506_v62 = vld [vmem:[#allocation9] sm:$0x3]  ;;  %v3280_v1 = vpack.c.bf16 %v3241_v50, %v3240_v42 }
 0x4bc   : > { %v7415_v63 = vpop.f32.mrf.mxu0 }
 0x4be   : > { %v7417_v34 = vpop.f32.mrf.mxu0 }
 0x4c0   : > { %v7420_v2 = vpop.f32.mrf.mxu0 }
 0x4c1   : > { %5578 = vmatmul.mubr.msk.bf16.gmra.mxu1 %vm2675_vm1, %v3275_v7  ;;  %v2854_v7 = vld [vmem:[#allocation2 + $0x170] sm:$0xff] }
 0x4c2   : > { %4385 = vmatprep.mubr.bf16.mxu1 %v8010_v28  ;;  %v7423_v26 = vpop.f32.mrf.mxu0  ;;  %v3238_v23 = vmul.f32 %v3105_v30, %v2854_v7  ;;  %v2859_v30 = vld [vmem:[#allocation2 + $0x198] sm:$0xff] }
 0x4c4   : > { %v7425_v55 = vpop.f32.mrf.mxu0  ;;  %v3279_v47 = vpack.c.bf16 %v3239_v52, %v3238_v23  ;;  %v3130_v52 = vpop.permute.xlu1 %3129  ;;  %v2858_v23 = vld [vmem:[#allocation2 + $0x190] sm:$0xff] }
 0x4c5   : > { %v3243_v17 = vmul.f32 %v3130_v52, %v2859_v30  ;;  %v2861_v30 = vld [vmem:[#allocation2 + $0x1a8] sm:$0xff] }
 0x4c6   : > { %v7427_v49 = vpop.f32.mrf.mxu0 }
 0x4c8   : > { %v7430_v57 = vpop.f32.mrf.mxu0  ;;  %v3140_v52 = vpop.permute.xlu1 %3139 }
 0x4c9   : > { %5579 = vmatmul.mubr.msk.bf16.gmra.mxu1 %vm2675_vm1, %v3276_v40 }
 0x4ca   : > { %4395 = vmatprep.mubr.bf16.mxu1 %v8010_v28  ;;  %v7433_v36 = vpop.f32.mrf.mxu0 }
 0x4cc   : > { %v7435_v40 = vpop.f32.mrf.mxu0 }
 0x4ce   : > { %v7437_v27 = vpop.f32.mrf.mxu0 }
 0x4d0   : > { %v7440_v44 = vpop.f32.mrf.mxu0 }
 0x4d1   : > { %5580 = vmatmul.mubr.msk.bf16.gmra.mxu1 %vm2675_vm1, %v3277_v22  ;;  %v4509_v22 = vshrl.u32 %v4508_v13, 7  ;;  %8079 = vst [vmem:[#allocation42_spill] sm:$0xff] %v7440_v44  ;;  %v3125_v13 = vpop.permute.xlu0 %3124 }
 0x4d2   : > { %4405 = vmatprep.mubr.bf16.mxu1 %v8010_v28  ;;  %v7443_v6 = vpop.f32.mrf.mxu0 }
 0x4d3   : > { %8080 = vst [vmem:[#allocation43_spill] sm:$0xff] %v7443_v6  ;;  %v4510_v53 = vsub.s32 0, %v4509_v22  ;;  %v4514_v58 = vsub.s32 1, %v4509_v22  ;;  %v3242_v22 = vmul.f32 %v3125_v13, %v2858_v23  ;;  %v2860_v23 = vld [vmem:[#allocation2 + $0x1a0] sm:$0xff] }
 0x4d5   : > { %v7455_v18 = vrot.slane %v4506_v62, %v4514_v58  ;;  %v3135_v13 = vpop.permute.xlu0 %3134 }
 0x4d9   : > { %5581 = vmatmul.mubr.msk.bf16.gmra.mxu1 %vm2675_vm1, %v3278_v9  ;;  %v7445_v9 = vpop.f32.mrf.mxu0 }
 0x4da   : > { %4415 = vmatprep.mubr.bf16.mxu1 %v8010_v28  ;;  %8081 = vst [vmem:[#allocation44_spill] sm:$0xff] %v7445_v9 }
 0x4db   : > { %v7447_v7 = vpop.f32.mrf.mxu0 }
 0x4dc   : > { %8082 = vst [vmem:[#allocation45_spill] sm:$0xff] %v7447_v7 }
 0x4dd   : > { %v7452_v21 = vpop.f32.mrf.mxu0 }
 0x4df   : > { %v7458_v42 = vpop.f32.mrf.mxu0 }
 0x4e0   : > { %8083 = vst [vmem:[#allocation46_spill] sm:$0xff] %v7458_v42  ;;  %v3244_v42 = vmul.f32 %v3135_v13, %v2860_v23  ;;  %v2863_v13 = vld [vmem:[#allocation2 + $0x1b8] sm:$0xff] }
 0x4e1   : > { %5582 = vmatmul.mubr.msk.bf16.gmra.mxu1 %vm2675_vm1, %v3279_v47  ;;  %v7449_v47 = vrot.slane %v4506_v62, %v4510_v53  ;;  %v7462_v6 = vpop.f32.mrf.mxu0 }
 0x4e2   : > { %4425 = vmatprep.mubr.bf16.mxu1 %v8010_v28  ;;  %8084 = vst [vmem:[#allocation47_spill] sm:$0xff] %v7462_v6 }
 0x4e3   : > { %v7466_v58 = vpop.f32.mrf.mxu0 }
 0x4e4   : > { %8085 = vst [vmem:[#allocation48_spill] sm:$0xff] %v7466_v58  ;;  %v3245_v58 = vmul.f32 %v3140_v52, %v2861_v30 }
 0x4e6   : > { %v3282_v30 = vpack.c.bf16 %v3245_v58, %v3244_v42 }
 0x4e9   : > { %v4187_v44 = vpop.f32.mrf.mxu1  ;;  %5583 = vmatmul.mubr.msk.bf16.gmra.mxu1 %vm2675_vm1, %v3280_v1 }
 0x4ea   : > { %v4188_v60 = vadd.f32 %v4187_v44, %v7311_v5  ;;  %4435 = vmatprep.mubr.bf16.mxu1 %v8010_v28  ;;  %v3281_v44 = vpack.c.bf16 %v3243_v17, %v3242_v22  ;;  %v8086_v22 = vmov 0  }
 0x4eb   : > { %v4189_v50 = vpop.f32.mrf.mxu1 }
 0x4ec   : > { %v4518_v7 = vadd.f32 %v7449_v47, %v4188_v60  ;;  %v4190_v53 = vadd.f32 %v4189_v50, %v7315_v56 }
 0x4ed   : > { %v4191_v9 = vpop.f32.mrf.mxu1 }
 0x4ee   : > { %v4519_v1 = vadd.f32 %v7455_v18, %v4190_v53  ;;  %v4192_v5 = vadd.f32 %v4191_v9, %v7318_v45  ;;  %v4646_v28 = vmax.f32 %v4518_v7, 0.0  ;;  %v7471_v53 = vpop.f32.mrf.mxu0 }
 0x4ef   : > { %v4193_v62 = vpop.f32.mrf.mxu1 }
 0x4f0   : > { %v4647_v60 = vmax.f32 %v4519_v1, 0.0  ;;  %v4520_v56 = vadd.f32 %v7449_v47, %v4192_v5  ;;  %v4194_v50 = vadd.f32 %v4193_v62, %v7321_v43  ;;  %v7476_v1 = vpop.f32.mrf.mxu0 }
 0x4f1   : > { %v4197_v6 = vpop.f32.mrf.mxu1  ;;  %5584 = vmatmul.mubr.msk.bf16.gmra.mxu1 %vm2675_vm1, %v3281_v44 }
 0x4f2   : > { %v5662_v45 = vpack.c.bf16 %v4647_v60, %v4646_v28  ;;  %v4521_v9 = vadd.f32 %v7455_v18, %v4194_v50  ;;  %v4198_v17 = vadd.f32 %v4197_v6, %v7325_v8  ;;  %4445 = vmatprep.mubr.bf16.mxu1 %v8086_v22  ;;  %v4648_v5 = vmax.f32 %v4520_v56, 0.0  ;;  %v7481_v60 = vpop.f32.mrf.mxu0  ;;  %v3150_v56 = vpop.permute.xlu1 %3149 }
 0x4f3   : > { %v4199_v7 = vpop.f32.mrf.mxu1 }
 0x4f4   : > { %5158 = vst [vmem:[%s6492_s7] sm:$0xff] %v5662_v45  ;;  %v4649_v43 = vmax.f32 %v4521_v9, 0.0  ;;  %v4522_v44 = vadd.f32 %v7449_v47, %v4198_v17  ;;  %v4200_v62 = vadd.f32 %v4199_v7, %v7328_v31  ;;  %v7485_v23 = vpop.f32.mrf.mxu0  ;;  %v2862_v45 = vld [vmem:[#allocation2 + $0x1b0] sm:$0xff]  ;;  %v3145_v9 = vpop.permute.xlu0 %3144 }
 0x4f5   : > { %v4201_v28 = vpop.f32.mrf.mxu1 }
 0x4f6   : > { %v5663_v50 = vpack.c.bf16 %v4649_v43, %v4648_v5  ;;  %v4523_v8 = vadd.f32 %v7455_v18, %v4200_v62  ;;  %v4202_v6 = vadd.f32 %v4201_v28, %v7331_v41  ;;  %v4650_v17 = vmax.f32 %v4522_v44, 0.0  ;;  %v7491_v41 = vpop.f32.mrf.mxu0 }
 0x4f7   : > { %v4203_v52 = vpop.f32.mrf.mxu1  ;;  %v3247_v28 = vmul.f32 %v3150_v56, %v2863_v13 }
 0x4f8   : > { %5159 = vst [vmem:[%s6492_s7 + $0x8] sm:$0xff] %v5663_v50  ;;  %v4651_v31 = vmax.f32 %v4523_v8, 0.0  ;;  %v4524_v7 = vadd.f32 %v7449_v47, %v4202_v6  ;;  %v4204_v5 = vadd.f32 %v4203_v52, %v7334_v20  ;;  %v3246_v50 = vmul.f32 %v3145_v9, %v2862_v45  ;;  %v7496_v8 = vpop.f32.mrf.mxu0 }
 0x4f9   : > { %v4207_v43 = vpop.f32.mrf.mxu1  ;;  %5585 = vmatmul.mubr.msk.bf16.gmra.mxu1 %vm2675_vm1, %v3282_v30 }
 0x4fa   : > { %v5664_v42 = vpack.c.bf16 %v4651_v31, %v4650_v17  ;;  %v4525_v58 = vadd.f32 %v7455_v18, %v4204_v5  ;;  %v4208_v62 = vadd.f32 %v4207_v43, %v7338_v4  ;;  %4455 = vmatprep.mubr.bf16.mxu1 %v8086_v22  ;;  %v4652_v6 = vmax.f32 %v4524_v7, 0.0  ;;  %v7501_v31 = vpop.f32.mrf.mxu0  ;;  %v2865_v43 = vld [vmem:[#allocation2 + $0x1c8] sm:$0xff]  ;;  %v3160_v7 = vpop.permute.xlu1 %3159 }
 0x4fb   : > { %v4209_v44 = vpop.f32.mrf.mxu1  ;;  %v3283_v56 = vpack.c.bf16 %v3247_v28, %v3246_v50 }
 0x4fc   : > { %5160 = vst [vmem:[%s6492_s7 + $0x10] sm:$0xff] %v5664_v42  ;;  %v4653_v20 = vmax.f32 %v4525_v58, 0.0  ;;  %v4526_v30 = vadd.f32 %v7449_v47, %v4208_v62  ;;  %v4210_v52 = vadd.f32 %v4209_v44, %v7341_v37  ;;  %v7505_v9 = vpop.f32.mrf.mxu0  ;;  %v2864_v42 = vld [vmem:[#allocation2 + $0x1c0] sm:$0xff]  ;;  %v3155_v58 = vpop.permute.xlu0 %3154 }
 0x4fd   : > { %v4211_v17 = vpop.f32.mrf.mxu1 }
 0x4fe   : > { %v5665_v5 = vpack.c.bf16 %v4653_v20, %v4652_v6  ;;  %v4527_v4 = vadd.f32 %v7455_v18, %v4210_v52  ;;  %v4212_v13 = vadd.f32 %v4211_v17, %v7344_v24  ;;  %v4654_v62 = vmax.f32 %v4526_v30, 0.0  ;;  %v7511_v24 = vpop.f32.mrf.mxu0 }
 0x4ff   : > { %v4213_v45 = vpop.f32.mrf.mxu1  ;;  %v3249_v17 = vmul.f32 %v3160_v7, %v2865_v43 }
 0x500   : > { %5161 = vst [vmem:[%s6492_s7 + $0x18] sm:$0xff] %v5665_v5  ;;  %v4655_v37 = vmax.f32 %v4527_v4, 0.0  ;;  %v4528_v44 = vadd.f32 %v7449_v47, %v4212_v13  ;;  %v4214_v6 = vadd.f32 %v4213_v45, %v7347_v11  ;;  %v3248_v5 = vmul.f32 %v3155_v58, %v2864_v42  ;;  %v7516_v4 = vpop.f32.mrf.mxu0 }
 0x501   : > { %v4217_v20 = vpop.f32.mrf.mxu1  ;;  %5586 = vmatmul.mubr.msk.bf16.gmra.mxu1 %vm2675_vm1, %v3283_v56 }
 0x502   : > { %v5666_v28 = vpack.c.bf16 %v4655_v37, %v4654_v62  ;;  %v4529_v50 = vadd.f32 %v7455_v18, %v4214_v6  ;;  %v4218_v52 = vadd.f32 %v4217_v20, %v7351_v0  ;;  %4465 = vmatprep.mubr.bf16.mxu1 %v8086_v22  ;;  %v4656_v13 = vmax.f32 %v4528_v44, 0.0  ;;  %v7521_v37 = vpop.f32.mrf.mxu0  ;;  %v2867_v20 = vld [vmem:[#allocation2 + $0x1d8] sm:$0xff]  ;;  %v3170_v44 = vpop.permute.xlu1 %3169 }
 0x503   : > { %v4219_v30 = vpop.f32.mrf.mxu1  ;;  %v3284_v7 = vpack.c.bf16 %v3249_v17, %v3248_v5 }
 0x504   : > { %5162 = vst [vmem:[%s6492_s7 + $0x20] sm:$0xff] %v5666_v28  ;;  %v4657_v11 = vmax.f32 %v4529_v50, 0.0  ;;  %v4530_v56 = vadd.f32 %v7449_v47, %v4218_v52  ;;  %v4220_v45 = vadd.f32 %v4219_v30, %v7354_v12  ;;  %v7525_v58 = vpop.f32.mrf.mxu0  ;;  %v2866_v28 = vld [vmem:[#allocation2 + $0x1d0] sm:$0xff]  ;;  %v3165_v50 = vpop.permute.xlu0 %3164 }
 0x505   : > { %v4221_v62 = vpop.f32.mrf.mxu1 }
 0x506   : > { %v5667_v6 = vpack.c.bf16 %v4657_v11, %v4656_v13  ;;  %v4531_v0 = vadd.f32 %v7455_v18, %v4220_v45  ;;  %v4222_v43 = vadd.f32 %v4221_v62, %v7357_v38  ;;  %v4658_v52 = vmax.f32 %v4530_v56, 0.0  ;;  %v7531_v38 = vpop.f32.mrf.mxu0 }
 0x507   : > { %v4223_v42 = vpop.f32.mrf.mxu1  ;;  %v3251_v62 = vmul.f32 %v3170_v44, %v2867_v20 }
 0x508   : > { %5163 = vst [vmem:[%s6492_s7 + $0x28] sm:$0xff] %v5667_v6  ;;  %v4659_v12 = vmax.f32 %v4531_v0, 0.0  ;;  %v4532_v30 = vadd.f32 %v7449_v47, %v4222_v43  ;;  %v4224_v13 = vadd.f32 %v4223_v42, %v7360_v29  ;;  %v3250_v6 = vmul.f32 %v3165_v50, %v2866_v28  ;;  %v7536_v0 = vpop.f32.mrf.mxu0 }
 0x509   : > { %v4227_v11 = vpop.f32.mrf.mxu1  ;;  %5587 = vmatmul.mubr.msk.bf16.gmra.mxu1 %vm2675_vm1, %v3284_v7 }
 0x50a   : > { %v5668_v17 = vpack.c.bf16 %v4659_v12, %v4658_v52  ;;  %v4533_v5 = vadd.f32 %v7455_v18, %v4224_v13  ;;  %v4228_v45 = vadd.f32 %v4227_v11, %v7364_v3  ;;  %4475 = vmatprep.mubr.bf16.mxu1 %v8086_v22  ;;  %v4660_v43 = vmax.f32 %v4532_v30, 0.0  ;;  %v7541_v12 = vpop.f32.mrf.mxu0  ;;  %v2869_v11 = vld [vmem:[#allocation2 + $0x1e8] sm:$0xff]  ;;  %v3180_v30 = vpop.permute.xlu1 %3179 }
 0x50b   : > { %v4229_v56 = vpop.f32.mrf.mxu1  ;;  %v3285_v44 = vpack.c.bf16 %v3251_v62, %v3250_v6 }
 0x50c   : > { %5164 = vst [vmem:[%s6492_s7 + $0x30] sm:$0xff] %v5668_v17  ;;  %v4661_v29 = vmax.f32 %v4533_v5, 0.0  ;;  %v4534_v7 = vadd.f32 %v7449_v47, %v4228_v45  ;;  %v4230_v42 = vadd.f32 %v4229_v56, %v7367_v14  ;;  %v7545_v50 = vpop.f32.mrf.mxu0  ;;  %v2868_v17 = vld [vmem:[#allocation2 + $0x1e0] sm:$0xff]  ;;  %v3175_v5 = vpop.permute.xlu0 %3174 }
 0x50d   : > { %v4231_v52 = vpop.f32.mrf.mxu1 }
 0x50e   : > { %v5669_v13 = vpack.c.bf16 %v4661_v29, %v4660_v43  ;;  %v4535_v3 = vadd.f32 %v7455_v18, %v4230_v42  ;;  %v4232_v20 = vadd.f32 %v4231_v52, %v7370_v10  ;;  %v4662_v45 = vmax.f32 %v4534_v7, 0.0  ;;  %v7551_v10 = vpop.f32.mrf.mxu0 }
 0x50f   : > { %v4233_v28 = vpop.f32.mrf.mxu1  ;;  %v3253_v52 = vmul.f32 %v3180_v30, %v2869_v11 }
 0x510   : > { %5165 = vst [vmem:[%s6492_s7 + $0x38] sm:$0xff] %v5669_v13  ;;  %v4663_v14 = vmax.f32 %v4535_v3, 0.0  ;;  %v4536_v56 = vadd.f32 %v7449_v47, %v4232_v20  ;;  %v4234_v43 = vadd.f32 %v4233_v28, %v7373_v15  ;;  %v3252_v13 = vmul.f32 %v3175_v5, %v2868_v17  ;;  %v7556_v3 = vpop.f32.mrf.mxu0 }
 0x511   : > { %v4237_v29 = vpop.f32.mrf.mxu1  ;;  %5588 = vmatmul.mubr.msk.bf16.gmra.mxu1 %vm2675_vm1, %v3285_v44 }
 0x512   : > { %v5670_v62 = vpack.c.bf16 %v4663_v14, %v4662_v45  ;;  %v4537_v6 = vadd.f32 %v7455_v18, %v4234_v43  ;;  %v4238_v42 = vadd.f32 %v4237_v29, %v7377_v46  ;;  %4485 = vmatprep.mubr.bf16.mxu1 %v8086_v22  ;;  %v4664_v20 = vmax.f32 %v4536_v56, 0.0  ;;  %v7561_v14 = vpop.f32.mrf.mxu0  ;;  %v2871_v29 = vld [vmem:[#allocation2 + $0x1f8] sm:$0xff]  ;;  %v3190_v56 = vpop.permute.xlu1 %3189 }
 0x513   : > { %v4239_v7 = vpop.f32.mrf.mxu1  ;;  %v3286_v30 = vpack.c.bf16 %v3253_v52, %v3252_v13 }
 0x514   : > { %5166 = vst [vmem:[%s6492_s7 + $0x40] sm:$0xff] %v5670_v62  ;;  %v4665_v15 = vmax.f32 %v4537_v6, 0.0  ;;  %v4538_v44 = vadd.f32 %v7449_v47, %v4238_v42  ;;  %v4240_v28 = vadd.f32 %v4239_v7, %v7380_v54  ;;  %v7565_v5 = vpop.f32.mrf.mxu0  ;;  %v2870_v62 = vld [vmem:[#allocation2 + $0x1f0] sm:$0xff]  ;;  %v3185_v6 = vpop.permute.xlu0 %3184 }
 0x515   : > { %v4241_v45 = vpop.f32.mrf.mxu1 }
 0x516   : > { %v5671_v43 = vpack.c.bf16 %v4665_v15, %v4664_v20  ;;  %v4539_v46 = vadd.f32 %v7455_v18, %v4240_v28  ;;  %v4242_v11 = vadd.f32 %v4241_v45, %v7383_v33  ;;  %v4666_v42 = vmax.f32 %v4538_v44, 0.0  ;;  %v7571_v33 = vpop.f32.mrf.mxu0 }
 0x517   : > { %v4243_v17 = vpop.f32.mrf.mxu1  ;;  %v3255_v45 = vmul.f32 %v3190_v56, %v2871_v29 }
 0x518   : > { %5167 = vst [vmem:[%s6492_s7 + $0x48] sm:$0xff] %v5671_v43  ;;  %v4667_v54 = vmax.f32 %v4539_v46, 0.0  ;;  %v4540_v7 = vadd.f32 %v7449_v47, %v4242_v11  ;;  %v4244_v20 = vadd.f32 %v4243_v17, %v7386_v16  ;;  %v3254_v43 = vmul.f32 %v3185_v6, %v2870_v62  ;;  %v7576_v46 = vpop.f32.mrf.mxu0 }
 0x519   : > { %v4247_v15 = vpop.f32.mrf.mxu1  ;;  %5589 = vmatmul.mubr.msk.bf16.gmra.mxu1 %vm2675_vm1, %v3286_v30 }
 0x51a   : > { %v5672_v52 = vpack.c.bf16 %v4667_v54, %v4666_v42  ;;  %v4541_v13 = vadd.f32 %v7455_v18, %v4244_v20  ;;  %v4248_v28 = vadd.f32 %v4247_v15, %v7390_v48  ;;  %4495 = vmatprep.mubr.bf16.mxu1 %v8086_v22  ;;  %v4668_v16 = vmax.f32 %v4540_v7, 0.0  ;;  %v7581_v54 = vpop.f32.mrf.mxu0 }
 0x51b   : > { %v4249_v44 = vpop.f32.mrf.mxu1  ;;  %v3287_v29 = vpack.c.bf16 %v3255_v45, %v3254_v43 }
 0x51c   : > { %5168 = vst [vmem:[%s6492_s7 + $0x50] sm:$0xff] %v5672_v52  ;;  %v4669_v11 = vmax.f32 %v4541_v13, 0.0  ;;  %v4542_v30 = vadd.f32 %v7449_v47, %v4248_v28  ;;  %v4250_v17 = vadd.f32 %v4249_v44, %v7393_v51  ;;  %v7585_v62 = vpop.f32.mrf.mxu0 }
 0x51d   : > { %v4251_v42 = vpop.f32.mrf.mxu1 }
 0x51e   : > { %v5673_v20 = vpack.c.bf16 %v4669_v11, %v4668_v16  ;;  %v4543_v48 = vadd.f32 %v7455_v18, %v4250_v17  ;;  %v4252_v22 = vadd.f32 %v4251_v42, %v7396_v39  ;;  %v4670_v6 = vmax.f32 %v4542_v30, 0.0  ;;  %v7591_v13 = vpop.f32.mrf.mxu0 }
 0x51f   : > { %v4253_v56 = vpop.f32.mrf.mxu1 }
 0x520   : > { %5169 = vst [vmem:[%s6492_s7 + $0x58] sm:$0xff] %v5673_v20  ;;  %v4671_v7 = vmax.f32 %v4543_v48, 0.0  ;;  %v4544_v15 = vadd.f32 %v7449_v47, %v4252_v22  ;;  %v4254_v51 = vadd.f32 %v4253_v56, %v7399_v32  ;;  %v7595_v44 = vpop.f32.mrf.mxu0 }
 0x521   : > { %v4257_v52 = vpop.f32.mrf.mxu1  ;;  %5590 = vmatmul.mubr.msk.bf16.gmra.mxu1 %vm2675_vm1, %v3287_v29 }
 0x522   : > { %v5674_v28 = vpack.c.bf16 %v4671_v7, %v4670_v6  ;;  %v4545_v39 = vadd.f32 %v7455_v18, %v4254_v51  ;;  %v4258_v45 = vadd.f32 %v4257_v52, %v7403_v25  ;;  %v4672_v16 = vmax.f32 %v4544_v15, 0.0  ;;  %v7600_v42 = vpop.f32.mrf.mxu0 }
 0x523   : > { %v4259_v43 = vpop.f32.mrf.mxu1 }
 0x524   : > { %5170 = vst [vmem:[%s6492_s7 + $0x60] sm:$0xff] %v5674_v28  ;;  %v4673_v11 = vmax.f32 %v4545_v39, 0.0  ;;  %v4546_v30 = vadd.f32 %v7449_v47, %v4258_v45  ;;  %v4260_v32 = vadd.f32 %v4259_v43, %v7405_v19  ;;  %v7604_v29 = vpop.f32.mrf.mxu0 }
 0x525   : > { %v4261_v17 = vpop.f32.mrf.mxu1 }
 0x526   : > { %v5675_v20 = vpack.c.bf16 %v4673_v11, %v4672_v16  ;;  %v4547_v48 = vadd.f32 %v7455_v18, %v4260_v32  ;;  %v4262_v22 = vadd.f32 %v4261_v17, %v7407_v61  ;;  %v4674_v56 = vmax.f32 %v4546_v30, 0.0  ;;  %v7609_v51 = vpop.f32.mrf.mxu0 }
 0x527   : > { %v4263_v25 = vpop.f32.mrf.mxu1 }
 0x528   : > { %5171 = vst [vmem:[%s6492_s7 + $0x68] sm:$0xff] %v5675_v20  ;;  %v4675_v6 = vmax.f32 %v4547_v48, 0.0  ;;  %v4548_v7 = vadd.f32 %v7449_v47, %v4262_v22  ;;  %v4264_v15 = vadd.f32 %v4263_v25, %v7410_v35  ;;  %v7613_v45 = vpop.f32.mrf.mxu0 }
 0x529   : > { %v4267_v19 = vpop.f32.mrf.mxu1 }
 0x52a   : > { %v5676_v52 = vpack.c.bf16 %v4675_v6, %v4674_v56  ;;  %v4549_v28 = vadd.f32 %v7455_v18, %v4264_v15  ;;  %v4268_v39 = vadd.f32 %v4267_v19, %v7413_v59  ;;  %v4676_v43 = vmax.f32 %v4548_v7, 0.0  ;;  %v7620_v22 = vpop.f32.mrf.mxu0 }
 0x52b   : > { %v4269_v61 = vpop.f32.mrf.mxu1 }
 0x52c   : > { %5172 = vst [vmem:[%s6492_s7 + $0x70] sm:$0xff] %v5676_v52  ;;  %v4677_v16 = vmax.f32 %v4549_v28, 0.0  ;;  %v4550_v11 = vadd.f32 %v7449_v47, %v4268_v39  ;;  %v4270_v30 = vadd.f32 %v4269_v61, %v7415_v63  ;;  %v7627_v28 = vpop.f32.mrf.mxu0 }
 0x52d   : > { %v4271_v35 = vpop.f32.mrf.mxu1 }
 0x52e   : > { %v5677_v32 = vpack.c.bf16 %v4677_v16, %v4676_v43  ;;  %v4551_v17 = vadd.f32 %v7455_v18, %v4270_v30  ;;  %v4272_v20 = vadd.f32 %v4271_v35, %v7417_v34  ;;  %v4678_v59 = vmax.f32 %v4550_v11, 0.0 }
 0x52f   : > { %v4273_v48 = vpop.f32.mrf.mxu1 }
 0x530   : > { %5173 = vst [vmem:[%s6492_s7 + $0x78] sm:$0xff] %v5677_v32  ;;  %v4679_v25 = vmax.f32 %v4551_v17, 0.0  ;;  %v4552_v56 = vadd.f32 %v7449_v47, %v4272_v20  ;;  %v4274_v6 = vadd.f32 %v4273_v48, %v7420_v2  ;;  %v7634_v32 = vpop.f32.mrf.mxu0 }
 0x531   : > { %v4277_v7 = vpop.f32.mrf.mxu1 }
 0x532   : > { %v5678_v15 = vpack.c.bf16 %v4679_v25, %v4678_v59  ;;  %v4553_v63 = vadd.f32 %v7455_v18, %v4274_v6  ;;  %v4278_v19 = vadd.f32 %v4277_v7, %v7423_v26  ;;  %v4680_v34 = vmax.f32 %v4552_v56, 0.0  ;;  %v7641_v7 = vpop.f32.mrf.mxu0 }
 0x533   : > { %v4279_v52 = vpop.f32.mrf.mxu1 }
 0x534   : > { %5174 = vst [vmem:[%s6492_s7 + $0x80] sm:$0xff] %v5678_v15  ;;  %v4681_v39 = vmax.f32 %v4553_v63, 0.0  ;;  %v4554_v61 = vadd.f32 %v7449_v47, %v4278_v19  ;;  %v4280_v43 = vadd.f32 %v4279_v52, %v7425_v55 }
 0x535   : > { %v4281_v16 = vpop.f32.mrf.mxu1 }
 0x536   : > { %v5679_v11 = vpack.c.bf16 %v4681_v39, %v4680_v34  ;;  %v4555_v2 = vadd.f32 %v7455_v18, %v4280_v43  ;;  %v4282_v30 = vadd.f32 %v4281_v16, %v7427_v49  ;;  %v4682_v26 = vmax.f32 %v4554_v61, 0.0  ;;  %v7648_v43 = vpop.f32.mrf.mxu0 }
 0x537   : > { %v4283_v35 = vpop.f32.mrf.mxu1 }
 0x538   : > { %5175 = vst [vmem:[%s6492_s7 + $0x88] sm:$0xff] %v5679_v11  ;;  %v4683_v17 = vmax.f32 %v4555_v2, 0.0  ;;  %v4556_v20 = vadd.f32 %v7449_v47, %v4282_v30  ;;  %v4284_v48 = vadd.f32 %v4283_v35, %v7430_v57  ;;  %v8087_v2 = vld [vmem:[#allocation42_spill] sm:$0xff] }
 0x539   : > { %v4287_v59 = vpop.f32.mrf.mxu1 }
 0x53a   : > { %v5680_v25 = vpack.c.bf16 %v4683_v17, %v4682_v26  ;;  %v4557_v55 = vadd.f32 %v7455_v18, %v4284_v48  ;;  %v4288_v56 = vadd.f32 %v4287_v59, %v7433_v36  ;;  %v4684_v49 = vmax.f32 %v4556_v20, 0.0  ;;  %v8088_v17 = vld [vmem:[#allocation43_spill] sm:$0xff]  ;;  %v7655_v59 = vpop.f32.mrf.mxu0 }
 0x53b   : > { %v4289_v6 = vpop.f32.mrf.mxu1 }
 0x53c   : > { %5176 = vst [vmem:[%s6492_s7 + $0x90] sm:$0xff] %v5680_v25  ;;  %v4685_v15 = vmax.f32 %v4557_v55, 0.0  ;;  %v4558_v63 = vadd.f32 %v7449_v47, %v4288_v56  ;;  %v4290_v19 = vadd.f32 %v4289_v6, %v7435_v40  ;;  %v8089_v56 = vld [vmem:[#allocation44_spill] sm:$0xff] }
 0x53d   : > { %v4291_v52 = vpop.f32.mrf.mxu1 }
 0x53e   : > { %v5681_v34 = vpack.c.bf16 %v4685_v15, %v4684_v49  ;;  %v4559_v57 = vadd.f32 %v7455_v18, %v4290_v19  ;;  %v4292_v39 = vadd.f32 %v4291_v52, %v7437_v27  ;;  %v4686_v36 = vmax.f32 %v4558_v63, 0.0  ;;  %v8090_v19 = vld [vmem:[#allocation45_spill] sm:$0xff] }
 0x53f   : > { %v4293_v61 = vpop.f32.mrf.mxu1 }
 0x540   : > { %5177 = vst [vmem:[%s6492_s7 + $0x98] sm:$0xff] %v5681_v34  ;;  %v4687_v16 = vmax.f32 %v4559_v57, 0.0  ;;  %v4560_v11 = vadd.f32 %v7449_v47, %v4292_v39  ;;  %v4294_v30 = vadd.f32 %v4293_v61, %v8087_v2  ;;  %v7662_v57 = vpop.f32.mrf.mxu0 }
 0x541   : > { %v4297_v35 = vpop.f32.mrf.mxu1 }
 0x542   : > { %v5682_v26 = vpack.c.bf16 %v4687_v16, %v4686_v36  ;;  %v4561_v40 = vadd.f32 %v7455_v18, %v4294_v30  ;;  %v4298_v20 = vadd.f32 %v4297_v35, %v8088_v17  ;;  %v4688_v27 = vmax.f32 %v4560_v11, 0.0  ;;  %v8091_v35 = vld [vmem:[#allocation46_spill] sm:$0xff]  ;;  %v7669_v17 = vpop.f32.mrf.mxu0 }
 0x543   : > { %v4299_v48 = vpop.f32.mrf.mxu1 }
 0x544   : > { %5178 = vst [vmem:[%s6492_s7 + $0xa0] sm:$0xff] %v5682_v26  ;;  %v4689_v25 = vmax.f32 %v4561_v40, 0.0  ;;  %v4562_v55 = vadd.f32 %v7449_v47, %v4298_v20  ;;  %v4300_v6 = vadd.f32 %v4299_v48, %v8089_v56 }
 0x545   : > { %v4301_v49 = vpop.f32.mrf.mxu1 }
 0x546   : > { %v5683_v15 = vpack.c.bf16 %v4689_v25, %v4688_v27  ;;  %v4563_v63 = vadd.f32 %v7455_v18, %v4300_v6  ;;  %v4302_v52 = vadd.f32 %v4301_v49, %v8090_v19  ;;  %v4690_v39 = vmax.f32 %v4562_v55, 0.0  ;;  %v8092_v25 = vld [vmem:[#allocation47_spill] sm:$0xff]  ;;  %v8093_v49 = vld [vmem:[#allocation48_spill] sm:$0xff]  ;;  %v7676_v19 = vpop.f32.mrf.mxu0 }
 0x547   : > { %v4303_v34 = vpop.f32.mrf.mxu1 }
 0x548   : > { %5179 = vst [vmem:[%s6492_s7 + $0xa8] sm:$0xff] %v5683_v15  ;;  %v4691_v61 = vmax.f32 %v4563_v63, 0.0  ;;  %v4564_v36 = vadd.f32 %v7449_v47, %v4302_v52  ;;  %v4304_v16 = vadd.f32 %v4303_v34, %v7452_v21 }
 0x549   : > { %v4307_v11 = vpop.f32.mrf.mxu1 }
 0x54a   : > { %v5684_v2 = vpack.c.bf16 %v4691_v61, %v4690_v39  ;;  %v4565_v30 = vadd.f32 %v7455_v18, %v4304_v16  ;;  %v4308_v26 = vadd.f32 %v4307_v11, %v8091_v35  ;;  %v4692_v20 = vmax.f32 %v4564_v36, 0.0  ;;  %v7683_v35 = vpop.f32.mrf.mxu0 }
 0x54b   : > { %v4309_v40 = vpop.f32.mrf.mxu1 }
 0x54c   : > { %5180 = vst [vmem:[%s6492_s7 + $0xb0] sm:$0xff] %v5684_v2  ;;  %v4693_v48 = vmax.f32 %v4565_v30, 0.0  ;;  %v4566_v27 = vadd.f32 %v7449_v47, %v4308_v26  ;;  %v4310_v55 = vadd.f32 %v4309_v40, %v8092_v25 }
 0x54d   : > { %v4311_v56 = vpop.f32.mrf.mxu1 }
 0x54e   : > { %v5685_v6 = vpack.c.bf16 %v4693_v48, %v4692_v20  ;;  %v4567_v21 = vadd.f32 %v7455_v18, %v4310_v55  ;;  %v4312_v15 = vadd.f32 %v4311_v56, %v8093_v49  ;;  %v4694_v52 = vmax.f32 %v4566_v27, 0.0 }
 0x54f   : > { %v4313_v63 = vpop.f32.mrf.mxu1 }
 0x550   : > { %5181 = vst [vmem:[%s6492_s7 + $0xb8] sm:$0xff] %v5685_v6  ;;  %v4695_v34 = vmax.f32 %v4567_v21, 0.0  ;;  %v4568_v39 = vadd.f32 %v7449_v47, %v4312_v15  ;;  %v4314_v61 = vadd.f32 %v4313_v63, %v7471_v53  ;;  %v7690_v6 = vpop.f32.mrf.mxu0 }
 0x551   : > { %v4317_v36 = vpop.f32.mrf.mxu1 }
 0x552   : > { %v5686_v16 = vpack.c.bf16 %v4695_v34, %v4694_v52  ;;  %v4569_v11 = vadd.f32 %v7455_v18, %v4314_v61  ;;  %v4318_v2 = vadd.f32 %v4317_v36, %v7476_v1  ;;  %v4696_v26 = vmax.f32 %v4568_v39, 0.0  ;;  %v7697_v61 = vpop.f32.mrf.mxu0 }
 0x553   : > { %v4319_v30 = vpop.f32.mrf.mxu1 }
 0x554   : > { %5182 = vst [vmem:[%s6492_s7 + $0xc0] sm:$0xff] %v5686_v16  ;;  %v4697_v40 = vmax.f32 %v4569_v11, 0.0  ;;  %v4570_v20 = vadd.f32 %v7449_v47, %v4318_v2  ;;  %v4320_v48 = vadd.f32 %v4319_v30, %v7481_v60 }
 0x555   : > { %v4321_v27 = vpop.f32.mrf.mxu1 }
 0x556   : > { %v5687_v25 = vpack.c.bf16 %v4697_v40, %v4696_v26  ;;  %v4571_v53 = vadd.f32 %v7455_v18, %v4320_v48  ;;  %v4322_v55 = vadd.f32 %v4321_v27, %v7485_v23  ;;  %v4698_v1 = vmax.f32 %v4570_v20, 0.0  ;;  %v7704_v20 = vpop.f32.mrf.mxu0 }
 0x557   : > { %v4323_v56 = vpop.f32.mrf.mxu1 }
 0x558   : > { %5183 = vst [vmem:[%s6492_s7 + $0xc8] sm:$0xff] %v5687_v25  ;;  %v4699_v21 = vmax.f32 %v4571_v53, 0.0  ;;  %v4572_v49 = vadd.f32 %v7449_v47, %v4322_v55  ;;  %v4324_v15 = vadd.f32 %v4323_v56, %v7491_v41 }
 0x559   : > { %v4327_v63 = vpop.f32.mrf.mxu1 }
 0x55a   : > { %v5688_v52 = vpack.c.bf16 %v4699_v21, %v4698_v1  ;;  %v4573_v60 = vadd.f32 %v7455_v18, %v4324_v15  ;;  %v4328_v34 = vadd.f32 %v4327_v63, %v7496_v8  ;;  %v4700_v23 = vmax.f32 %v4572_v49, 0.0  ;;  %v7711_v21 = vpop.f32.mrf.mxu0 }
 0x55b   : > { %v4329_v39 = vpop.f32.mrf.mxu1 }
 0x55c   : > { %5184 = vst [vmem:[%s6492_s7 + $0xd0] sm:$0xff] %v5688_v52  ;;  %v4701_v36 = vmax.f32 %v4573_v60, 0.0  ;;  %v4574_v16 = vadd.f32 %v7449_v47, %v4328_v34  ;;  %v4330_v11 = vadd.f32 %v4329_v39, %v7501_v31 }
 0x55d   : > { %v4331_v2 = vpop.f32.mrf.mxu1 }
 0x55e   : > { %v5689_v30 = vpack.c.bf16 %v4701_v36, %v4700_v23  ;;  %v4575_v41 = vadd.f32 %v7455_v18, %v4330_v11  ;;  %v4332_v26 = vadd.f32 %v4331_v2, %v7505_v9  ;;  %v4702_v8 = vmax.f32 %v4574_v16, 0.0  ;;  %v7718_v23 = vpop.f32.mrf.mxu0 }
 0x55f   : > { %v4333_v40 = vpop.f32.mrf.mxu1 }
 0x560   : > { %5185 = vst [vmem:[%s6492_s7 + $0xd8] sm:$0xff] %v5689_v30  ;;  %v4703_v48 = vmax.f32 %v4575_v41, 0.0  ;;  %v4576_v27 = vadd.f32 %v7449_v47, %v4332_v26  ;;  %v4334_v25 = vadd.f32 %v4333_v40, %v7511_v24  ;;  %v7725_v40 = vpop.f32.mrf.mxu0 }
 0x561   : > { %v4337_v53 = vpop.f32.mrf.mxu1 }
 0x562   : > { %v5690_v55 = vpack.c.bf16 %v4703_v48, %v4702_v8  ;;  %v4577_v31 = vadd.f32 %v7455_v18, %v4334_v25  ;;  %v4338_v56 = vadd.f32 %v4337_v53, %v7516_v4  ;;  %v4704_v9 = vmax.f32 %v4576_v27, 0.0 }
 0x563   : > { %v4339_v1 = vpop.f32.mrf.mxu1 }
 0x564   : > { %5186 = vst [vmem:[%s6492_s7 + $0xe0] sm:$0xff] %v5690_v55  ;;  %v4705_v49 = vmax.f32 %v4577_v31, 0.0  ;;  %v4578_v15 = vadd.f32 %v7449_v47, %v4338_v56  ;;  %v4340_v63 = vadd.f32 %v4339_v1, %v7521_v37  ;;  %v7732_v56 = vpop.f32.mrf.mxu0 }
 0x565   : > { %v4341_v52 = vpop.f32.mrf.mxu1 }
 0x566   : > { %v5691_v60 = vpack.c.bf16 %v4705_v49, %v4704_v9  ;;  %v4579_v24 = vadd.f32 %v7455_v18, %v4340_v63  ;;  %v4342_v34 = vadd.f32 %v4341_v52, %v7525_v58  ;;  %v4706_v4 = vmax.f32 %v4578_v15, 0.0 }
 0x567   : > { %v4343_v39 = vpop.f32.mrf.mxu1 }
 0x568   : > { %5187 = vst [vmem:[%s6492_s7 + $0xe8] sm:$0xff] %v5691_v60  ;;  %v4707_v36 = vmax.f32 %v4579_v24, 0.0  ;;  %v4580_v16 = vadd.f32 %v7449_v47, %v4342_v34  ;;  %v4344_v11 = vadd.f32 %v4343_v39, %v7531_v38  ;;  %v7739_v24 = vpop.f32.mrf.mxu0 }
 0x569   : > { %v4347_v2 = vpop.f32.mrf.mxu1 }
 0x56a   : > { %v5692_v30 = vpack.c.bf16 %v4707_v36, %v4706_v4  ;;  %v4581_v37 = vadd.f32 %v7455_v18, %v4344_v11  ;;  %v4348_v41 = vadd.f32 %v4347_v2, %v7536_v0  ;;  %v4708_v58 = vmax.f32 %v4580_v16, 0.0 }
 0x56b   : > { %v4349_v26 = vpop.f32.mrf.mxu1 }
 0x56c   : > { %5188 = vst [vmem:[%s6492_s7 + $0xf0] sm:$0xff] %v5692_v30  ;;  %v4709_v8 = vmax.f32 %v4581_v37, 0.0  ;;  %v4582_v48 = vadd.f32 %v7449_v47, %v4348_v41  ;;  %v4350_v27 = vadd.f32 %v4349_v26, %v7541_v12  ;;  %v7746_v30 = vpop.f32.mrf.mxu0 }
 0x56d   : > { %v4351_v25 = vpop.f32.mrf.mxu1 }
 0x56e   : > { %v5693_v53 = vpack.c.bf16 %v4709_v8, %v4708_v58  ;;  %v4583_v38 = vadd.f32 %v7455_v18, %v4350_v27  ;;  %v4352_v55 = vadd.f32 %v4351_v25, %v7545_v50  ;;  %v4710_v0 = vmax.f32 %v4582_v48, 0.0  ;;  %v7753_v25 = vpop.f32.mrf.mxu0 }
 0x56f   : > { %v4353_v31 = vpop.f32.mrf.mxu1 }
 0x570   : > { %5189 = vst [vmem:[%s6492_s7 + $0xf8] sm:$0xff] %v5693_v53  ;;  %v4711_v1 = vmax.f32 %v4583_v38, 0.0  ;;  %v4584_v9 = vadd.f32 %v7449_v47, %v4352_v55  ;;  %v4354_v49 = vadd.f32 %v4353_v31, %v7551_v10 }
 0x571   : > { %v4357_v15 = vpop.f32.mrf.mxu1 }
 0x572   : > { %v5694_v63 = vpack.c.bf16 %v4711_v1, %v4710_v0  ;;  %v4585_v12 = vadd.f32 %v7455_v18, %v4354_v49  ;;  %v4358_v52 = vadd.f32 %v4357_v15, %v7556_v3  ;;  %v4712_v50 = vmax.f32 %v4584_v9, 0.0  ;;  %v7760_v49 = vpop.f32.mrf.mxu0 }
 0x573   : > { %v4359_v60 = vpop.f32.mrf.mxu1 }
 0x574   : > { %5190 = vst [vmem:[%s6492_s7 + $0x100] sm:$0xff] %v5694_v63  ;;  %v4713_v34 = vmax.f32 %v4585_v12, 0.0  ;;  %v4586_v39 = vadd.f32 %v7449_v47, %v4358_v52  ;;  %v4360_v4 = vadd.f32 %v4359_v60, %v7561_v14 }
 0x575   : > { %v4361_v36 = vpop.f32.mrf.mxu1 }
 0x576   : > { %v5695_v16 = vpack.c.bf16 %v4713_v34, %v4712_v50  ;;  %v4587_v10 = vadd.f32 %v7455_v18, %v4360_v4  ;;  %v4362_v11 = vadd.f32 %v4361_v36, %v7565_v5  ;;  %v4714_v3 = vmax.f32 %v4586_v39, 0.0  ;;  %v7767_v39 = vpop.f32.mrf.mxu0 }
 0x577   : > { %v4363_v2 = vpop.f32.mrf.mxu1 }
 0x578   : > { %5191 = vst [vmem:[%s6492_s7 + $0x108] sm:$0xff] %v5695_v16  ;;  %v4715_v37 = vmax.f32 %v4587_v10, 0.0  ;;  %v4588_v41 = vadd.f32 %v7449_v47, %v4362_v11  ;;  %v4364_v26 = vadd.f32 %v4363_v2, %v7571_v33 }
 0x579   : > { %v4367_v58 = vpop.f32.mrf.mxu1 }
 0x57a   : > { %v5696_v8 = vpack.c.bf16 %v4715_v37, %v4714_v3  ;;  %v4589_v14 = vadd.f32 %v7455_v18, %v4364_v26  ;;  %v4368_v48 = vadd.f32 %v4367_v58, %v7576_v46  ;;  %v4716_v5 = vmax.f32 %v4588_v41, 0.0  ;;  %v7774_v37 = vpop.f32.mrf.mxu0 }
 0x57b   : > { %v4369_v27 = vpop.f32.mrf.mxu1 }
 0x57c   : > { %5192 = vst [vmem:[%s6492_s7 + $0x110] sm:$0xff] %v5696_v8  ;;  %v4717_v53 = vmax.f32 %v4589_v14, 0.0  ;;  %v4590_v38 = vadd.f32 %v7449_v47, %v4368_v48  ;;  %v4370_v55 = vadd.f32 %v4369_v27, %v7581_v54 }
 0x57d   : > { %v4371_v31 = vpop.f32.mrf.mxu1 }
 0x57e   : > { %v5697_v0 = vpack.c.bf16 %v4717_v53, %v4716_v5  ;;  %v4591_v33 = vadd.f32 %v7455_v18, %v4370_v55  ;;  %v4372_v1 = vadd.f32 %v4371_v31, %v7585_v62  ;;  %v4718_v46 = vmax.f32 %v4590_v38, 0.0  ;;  %v7781_v5 = vpop.f32.mrf.mxu0 }
 0x57f   : > { %v4373_v9 = vpop.f32.mrf.mxu1 }
 0x580   : > { %5193 = vst [vmem:[%s6492_s7 + $0x118] sm:$0xff] %v5697_v0  ;;  %v4719_v15 = vmax.f32 %v4591_v33, 0.0  ;;  %v4592_v63 = vadd.f32 %v7449_v47, %v4372_v1  ;;  %v4374_v12 = vadd.f32 %v4373_v9, %v7591_v13  ;;  %v7788_v9 = vpop.f32.mrf.mxu0 }
 0x581   : > { %v4377_v52 = vpop.f32.mrf.mxu1 }
 0x582   : > { %v5698_v60 = vpack.c.bf16 %v4719_v15, %v4718_v46  ;;  %v4593_v54 = vadd.f32 %v7455_v18, %v4374_v12  ;;  %v4378_v50 = vadd.f32 %v4377_v52, %v7595_v44  ;;  %v4720_v62 = vmax.f32 %v4592_v63, 0.0 }
 0x583   : > { %v4379_v34 = vpop.f32.mrf.mxu1 }
 0x584   : > { %5194 = vst [vmem:[%s6492_s7 + $0x120] sm:$0xff] %v5698_v60  ;;  %v4721_v4 = vmax.f32 %v4593_v54, 0.0  ;;  %v4594_v36 = vadd.f32 %v7449_v47, %v4378_v50  ;;  %v4380_v16 = vadd.f32 %v4379_v34, %v7600_v42  ;;  %v7795_v50 = vpop.f32.mrf.mxu0 }
 0x585   : > { %v4381_v10 = vpop.f32.mrf.mxu1 }
 0x586   : > { %v5699_v11 = vpack.c.bf16 %v4721_v4, %v4720_v62  ;;  %v4595_v13 = vadd.f32 %v7455_v18, %v4380_v16  ;;  %v4382_v2 = vadd.f32 %v4381_v10, %v7604_v29  ;;  %v4722_v44 = vmax.f32 %v4594_v36, 0.0 }
 0x587   : > { %v4383_v3 = vpop.f32.mrf.mxu1 }
 0x588   : > { %5195 = vst [vmem:[%s6492_s7 + $0x128] sm:$0xff] %v5699_v11  ;;  %v4723_v41 = vmax.f32 %v4595_v13, 0.0  ;;  %v4596_v26 = vadd.f32 %v7449_v47, %v4382_v2  ;;  %v4384_v58 = vadd.f32 %v4383_v3, %v7609_v51  ;;  %v7802_v13 = vpop.f32.mrf.mxu0 }
 0x589   : > { %v4387_v8 = vpop.f32.mrf.mxu1 }
 0x58a   : > { %v5700_v14 = vpack.c.bf16 %v4723_v41, %v4722_v44  ;;  %v4597_v42 = vadd.f32 %v7455_v18, %v4384_v58  ;;  %v4388_v48 = vadd.f32 %v4387_v8, %v7613_v45  ;;  %v4724_v29 = vmax.f32 %v4596_v26, 0.0 }
 0x58b   : > { %v4389_v27 = vpop.f32.mrf.mxu1 }
 0x58c   : > { %5196 = vst [vmem:[%s6492_s7 + $0x130] sm:$0xff] %v5700_v14  ;;  %v4725_v53 = vmax.f32 %v4597_v42, 0.0  ;;  %v4598_v38 = vadd.f32 %v7449_v47, %v4388_v48  ;;  %v4390_v55 = vadd.f32 %v4389_v27, %v7620_v22  ;;  %v7809_v14 = vpop.f32.mrf.mxu0 }
 0x58d   : > { %v4391_v31 = vpop.f32.mrf.mxu1 }
 0x58e   : > { %v5701_v0 = vpack.c.bf16 %v4725_v53, %v4724_v29  ;;  %v4599_v51 = vadd.f32 %v7455_v18, %v4390_v55  ;;  %v4392_v33 = vadd.f32 %v4391_v31, %v7627_v28  ;;  %v4726_v45 = vmax.f32 %v4598_v38, 0.0  ;;  %v7816_v31 = vpop.f32.mrf.mxu0 }
 0x58f   : > { %v4393_v1 = vpop.f32.mrf.mxu1 }
 0x590   : > { %5197 = vst [vmem:[%s6492_s7 + $0x138] sm:$0xff] %v5701_v0  ;;  %v4727_v46 = vmax.f32 %v4599_v51, 0.0  ;;  %v4600_v15 = vadd.f32 %v7449_v47, %v4392_v33  ;;  %v4394_v63 = vadd.f32 %v4393_v1, %v7634_v32 }
 0x591   : > { %v4397_v12 = vpop.f32.mrf.mxu1 }
 0x592   : > { %v5702_v52 = vpack.c.bf16 %v4727_v46, %v4726_v45  ;;  %v4601_v22 = vadd.f32 %v7455_v18, %v4394_v63  ;;  %v4398_v60 = vadd.f32 %v4397_v12, %v7641_v7  ;;  %v4728_v28 = vmax.f32 %v4600_v15, 0.0  ;;  %v7823_v63 = vpop.f32.mrf.mxu0 }
 0x593   : > { %v4399_v54 = vpop.f32.mrf.mxu1 }
 0x594   : > { %5198 = vst [vmem:[%s6492_s7 + $0x140] sm:$0xff] %v5702_v52  ;;  %v4729_v34 = vmax.f32 %v4601_v22, 0.0  ;;  %v4602_v62 = vadd.f32 %v7449_v47, %v4398_v60  ;;  %v4400_v4 = vadd.f32 %v4399_v54, %v7648_v43 }
 0x595   : > { %v4401_v36 = vpop.f32.mrf.mxu1 }
 0x596   : > { %v5703_v16 = vpack.c.bf16 %v4729_v34, %v4728_v28  ;;  %v4603_v32 = vadd.f32 %v7455_v18, %v4400_v4  ;;  %v4402_v10 = vadd.f32 %v4401_v36, %v7655_v59  ;;  %v4730_v7 = vmax.f32 %v4602_v62, 0.0  ;;  %v7830_v62 = vpop.f32.mrf.mxu0 }
 0x597   : > { %v4403_v11 = vpop.f32.mrf.mxu1 }
 0x598   : > { %5199 = vst [vmem:[%s6492_s7 + $0x148] sm:$0xff] %v5703_v16  ;;  %v4731_v2 = vmax.f32 %v4603_v32, 0.0  ;;  %v4604_v3 = vadd.f32 %v7449_v47, %v4402_v10  ;;  %v4404_v44 = vadd.f32 %v4403_v11, %v7662_v57 }
 0x599   : > { %v4407_v41 = vpop.f32.mrf.mxu1 }
 0x59a   : > { %v5704_v26 = vpack.c.bf16 %v4731_v2, %v4730_v7  ;;  %v4605_v43 = vadd.f32 %v7455_v18, %v4404_v44  ;;  %v4408_v58 = vadd.f32 %v4407_v41, %v7669_v17  ;;  %v4732_v59 = vmax.f32 %v4604_v3, 0.0  ;;  %v7837_v2 = vpop.f32.mrf.mxu0 }
 0x59b   : > { %v4409_v8 = vpop.f32.mrf.mxu1 }
 0x59c   : > { %5200 = vst [vmem:[%s6492_s7 + $0x150] sm:$0xff] %v5704_v26  ;;  %v4733_v42 = vmax.f32 %v4605_v43, 0.0  ;;  %v4606_v48 = vadd.f32 %v7449_v47, %v4408_v58  ;;  %v4410_v27 = vadd.f32 %v4409_v8, %v7676_v19 }
 0x59d   : > { %v4411_v29 = vpop.f32.mrf.mxu1 }
 0x59e   : > { %v5705_v53 = vpack.c.bf16 %v4733_v42, %v4732_v59  ;;  %v4607_v57 = vadd.f32 %v7455_v18, %v4410_v27  ;;  %v4412_v38 = vadd.f32 %v4411_v29, %v7683_v35  ;;  %v4734_v17 = vmax.f32 %v4606_v48, 0.0  ;;  %v7844_v59 = vpop.f32.mrf.mxu0 }
 0x59f   : > { %v4413_v55 = vpop.f32.mrf.mxu1 }
 0x5a0   : > { %5201 = vst [vmem:[%s6492_s7 + $0x158] sm:$0xff] %v5705_v53  ;;  %v4735_v0 = vmax.f32 %v4607_v57, 0.0  ;;  %v4608_v51 = vadd.f32 %v7449_v47, %v4412_v38  ;;  %v4414_v33 = vadd.f32 %v4413_v55, %v7690_v6  ;;  %v7851_v55 = vpop.f32.mrf.mxu0 }
 0x5a1   : > { %v4417_v1 = vpop.f32.mrf.mxu1 }
 0x5a2   : > { %v5706_v45 = vpack.c.bf16 %v4735_v0, %v4734_v17  ;;  %v4609_v19 = vadd.f32 %v7455_v18, %v4414_v33  ;;  %v4418_v46 = vadd.f32 %v4417_v1, %v7697_v61  ;;  %v4736_v35 = vmax.f32 %v4608_v51, 0.0 }
 0x5a3   : > { %v4419_v15 = vpop.f32.mrf.mxu1 }
 0x5a4   : > { %5202 = vst [vmem:[%s6492_s7 + $0x160] sm:$0xff] %v5706_v45  ;;  %v4737_v12 = vmax.f32 %v4609_v19, 0.0  ;;  %v4610_v52 = vadd.f32 %v7449_v47, %v4418_v46  ;;  %v4420_v22 = vadd.f32 %v4419_v15, %v7704_v20  ;;  %v7858_v46 = vpop.f32.mrf.mxu0 }
 0x5a5   : > { %v4421_v60 = vpop.f32.mrf.mxu1 }
 0x5a6   : > { %v5707_v54 = vpack.c.bf16 %v4737_v12, %v4736_v35  ;;  %v4611_v6 = vadd.f32 %v7455_v18, %v4420_v22  ;;  %v4422_v28 = vadd.f32 %v4421_v60, %v7711_v21  ;;  %v4738_v61 = vmax.f32 %v4610_v52, 0.0 }
 0x5a7   : > { %v4423_v34 = vpop.f32.mrf.mxu1 }
 0x5a8   : > { %5203 = vst [vmem:[%s6492_s7 + $0x168] sm:$0xff] %v5707_v54  ;;  %v4739_v4 = vmax.f32 %v4611_v6, 0.0  ;;  %v4612_v36 = vadd.f32 %v7449_v47, %v4422_v28  ;;  %v4424_v16 = vadd.f32 %v4423_v34, %v7718_v23  ;;  %v7865_v6 = vpop.f32.mrf.mxu0 }
 0x5a9   : > { %v4427_v32 = vpop.f32.mrf.mxu1 }
 0x5aa   : > { %v5708_v10 = vpack.c.bf16 %v4739_v4, %v4738_v61  ;;  %v4613_v20 = vadd.f32 %v7455_v18, %v4424_v16  ;;  %v4428_v11 = vadd.f32 %v4427_v32, %v7725_v40  ;;  %v4740_v21 = vmax.f32 %v4612_v36, 0.0 }
 0x5ab   : > { %v4429_v7 = vpop.f32.mrf.mxu1 }
 0x5ac   : > { %5204 = vst [vmem:[%s6492_s7 + $0x170] sm:$0xff] %v5708_v10  ;;  %v4741_v3 = vmax.f32 %v4613_v20, 0.0  ;;  %v4614_v44 = vadd.f32 %v7449_v47, %v4428_v11  ;;  %v4430_v41 = vadd.f32 %v4429_v7, %v7732_v56  ;;  %v3990_v10 = vpop.f32.mrf.mxu0 }
 0x5ad   : > { %v4431_v26 = vpop.f32.mrf.mxu1 }
 0x5ae   : > { %v5709_v43 = vpack.c.bf16 %v4741_v3, %v4740_v21  ;;  %v4615_v23 = vadd.f32 %v7455_v18, %v4430_v41  ;;  %v4432_v58 = vadd.f32 %v4431_v26, %v7739_v24  ;;  %v4742_v40 = vmax.f32 %v4614_v44, 0.0  ;;  %v3992_v26 = vpop.f32.mrf.mxu0 }
 0x5af   : > { %v4433_v8 = vpop.f32.mrf.mxu1 }
 0x5b0   : > { %5205 = vst [vmem:[%s6492_s7 + $0x178] sm:$0xff] %v5709_v43  ;;  %v4743_v42 = vmax.f32 %v4615_v23, 0.0  ;;  %v4616_v48 = vadd.f32 %v7449_v47, %v4432_v58  ;;  %v4434_v27 = vadd.f32 %v4433_v8, %v7746_v30 }
 0x5b1   : > { %v4437_v29 = vpop.f32.mrf.mxu1 }
 0x5b2   : > { %v5710_v53 = vpack.c.bf16 %v4743_v42, %v4742_v40  ;;  %v4617_v56 = vadd.f32 %v7455_v18, %v4434_v27  ;;  %v4438_v57 = vadd.f32 %v4437_v29, %v7753_v25  ;;  %v4744_v24 = vmax.f32 %v4616_v48, 0.0  ;;  %v3994_v27 = vpop.f32.mrf.mxu0 }
 0x5b3   : > { %v4439_v38 = vpop.f32.mrf.mxu1 }
 0x5b4   : > { %5206 = vst [vmem:[%s6492_s7 + $0x180] sm:$0xff] %v5710_v53  ;;  %v4745_v17 = vmax.f32 %v4617_v56, 0.0  ;;  %v4618_v0 = vadd.f32 %v7449_v47, %v4438_v57  ;;  %v4440_v51 = vadd.f32 %v4439_v38, %v7760_v49 }
 0x5b5   : > { %v4441_v33 = vpop.f32.mrf.mxu1 }
 0x5b6   : > { %v5711_v1 = vpack.c.bf16 %v4745_v17, %v4744_v24  ;;  %v4619_v30 = vadd.f32 %v7455_v18, %v4440_v51  ;;  %v4442_v45 = vadd.f32 %v4441_v33, %v7767_v39  ;;  %v4746_v25 = vmax.f32 %v4618_v0, 0.0  ;;  %v3998_v0 = vpop.f32.mrf.mxu0 }
 0x5b7   : > { %v4443_v19 = vpop.f32.mrf.mxu1 }
 0x5b8   : > { %5207 = vst [vmem:[%s6492_s7 + $0x188] sm:$0xff] %v5711_v1  ;;  %v4747_v15 = vmax.f32 %v4619_v30, 0.0  ;;  %v4620_v35 = vadd.f32 %v7449_v47, %v4442_v45  ;;  %v4444_v12 = vadd.f32 %v4443_v19, %v7774_v37 }
 0x5b9   : > { %v4447_v52 = vpop.f32.mrf.mxu1 }
 0x5ba   : > { %v5712_v22 = vpack.c.bf16 %v4747_v15, %v4746_v25  ;;  %v4621_v49 = vadd.f32 %v7455_v18, %v4444_v12  ;;  %v4448_v60 = vadd.f32 %v4447_v52, %v7781_v5  ;;  %v4748_v39 = vmax.f32 %v4620_v35, 0.0  ;;  %v4000_v15 = vpop.f32.mrf.mxu0 }
 0x5bb   : > { %v4449_v54 = vpop.f32.mrf.mxu1 }
 0x5bc   : > { %5208 = vst [vmem:[%s6492_s7 + $0x190] sm:$0xff] %v5712_v22  ;;  %v4749_v28 = vmax.f32 %v4621_v49, 0.0  ;;  %v4622_v34 = vadd.f32 %v7449_v47, %v4448_v60  ;;  %v4450_v61 = vadd.f32 %v4449_v54, %v7788_v9 }
 0x5bd   : > { %v4451_v4 = vpop.f32.mrf.mxu1 }
 0x5be   : > { %v5713_v36 = vpack.c.bf16 %v4749_v28, %v4748_v39  ;;  %v4623_v37 = vadd.f32 %v7455_v18, %v4450_v61  ;;  %v4452_v16 = vadd.f32 %v4451_v4, %v7795_v50  ;;  %v4750_v5 = vmax.f32 %v4622_v34, 0.0  ;;  %v4002_v39 = vpop.f32.mrf.mxu0 }
 0x5bf   : > { %v4453_v32 = vpop.f32.mrf.mxu1 }
 0x5c0   : > { %5209 = vst [vmem:[%s6492_s7 + $0x198] sm:$0xff] %v5713_v36  ;;  %v4751_v20 = vmax.f32 %v4623_v37, 0.0  ;;  %v4624_v11 = vadd.f32 %v7449_v47, %v4452_v16  ;;  %v4454_v7 = vadd.f32 %v4453_v32, %v7802_v13  ;;  %v4004_v32 = vpop.f32.mrf.mxu0 }
 0x5c1   : > { %v4457_v21 = vpop.f32.mrf.mxu1 }
 0x5c2   : > { %v5714_v3 = vpack.c.bf16 %v4751_v20, %v4750_v5  ;;  %v4625_v9 = vadd.f32 %v7455_v18, %v4454_v7  ;;  %v4458_v44 = vadd.f32 %v4457_v21, %v7809_v14  ;;  %v4752_v50 = vmax.f32 %v4624_v11, 0.0 }
 0x5c3   : > { %v4459_v41 = vpop.f32.mrf.mxu1 }
 0x5c4   : > { %5210 = vst [vmem:[%s6492_s7 + $0x1a0] sm:$0xff] %v5714_v3  ;;  %v4753_v43 = vmax.f32 %v4625_v9, 0.0  ;;  %v4626_v23 = vadd.f32 %v7449_v47, %v4458_v44  ;;  %v4460_v58 = vadd.f32 %v4459_v41, %v7816_v31  ;;  %v4008_v9 = vpop.f32.mrf.mxu0 }
 0x5c5   : > { %v4461_v8 = vpop.f32.mrf.mxu1 }
 0x5c6   : > { %v5715_v40 = vpack.c.bf16 %v4753_v43, %v4752_v50  ;;  %v4627_v13 = vadd.f32 %v7455_v18, %v4460_v58  ;;  %v4462_v42 = vadd.f32 %v4461_v8, %v7823_v63  ;;  %v4754_v14 = vmax.f32 %v4626_v23, 0.0 }
 0x5c7   : > { %v4463_v48 = vpop.f32.mrf.mxu1 }
 0x5c8   : > { %5211 = vst [vmem:[%s6492_s7 + $0x1a8] sm:$0xff] %v5715_v40  ;;  %v4755_v29 = vmax.f32 %v4627_v13, 0.0  ;;  %v4628_v53 = vadd.f32 %v7449_v47, %v4462_v42  ;;  %v4464_v56 = vadd.f32 %v4463_v48, %v7830_v62  ;;  %v4010_v13 = vpop.f32.mrf.mxu0 }
 0x5c9   : > { %v4467_v57 = vpop.f32.mrf.mxu1 }
 0x5ca   : > { %v5716_v38 = vpack.c.bf16 %v4755_v29, %v4754_v14  ;;  %v4629_v31 = vadd.f32 %v7455_v18, %v4464_v56  ;;  %v4468_v24 = vadd.f32 %v4467_v57, %v7837_v2  ;;  %v4756_v63 = vmax.f32 %v4628_v53, 0.0 }
 0x5cb   : > { %v4469_v17 = vpop.f32.mrf.mxu1 }
 0x5cc   : > { %5212 = vst [vmem:[%s6492_s7 + $0x1b0] sm:$0xff] %v5716_v38  ;;  %v4757_v51 = vmax.f32 %v4629_v31, 0.0  ;;  %v4630_v33 = vadd.f32 %v7449_v47, %v4468_v24  ;;  %v4470_v1 = vadd.f32 %v4469_v17, %v7844_v59  ;;  %v4012_v31 = vpop.f32.mrf.mxu0 }
 0x5cd   : > { %v4471_v30 = vpop.f32.mrf.mxu1 }
 0x5ce   : > { %v5717_v45 = vpack.c.bf16 %v4757_v51, %v4756_v63  ;;  %v4631_v62 = vadd.f32 %v7455_v18, %v4470_v1  ;;  %v4472_v19 = vadd.f32 %v4471_v30, %v7851_v55  ;;  %v4758_v2 = vmax.f32 %v4630_v33, 0.0 }
 0x5cf   : > { %v4473_v25 = vpop.f32.mrf.mxu1 }
 0x5d0   : > { %5213 = vst [vmem:[%s6492_s7 + $0x1b8] sm:$0xff] %v5717_v45  ;;  %v4759_v35 = vmax.f32 %v4631_v62, 0.0  ;;  %v4632_v12 = vadd.f32 %v7449_v47, %v4472_v19  ;;  %v4474_v52 = vadd.f32 %v4473_v25, %v7858_v46  ;;  %v4014_v62 = vpop.f32.mrf.mxu0 }
 0x5d1   : > { %v4477_v22 = vpop.f32.mrf.mxu1 }
 0x5d2   : > { %v5718_v49 = vpack.c.bf16 %v4759_v35, %v4758_v2  ;;  %v4633_v59 = vadd.f32 %v7455_v18, %v4474_v52  ;;  %v4478_v60 = vadd.f32 %v4477_v22, %v7865_v6  ;;  %v4760_v55 = vmax.f32 %v4632_v12, 0.0 }
 0x5d3   : > { %v4479_v54 = vpop.f32.mrf.mxu1 }
 0x5d4   : > { %5214 = vst [vmem:[%s6492_s7 + $0x1c0] sm:$0xff] %v5718_v49  ;;  %v4761_v28 = vmax.f32 %v4633_v59, 0.0  ;;  %v4634_v34 = vadd.f32 %v7449_v47, %v4478_v60  ;;  %v4480_v61 = vadd.f32 %v4479_v54, %v3990_v10 }
 0x5d5   : > { %v4481_v4 = vpop.f32.mrf.mxu1 }
 0x5d6   : > { %v5719_v36 = vpack.c.bf16 %v4761_v28, %v4760_v55  ;;  %v4635_v46 = vadd.f32 %v7455_v18, %v4480_v61  ;;  %v4482_v37 = vadd.f32 %v4481_v4, %v3992_v26  ;;  %v4762_v5 = vmax.f32 %v4634_v34, 0.0 }
 0x5d7   : > { %v4483_v16 = vpop.f32.mrf.mxu1 }
 0x5d8   : > { %5215 = vst [vmem:[%s6492_s7 + $0x1c8] sm:$0xff] %v5719_v36  ;;  %v4763_v20 = vmax.f32 %v4635_v46, 0.0  ;;  %v4636_v6 = vadd.f32 %v7449_v47, %v4482_v37  ;;  %v4484_v11 = vadd.f32 %v4483_v16, %v3994_v27 }
 0x5d9   : > { %v4487_v7 = vpop.f32.mrf.mxu1 }
 0x5da   : > { %v5720_v21 = vpack.c.bf16 %v4763_v20, %v4762_v5  ;;  %v4637_v3 = vadd.f32 %v7455_v18, %v4484_v11  ;;  %v4488_v10 = vadd.f32 %v4487_v7, %v3998_v0  ;;  %v4764_v41 = vmax.f32 %v4636_v6, 0.0 }
 0x5db   : > { %v4489_v44 = vpop.f32.mrf.mxu1 }
 0x5dc   : > { %5216 = vst [vmem:[%s6492_s7 + $0x1d0] sm:$0xff] %v5720_v21  ;;  %v4765_v50 = vmax.f32 %v4637_v3, 0.0  ;;  %v4638_v26 = vadd.f32 %v7449_v47, %v4488_v10  ;;  %v4490_v43 = vadd.f32 %v4489_v44, %v4000_v15 }
 0x5dd   : > { %v4491_v23 = vpop.f32.mrf.mxu1 }
 0x5de   : > { %v5721_v58 = vpack.c.bf16 %v4765_v50, %v4764_v41  ;;  %v4639_v8 = vadd.f32 %v7455_v18, %v4490_v43  ;;  %v4492_v40 = vadd.f32 %v4491_v23, %v4002_v39  ;;  %v4766_v48 = vmax.f32 %v4638_v26, 0.0 }
 0x5df   : > { %v4493_v42 = vpop.f32.mrf.mxu1 }
 0x5e0   : > { %5217 = vst [vmem:[%s6492_s7 + $0x1d8] sm:$0xff] %v5721_v58  ;;  %v4767_v27 = vmax.f32 %v4639_v8, 0.0  ;;  %v4640_v14 = vadd.f32 %v7449_v47, %v4492_v40  ;;  %v4494_v29 = vadd.f32 %v4493_v42, %v4004_v32 }
 0x5e1   : > { %v4497_v53 = vpop.f32.mrf.mxu1 }
 0x5e2   : > { %v5722_v56 = vpack.c.bf16 %v4767_v27, %v4766_v48  ;;  %v4641_v57 = vadd.f32 %v7455_v18, %v4494_v29  ;;  %v4498_v38 = vadd.f32 %v4497_v53, %v4008_v9  ;;  %v4768_v17 = vmax.f32 %v4640_v14, 0.0 }
 0x5e3   : > { %v4499_v24 = vpop.f32.mrf.mxu1 }
 0x5e4   : > { %5218 = vst [vmem:[%s6492_s7 + $0x1e0] sm:$0xff] %v5722_v56  ;;  %v4769_v0 = vmax.f32 %v4641_v57, 0.0  ;;  %v4642_v63 = vadd.f32 %v7449_v47, %v4498_v38  ;;  %v4500_v51 = vadd.f32 %v4499_v24, %v4010_v13 }
 0x5e5   : > { %v4501_v33 = vpop.f32.mrf.mxu1 }
 0x5e6   : > { %v5723_v1 = vpack.c.bf16 %v4769_v0, %v4768_v17  ;;  %v4643_v30 = vadd.f32 %v7455_v18, %v4500_v51  ;;  %v4502_v45 = vadd.f32 %v4501_v33, %v4012_v31  ;;  %v4770_v25 = vmax.f32 %v4642_v63, 0.0 }
 0x5e7   : > { %v4503_v19 = vpop.f32.mrf.mxu1 }
 0x5e8   : > { %5219 = vst [vmem:[%s6492_s7 + $0x1e8] sm:$0xff] %v5723_v1  ;;  %v4771_v15 = vmax.f32 %v4643_v30, 0.0  ;;  %v4644_v2 = vadd.f32 %v7449_v47, %v4502_v45  ;;  %v4504_v35 = vadd.f32 %v4503_v19, %v4014_v62 }
 0x5ea   : > { %v5724_v12 = vpack.c.bf16 %v4771_v15, %v4770_v25  ;;  %v4645_v52 = vadd.f32 %v7455_v18, %v4504_v35  ;;  %v4772_v22 = vmax.f32 %v4644_v2, 0.0 }
 0x5ec   : > { %5220 = vst [vmem:[%s6492_s7 + $0x1f0] sm:$0xff] %v5724_v12  ;;  %v4773_v49 = vmax.f32 %v4645_v52, 0.0 }
 0x5ee   : > { %v5725_v59 = vpack.c.bf16 %v4773_v49, %v4772_v22 }
 0x5f0   : > { %5221 = vst [vmem:[%s6492_s7 + $0x1f8] sm:$0xff] %v5725_v59 }
 0x5f1 PF: > { %s8094_s30 = sld [smem:[#allocation19_spill]]  ;;  %s5727_s22 = sshll.u32 %s6215_s8, 13 }
 0x5f2   : > { %s8095_s12 = sld [smem:[#allocation53_spill]]  ;;  %s5237_s20 = sshll.u32 %s6492_s7, 4  ;;  %s7924_s20 = int_to_ptr.vmem [resolvable:$true] %s5237_s20 }
 0x5f3   : > { %s8096_s13 = sand.u32 1, %s6191_s25   ;;  %s6099_s15 = scalar_lea.vmem %s7924_s20, 8192 }
 0x5f4   : > { %s7928_s27 = scalar_lea.sflag [#allocation5], %s8096_s13  ;;  %p6100_p10 = scmp.ne.s32.totalorder %s7924_s20, %s6099_s15 }
 0x5f5   : > { %s6241_s8 = smov [#allocation11]  }
 0x5f6   : > { %s6103_s3 = sshll.u32 %s6241_s8, 4  ;;  %s6104_s3 = int_to_ptr.vmem [resolvable:$false] %s6103_s3 }
 0x5f7   : > { %p8097_p3 = scmp.ne.s32.totalorder %s8094_s30, 0  ;;  %s6105_s5 = scalar_lea.vmem %s6104_s3, 16384 }
 0x5f8   : > { %s7921_s24 = scalar_lea.hbm %s8095_s12, %s5727_s22  ;;  %p6106_p4 = scmp.lt.s32.totalorder %s7924_s20, %s6104_s3 }
 0x5f9   : > { %p6101_p13 = pnand %p6100_p10, %p8097_p3  ;;  %p6107_p6 = scmp.lt.s32.totalorder %s6105_s5, %s6099_s15 }
 0x5fb   : > { %p6102_p1 = pneg %p6101_p13  ;;  %p6108_p2 = por %p6107_p6, %p6106_p4 }
 0x5fd   : > { %p6109_p9 = pnand %p6108_p2, %p6102_p1 }
 0x5ff   : > { %6112 = shalt.err (!%p6109_p9)
}
 0x600   : > { %s6113_s7 = scalar_lea.hbm %s7921_s24, 8192  ;;  %s6117_s19 = scalar_lea.hbm %s8095_s12, 32768 }
 0x601   : > { %p6114_p8 = scmp.ne.s32.totalorder %s7921_s24, %s6113_s7  ;;  %p6118_p7 = scmp.lt.s32.totalorder %s7921_s24, %s8095_s12 }
 0x602   : > { %p6119_p5 = scmp.lt.s32.totalorder %s6117_s19, %s6113_s7 }
 0x603   : > { %p6115_p11 = pnand %p6114_p8, %p8097_p3 }
 0x604   : > { %p6120_p12 = por %p6119_p5, %p6118_p7 }
 0x605   : > { %p6116_p0 = pneg %p6115_p11 }
 0x607   : > { %p6121_p10 = pnand %p6120_p12, %p6116_p0 }
 0x609   : > { %6124 = shalt.err (!%p6121_p10)
}
 0x60a   : > { %s6242_s11 = smov 128   ;;  %s6243_s22 = smov 8  }
 0x60b   : > { %5742 = dma.vmem_to_hbm [thread:$0]  (%p8097_p3), %s7924_s20, 8192, %s7921_s24, %s7928_s27, %s6242_s11, %s6242_s11, %s6243_s22  }
 0x60c PF: > { %s8098_s21 = sld [smem:[#allocation18_spill]] }
 0x60d   : > { %s8099_s18 = sld [smem:[#allocation16_spill]] }
 0x60e   : > { %s8100_s13 = sld [smem:[#allocation20_spill]] }
 0x612   : > { %p5769_p13 = scmp.ge.s32.totalorder %s8098_s21, 2 }
 0x613   : > { %s5252_s15 = sand.u32 1, %s8099_s18  }
 0x614   : > { %p8101_p1 = scmp.ne.s32.totalorder %s8100_s13, 0  ;;  %s5253_s8 = scalar_lea.sflag [#allocation5], %s5252_s15 }
 0x616   : > { %p5759_p4 = pnand %p5769_p13, %p8101_p1 }
 0x618   : > { %p5760_p6 = pneg %p5759_p4 }
 0x61a   : > { %6182 = dma.done.wait (%p5760_p6), %s5253_s8, 8192  }
 0x61b   : > { %6184 = vsyncadd (%p5760_p6), %s5253_s8, 4294959104  ;;  %s25_s11 = sadd.s32 1, %s8098_s21   ;;  %s8102_s30 = sld [smem:[#allocation17_spill]] }
 0x61c   : > { %p22_p2 = scmp.ge.s32.totalorder %s25_s11, 10   ;;  %s8103_s9 = sld [smem:[#allocation21_spill]] }
 0x61d   : > { %s8104_s24 = smov %s6191_s25  ;;  %s8105_s25 = smov %s6195_s26 }
 0x61e   : > { %s8106_s26 = smov %s6440_s23  ;;  %s8107_s27 = smov %s6203_s28 }
 0x61f   : > { %s8108_s28 = smov %s6207_s29  ;;  %s8109_s29 = smov %s6445_s6 }
 0x620   : > { %s8110_s8 = smov %s6223_s10  ;;  %s8111_s10 = smov %s8117_s16 }
 0x621   :  { %24 = sbr.rel (!%p22_p2) target bundleno = 17 (0x11), region = 122 }
 0x626   :  { %5258 = vsyncpa [#allocation4], 1 }
 0x627   :  { %5260 = vsyncpa [#allocation4 + $0x1], 1 }
 0x628   :  { %5261 = vsyncpa [#allocation7], 1 }
 0x629   :  { %5262 = vsyncpa [#allocation10], 1 }
 0x62a   :  { %5263 = vsyncpa [#allocation5], 1 }
 0x62b   :  { %5265 = vsyncpa [#allocation5 + $0x1], 1 }

</bundles_post_ra>
